<compile_context>
chip_gen: v5e
topology: v5e:2x2
jax: 0.10.0
libtpu: 0.0.40
codegen_flags: <defaults>
</compile_context>

<pallas_src>
import jax
import jax.numpy as jnp
from jax import lax
from jax.experimental import pallas as pl
from jax.experimental.pallas import tpu as pltpu

BN_EPS = 1e-5
HIDDEN = 2048
LANE = 128


# ---------------- fused kernel: fc1 + BN1 + ReLU + fc2 + BN2 + ReLU + fc3 ----------------
def _fused_mlp_kernel(x_ref, w1_ref, g1_ref, be1_ref,
                      w2_ref, g2_ref, be2_ref, w3_ref, b3_ref,
                      o_ref, acc_ref):
    k = pl.program_id(0)

    @pl.when(k == 0)
    def _():
        acc_ref[...] = jnp.zeros_like(acc_ref)

    # MXU matmul over this K tile (bf16 in, f32 accumulation).
    acc_ref[...] += jnp.dot(x_ref[...], w1_ref[...],
                            preferred_element_type=jnp.float32)

    @pl.when(k == pl.num_programs(0) - 1)
    def _():
        # ---- BN1 (batch stats, two-pass / centered variance) + ReLU ----
        z1 = acc_ref[...]                                        # (B, 2048) f32
        inv_b = 1.0 / z1.shape[0]
        mu1 = jnp.sum(z1, axis=0, keepdims=True) * inv_b
        d1 = z1 - mu1
        var1 = jnp.sum(d1 * d1, axis=0, keepdims=True) * inv_b
        h1 = jnp.maximum(d1 * (g1_ref[...] * lax.rsqrt(var1 + BN_EPS)) + be1_ref[...],
                         0.0)

        # ---- fc2 + BN2 + ReLU (lane-dense padded base_node axis) ----
        z2 = jnp.dot(h1.astype(jnp.bfloat16), w2_ref[...],
                     preferred_element_type=jnp.float32)         # (B, base_pad) f32
        mu2 = jnp.sum(z2, axis=0, keepdims=True) * inv_b
        d2 = z2 - mu2
        var2 = jnp.sum(d2 * d2, axis=0, keepdims=True) * inv_b
        h2 = jnp.maximum(d2 * (g2_ref[...] * lax.rsqrt(var2 + BN_EPS)) + be2_ref[...],
                         0.0)

        # ---- fc3 (out_features = 1): VPU broadcast-mul + XLU lane reduce ----
        o_ref[...] = (jnp.sum(h2 * w3_ref[...], axis=-1, keepdims=True)
                      + b3_ref[...]).astype(o_ref.dtype)


# ----------------------------------------- wrapper -----------------------------------------
def mlp_forward(data, target, params, *, tk=None):
    """Forward pass. `target` is unused (matches the PyTorch module signature)."""
    del target
    B, snp_len = data.shape
    (w1, b1, g1, be1, w2, b2, g2, be2, w3, b3) = params
    del b1, b2  # Linear bias right before a batch-statistics BatchNorm cancels exactly.
    base_node = w2.shape[1]

    # Pad the base_node axis up to a lane-dense multiple of 128.  Padded fc3
    # weights are exactly 0, so padded features contribute nothing to the output.
    base_pad = max(LANE, ((base_node + LANE - 1) // LANE) * LANE)
    if base_pad != base_node:
        pad = base_pad - base_node
        w2 = jnp.pad(w2, ((0, 0), (0, pad)))
        g2 = jnp.pad(g2, ((0, 0), (0, pad)), constant_values=1.0)
        be2 = jnp.pad(be2, ((0, 0), (0, pad)))
        w3 = jnp.pad(w3, ((0, 0), (0, pad)))

    # Stream x as bf16 (what the MXU consumes anyway): halves x DMA bytes.
    x = data.astype(jnp.bfloat16)

    # K tile: full K if it fits, else the largest multiple-of-128 divisor <= 2048.
    # tk=2048 -> double-buffered (2048, 2048) bf16 w1 tiles ~= 16 MiB: safe on all chips.
    if tk is None:
        if snp_len <= 2048:
            tk = snp_len
        else:
            tk = 2048
            while tk >= 128 and (snp_len % tk != 0 or tk % 128 != 0):
                tk -= 128
    assert snp_len % tk == 0 and (tk == snp_len or tk % 128 == 0), "bad K tile"
    nk = snp_len // tk

    # VMEM budget sized from the actual tile footprint (+ headroom), capped at
    # 40 MiB so it stays well inside v7x's 64 MiB physical VMEM.
    in_bytes = (2 * B * tk * 2               # x, double-buffered bf16
                + 2 * tk * HIDDEN * 2        # w1, double-buffered bf16
                + 2 * 2 * HIDDEN * 4         # gamma1, beta1
                + 2 * HIDDEN * base_pad * 2  # w2 bf16
                + 2 * 3 * base_pad * 4       # gamma2, beta2, w3
                + 2 * 512)                   # b3 (padded)
    scratch_bytes = B * HIDDEN * 4
    vmem_limit = min(in_bytes + scratch_bytes + (8 << 20), 40 << 20)

    cost = pl.CostEstimate(
        flops=int(2 * B * snp_len * HIDDEN + 2 * B * HIDDEN * base_pad
                  + 12 * B * (HIDDEN + base_pad)),
        transcendentals=int(HIDDEN + base_pad),
        bytes_accessed=int(x.size * 2 + w1.size * w1.dtype.itemsize
                           + w2.size * w2.dtype.itemsize
                           + 2 * (HIDDEN + base_pad) * 4 + B * 4))

    bcast = lambda k: (0, 0)
    out = pl.pallas_call(
        _fused_mlp_kernel,
        out_shape=jax.ShapeDtypeStruct((B, 1), jnp.float32),
        grid_spec=pltpu.PrefetchScalarGridSpec(
            num_scalar_prefetch=0,
            grid=(nk,),                                        # K reduction only
            in_specs=[
                pl.BlockSpec((B, tk), lambda k: (0, k)),       # x  (bf16)
                pl.BlockSpec((tk, HIDDEN), lambda k: (k, 0)),  # w1 (bf16), full-width rows
                pl.BlockSpec((1, HIDDEN), bcast),              # gamma1
                pl.BlockSpec((1, HIDDEN), bcast),              # beta1
                pl.BlockSpec((HIDDEN, base_pad), bcast),       # w2 (bf16)
                pl.BlockSpec((1, base_pad), bcast),            # gamma2
                pl.BlockSpec((1, base_pad), bcast),            # beta2
                pl.BlockSpec((1, base_pad), bcast),            # w3 (row vector)
                pl.BlockSpec((1, 1), bcast),                   # b3
            ],
            out_specs=pl.BlockSpec((B, 1), lambda k: (0, 0)),
            scratch_shapes=[pltpu.VMEM((B, HIDDEN), jnp.float32)]),
        compiler_params=pltpu.CompilerParams(
            dimension_semantics=("arbitrary",),
            vmem_limit_bytes=int(vmem_limit)),
        cost_estimate=cost,
    )(x, w1, g1, be1, w2, g2, be2, w3, b3)
    return out


# ----------------------------------- params / reference ------------------------------------
def init_params(key, snp_len, base_node):
    """PyTorch-style init.  Linear weights stored transposed as (in, out);
    w1/w2 in bf16 (streamed weights), everything else f32."""
    def linear(key, fan_in, fan_out, wdtype):
        k_w, k_b = jax.random.split(key)
        bound = 1.0 / jnp.sqrt(float(fan_in))
        w = jax.random.uniform(k_w, (fan_in, fan_out), jnp.float32, -bound, bound)
        b = jax.random.uniform(k_b, (1, fan_out), jnp.float32, -bound, bound)
        return w.astype(wdtype), b

    k1, k2, k3 = jax.random.split(key, 3)
    w1, b1 = linear(k1, snp_len, HIDDEN, jnp.bfloat16)
    g1 = jnp.ones((1, HIDDEN), jnp.float32)
    be1 = jnp.zeros((1, HIDDEN), jnp.float32)

    w2, b2 = linear(k2, HIDDEN, base_node, jnp.bfloat16)
    g2 = jnp.ones((1, base_node), jnp.float32)
    be2 = jnp.zeros((1, base_node), jnp.float32)

    w3_t, b3 = linear(k3, base_node, 1, jnp.float32)
    w3 = w3_t.reshape(1, base_node)                       # row vector for VPU fc3
    return (w1, b1, g1, be1, w2, b2, g2, be2, w3, b3)


def reference_forward(data, params):
    """Plain-JAX reference mirroring the PyTorch module (biases included; they
    cancel through the batch-statistics BatchNorm)."""
    (w1, b1, g1, be1, w2, b2, g2, be2, w3, b3) = params

    def bn_relu(z, g, be):
        mu = jnp.mean(z, axis=0, keepdims=True)
        var = jnp.mean((z - mu) ** 2, axis=0, keepdims=True)
        return jnp.maximum((z - mu) * lax.rsqrt(var + BN_EPS) * g + be, 0.0)

    z1 = jnp.dot(data.astype(jnp.bfloat16), w1, preferred_element_type=jnp.float32) + b1
    h1 = bn_relu(z1, g1, be1).astype(jnp.bfloat16)
    z2 = jnp.dot(h1, w2, preferred_element_type=jnp.float32) + b2
    h2 = bn_relu(z2, g2, be2)
    return jnp.sum(h2 * w3, axis=-1, keepdims=True) + b3


if __name__ == "__main__":
    snp_len = 512
    base_node = 64
    batch = 8

    key = jax.random.PRNGKey(0)
    k_data, k_tgt, k_params = jax.random.split(key, 3)

    data = jax.random.normal(k_data, (batch, snp_len), jnp.float32)
    target = jax.random.normal(k_tgt, (batch, 1), jnp.float32)  # unused, matches signature
    params = init_params(k_params, snp_len, base_node)

    # tk=256 exercises the multi-step K reduction path of the fused kernel.
    out = mlp_forward(data, target, params, tk=256)
    out = jax.block_until_ready(out)

    ref = reference_forward(data, params)
    assert out.shape == (batch, 1)
    assert jnp.allclose(out, ref, atol=3e-3, rtol=3e-3), (out, ref)

    # Default tile selection (tk = snp_len -> single grid step) must also work.
    out2 = jax.block_until_ready(mlp_forward(data, target, params))
    assert jnp.allclose(out2, ref, atol=3e-3, rtol=3e-3), (out2, ref)

    print("KERNEL_OK")
</pallas_src>

<mosaic_0001>
module attributes {stable_mosaic.version = 11 : i64} {
  func.func @_fused_mlp_kernel(%arg0: i32, %arg1: memref<8x256xbf16, #tpu.memory_space<vmem>>, %arg2: memref<256x2048xbf16, #tpu.memory_space<vmem>>, %arg3: memref<1x2048xf32, #tpu.memory_space<vmem>>, %arg4: memref<1x2048xf32, #tpu.memory_space<vmem>>, %arg5: memref<2048x128xbf16, #tpu.memory_space<vmem>>, %arg6: memref<1x128xf32, #tpu.memory_space<vmem>>, %arg7: memref<1x128xf32, #tpu.memory_space<vmem>>, %arg8: memref<1x128xf32, #tpu.memory_space<vmem>>, %arg9: memref<1x1xf32, #tpu.memory_space<vmem>>, %arg10: memref<8x1xf32, #tpu.memory_space<vmem>>, %arg11: memref<8x2048xf32, #tpu.memory_space<vmem>>) attributes {dimension_semantics = [#tpu.dimension_semantics<arbitrary>], iteration_bounds = array<i64: 2>, scalar_prefetch = 0 : i64, scratch_operands = 1 : i64, tpu.core_type = #tpu.core_type<tc>, window_params = [{transform_indices = @transform_0, window_bounds = array<i64: 8, 256>}, {transform_indices = @transform_1, window_bounds = array<i64: 256, 2048>}, {pipeline_mode = #tpu.pipeline_mode<synchronous>, transform_indices = @transform_2, window_bounds = array<i64: 1, 2048>}, {pipeline_mode = #tpu.pipeline_mode<synchronous>, transform_indices = @transform_3, window_bounds = array<i64: 1, 2048>}, {pipeline_mode = #tpu.pipeline_mode<synchronous>, transform_indices = @transform_4, window_bounds = array<i64: 2048, 128>}, {pipeline_mode = #tpu.pipeline_mode<synchronous>, transform_indices = @transform_5, window_bounds = array<i64: 1, 128>}, {pipeline_mode = #tpu.pipeline_mode<synchronous>, transform_indices = @transform_6, window_bounds = array<i64: 1, 128>}, {pipeline_mode = #tpu.pipeline_mode<synchronous>, transform_indices = @transform_7, window_bounds = array<i64: 1, 128>}, {pipeline_mode = #tpu.pipeline_mode<synchronous>, transform_indices = @transform_8, window_bounds = array<i64: 1, 1>}, {pipeline_mode = #tpu.pipeline_mode<synchronous>, transform_indices = @transform_9, window_bounds = array<i64: 8, 1>}]} {
    %c0_i32 = arith.constant 0 : i32
    %0 = arith.cmpi eq, %arg0, %c0_i32 : i32
    %1 = arith.extui %0 : i1 to i32
    %c0_i32_0 = arith.constant 0 : i32
    %2 = arith.cmpi ne, %1, %c0_i32_0 : i32
    scf.if %2 {
      %cst_9 = arith.constant 0.000000e+00 : f32
      %12 = vector.broadcast %cst_9 : f32 to vector<8x2048xf32>
      %c0_10 = arith.constant 0 : index
      %c0_11 = arith.constant 0 : index
      %13 = vector.load %arg11[%c0_10, %c0_11] : memref<8x2048xf32, #tpu.memory_space<vmem>>, vector<8x2048xf32>
      tpu.vector_store %arg11[%c0_10, %c0_11], %12 {strides = array<i32>} : memref<8x2048xf32, #tpu.memory_space<vmem>>, vector<8x2048xf32>,
    } else {
    }
    %c0 = arith.constant 0 : index
    %c0_1 = arith.constant 0 : index
    %3 = vector.load %arg11[%c0, %c0_1] : memref<8x2048xf32, #tpu.memory_space<vmem>>, vector<8x2048xf32>
    %c0_2 = arith.constant 0 : index
    %c0_3 = arith.constant 0 : index
    %4 = vector.load %arg1[%c0_2, %c0_3] : memref<8x256xbf16, #tpu.memory_space<vmem>>, vector<8x256xbf16>
    %c0_4 = arith.constant 0 : index
    %c0_5 = arith.constant 0 : index
    %5 = vector.load %arg2[%c0_4, %c0_5] : memref<256x2048xbf16, #tpu.memory_space<vmem>>, vector<256x2048xbf16>
    %cst = arith.constant dense<0.000000e+00> : vector<8x2048xf32>
    %6 = tpu.matmul %4, %5, %cst {dimension_numbers = #tpu.dot_dimension_numbers<[1], [0], [0], [1], [0, 0, 1, 1], [], []>} : vector<8x256xbf16>, vector<256x2048xbf16>, vector<8x2048xf32> -> vector<8x2048xf32>
    %7 = arith.addf %3, %6 : vector<8x2048xf32>
    %c0_6 = arith.constant 0 : index
    %c0_7 = arith.constant 0 : index
    %8 = vector.load %arg11[%c0_6, %c0_7] : memref<8x2048xf32, #tpu.memory_space<vmem>>, vector<8x2048xf32>
    tpu.vector_store %arg11[%c0_6, %c0_7], %7 {strides = array<i32>} : memref<8x2048xf32, #tpu.memory_space<vmem>>, vector<8x2048xf32>,
    %c1_i32 = arith.constant 1 : i32
    %9 = arith.cmpi eq, %arg0, %c1_i32 : i32
    %10 = arith.extui %9 : i1 to i32
    %c0_i32_8 = arith.constant 0 : i32
    %11 = arith.cmpi ne, %10, %c0_i32_8 : i32
    scf.if %11 {
      %c0_9 = arith.constant 0 : index
      %c0_10 = arith.constant 0 : index
      %12 = vector.load %arg11[%c0_9, %c0_10] : memref<8x2048xf32, #tpu.memory_space<vmem>>, vector<8x2048xf32>
      %cst_11 = arith.constant dense<0.000000e+00> : vector<2048xf32>
      %13 = vector.multi_reduction <add>, %12, %cst_11 [0] : vector<8x2048xf32> to vector<2048xf32>
      %14 = vector.shape_cast %13 : vector<2048xf32> to vector<1x2048xf32>
      %cst_12 = arith.constant 1.250000e-01 : f32
      %15 = vector.broadcast %cst_12 : f32 to vector<1x2048xf32>
      %16 = arith.mulf %14, %15 : vector<1x2048xf32>
      %17 = vector.broadcast %16 : vector<1x2048xf32> to vector<8x2048xf32>
      %18 = arith.subf %12, %17 : vector<8x2048xf32>
      %19 = arith.mulf %18, %18 : vector<8x2048xf32>
      %cst_13 = arith.constant dense<0.000000e+00> : vector<2048xf32>
      %20 = vector.multi_reduction <add>, %19, %cst_13 [0] : vector<8x2048xf32> to vector<2048xf32>
      %21 = vector.shape_cast %20 : vector<2048xf32> to vector<1x2048xf32>
      %cst_14 = arith.constant 1.250000e-01 : f32
      %22 = vector.broadcast %cst_14 : f32 to vector<1x2048xf32>
      %23 = arith.mulf %21, %22 : vector<1x2048xf32>
      %c0_15 = arith.constant 0 : index
      %c0_16 = arith.constant 0 : index
      %24 = vector.load %arg3[%c0_15, %c0_16] : memref<1x2048xf32, #tpu.memory_space<vmem>>, vector<1x2048xf32>
      %cst_17 = arith.constant 9.99999974E-6 : f32
      %25 = vector.broadcast %cst_17 : f32 to vector<1x2048xf32>
      %26 = arith.addf %23, %25 : vector<1x2048xf32>
      %27 = math.rsqrt %26 : vector<1x2048xf32>
      %28 = arith.mulf %24, %27 : vector<1x2048xf32>
      %29 = vector.broadcast %28 : vector<1x2048xf32> to vector<8x2048xf32>
      %30 = arith.mulf %18, %29 : vector<8x2048xf32>
      %c0_18 = arith.constant 0 : index
      %c0_19 = arith.constant 0 : index
      %31 = vector.load %arg4[%c0_18, %c0_19] : memref<1x2048xf32, #tpu.memory_space<vmem>>, vector<1x2048xf32>
      %32 = vector.broadcast %31 : vector<1x2048xf32> to vector<8x2048xf32>
      %33 = arith.addf %30, %32 : vector<8x2048xf32>
      %cst_20 = arith.constant 0.000000e+00 : f32
      %34 = vector.broadcast %cst_20 : f32 to vector<8x2048xf32>
      %35 = arith.maximumf %33, %34 : vector<8x2048xf32>
      %36 = arith.truncf %35 : vector<8x2048xf32> to vector<8x2048xbf16>
      %c0_21 = arith.constant 0 : index
      %c0_22 = arith.constant 0 : index
      %37 = vector.load %arg5[%c0_21, %c0_22] : memref<2048x128xbf16, #tpu.memory_space<vmem>>, vector<2048x128xbf16>
      %cst_23 = arith.constant dense<0.000000e+00> : vector<8x128xf32>
      %38 = tpu.matmul %36, %37, %cst_23 {dimension_numbers = #tpu.dot_dimension_numbers<[1], [0], [0], [1], [0, 0, 1, 1], [], []>} : vector<8x2048xbf16>, vector<2048x128xbf16>, vector<8x128xf32> -> vector<8x128xf32>
      %cst_24 = arith.constant dense<0.000000e+00> : vector<128xf32>
      %39 = vector.multi_reduction <add>, %38, %cst_24 [0] : vector<8x128xf32> to vector<128xf32>
      %40 = vector.shape_cast %39 : vector<128xf32> to vector<1x128xf32>
      %cst_25 = arith.constant 1.250000e-01 : f32
      %41 = vector.broadcast %cst_25 : f32 to vector<1x128xf32>
      %42 = arith.mulf %40, %41 : vector<1x128xf32>
      %43 = vector.broadcast %42 : vector<1x128xf32> to vector<8x128xf32>
      %44 = arith.subf %38, %43 : vector<8x128xf32>
      %45 = arith.mulf %44, %44 : vector<8x128xf32>
      %cst_26 = arith.constant dense<0.000000e+00> : vector<128xf32>
      %46 = vector.multi_reduction <add>, %45, %cst_26 [0] : vector<8x128xf32> to vector<128xf32>
      %47 = vector.shape_cast %46 : vector<128xf32> to vector<1x128xf32>
      %cst_27 = arith.constant 1.250000e-01 : f32
      %48 = vector.broadcast %cst_27 : f32 to vector<1x128xf32>
      %49 = arith.mulf %47, %48 : vector<1x128xf32>
      %c0_28 = arith.constant 0 : index
      %c0_29 = arith.constant 0 : index
      %50 = vector.load %arg6[%c0_28, %c0_29] : memref<1x128xf32, #tpu.memory_space<vmem>>, vector<1x128xf32>
      %cst_30 = arith.constant 9.99999974E-6 : f32
      %51 = vector.broadcast %cst_30 : f32 to vector<1x128xf32>
      %52 = arith.addf %49, %51 : vector<1x128xf32>
      %53 = math.rsqrt %52 : vector<1x128xf32>
      %54 = arith.mulf %50, %53 : vector<1x128xf32>
      %55 = vector.broadcast %54 : vector<1x128xf32> to vector<8x128xf32>
      %56 = arith.mulf %44, %55 : vector<8x128xf32>
      %c0_31 = arith.constant 0 : index
      %c0_32 = arith.constant 0 : index
      %57 = vector.load %arg7[%c0_31, %c0_32] : memref<1x128xf32, #tpu.memory_space<vmem>>, vector<1x128xf32>
      %58 = vector.broadcast %57 : vector<1x128xf32> to vector<8x128xf32>
      %59 = arith.addf %56, %58 : vector<8x128xf32>
      %cst_33 = arith.constant 0.000000e+00 : f32
      %60 = vector.broadcast %cst_33 : f32 to vector<8x128xf32>
      %61 = arith.maximumf %59, %60 : vector<8x128xf32>
      %c0_34 = arith.constant 0 : index
      %c0_35 = arith.constant 0 : index
      %62 = vector.load %arg8[%c0_34, %c0_35] : memref<1x128xf32, #tpu.memory_space<vmem>>, vector<1x128xf32>
      %63 = vector.broadcast %62 : vector<1x128xf32> to vector<8x128xf32>
      %64 = arith.mulf %61, %63 : vector<8x128xf32>
      %cst_36 = arith.constant dense<0.000000e+00> : vector<8xf32>
      %65 = vector.multi_reduction <add>, %64, %cst_36 [1] : vector<8x128xf32> to vector<8xf32>
      %66 = vector.shape_cast %65 : vector<8xf32> to vector<8x1xf32>
      %c0_37 = arith.constant 0 : index
      %c0_38 = arith.constant 0 : index
      %67 = vector.load %arg9[%c0_37, %c0_38] : memref<1x1xf32, #tpu.memory_space<vmem>>, vector<1x1xf32>
      %68 = vector.broadcast %67 : vector<1x1xf32> to vector<8x1xf32>
      %69 = arith.addf %66, %68 : vector<8x1xf32>
      %c0_39 = arith.constant 0 : index
      %c0_40 = arith.constant 0 : index
      %70 = vector.load %arg10[%c0_39, %c0_40] : memref<8x1xf32, #tpu.memory_space<vmem>>, vector<8x1xf32>
      tpu.vector_store %arg10[%c0_39, %c0_40], %69 {strides = array<i32>} : memref<8x1xf32, #tpu.memory_space<vmem>>, vector<8x1xf32>,
    } else {
    }
    return
  }
  func.func @transform_0(%arg0: i32) -> (i32, i32) {
    %c0_i32 = arith.constant 0 : i32
    %c0_i32_0 = arith.constant 0 : i32
    return %c0_i32, %arg0 : i32, i32
  }
  func.func @transform_1(%arg0: i32) -> (i32, i32) {
    %c0_i32 = arith.constant 0 : i32
    %c0_i32_0 = arith.constant 0 : i32
    return %arg0, %c0_i32 : i32, i32
  }
  func.func @transform_2(%arg0: i32) -> (i32, i32) {
    %c0_i32 = arith.constant 0 : i32
    %c0_i32_0 = arith.constant 0 : i32
    %c0_i32_1 = arith.constant 0 : i32
    return %c0_i32, %c0_i32_0 : i32, i32
  }
  func.func @transform_3(%arg0: i32) -> (i32, i32) {
    %c0_i32 = arith.constant 0 : i32
    %c0_i32_0 = arith.constant 0 : i32
    %c0_i32_1 = arith.constant 0 : i32
    return %c0_i32, %c0_i32_0 : i32, i32
  }
  func.func @transform_4(%arg0: i32) -> (i32, i32) {
    %c0_i32 = arith.constant 0 : i32
    %c0_i32_0 = arith.constant 0 : i32
    %c0_i32_1 = arith.constant 0 : i32
    return %c0_i32, %c0_i32_0 : i32, i32
  }
  func.func @transform_5(%arg0: i32) -> (i32, i32) {
    %c0_i32 = arith.constant 0 : i32
    %c0_i32_0 = arith.constant 0 : i32
    %c0_i32_1 = arith.constant 0 : i32
    return %c0_i32, %c0_i32_0 : i32, i32
  }
  func.func @transform_6(%arg0: i32) -> (i32, i32) {
    %c0_i32 = arith.constant 0 : i32
    %c0_i32_0 = arith.constant 0 : i32
    %c0_i32_1 = arith.constant 0 : i32
    return %c0_i32, %c0_i32_0 : i32, i32
  }
  func.func @transform_7(%arg0: i32) -> (i32, i32) {
    %c0_i32 = arith.constant 0 : i32
    %c0_i32_0 = arith.constant 0 : i32
    %c0_i32_1 = arith.constant 0 : i32
    return %c0_i32, %c0_i32_0 : i32, i32
  }
  func.func @transform_8(%arg0: i32) -> (i32, i32) {
    %c0_i32 = arith.constant 0 : i32
    %c0_i32_0 = arith.constant 0 : i32
    %c0_i32_1 = arith.constant 0 : i32
    return %c0_i32, %c0_i32_0 : i32, i32
  }
  func.func @transform_9(%arg0: i32) -> (i32, i32) {
    %c0_i32 = arith.constant 0 : i32
    %c0_i32_0 = arith.constant 0 : i32
    %c0_i32_1 = arith.constant 0 : i32
    return %c0_i32, %c0_i32_0 : i32, i32
  }
}

</mosaic_0001>

<bundles_post_ra>
// kernel: tpu_custom_call.1
= control target key start
LH: loop header
LB: loop body
LE: loop exit
PB: predicated region body
PF: predicated region fallthrough
CT: control target
= control target key end

     0   :  { %s8268_s0 = inlined_call_operand.hbm [shape: bf16[8,512], index: 0, kind: input, shape index: {}]   ;;  %s8269_s1 = inlined_call_operand.hbm [shape: bf16[512,2048], index: 1, kind: input, shape index: {}]   ;;  %s8270_s2 = inlined_call_operand.hbm [shape: f32[1,2048], index: 2, kind: input, shape index: {}]   ;;  %s8271_s3 = inlined_call_operand.hbm [shape: f32[1,2048], index: 3, kind: input, shape index: {}]   ;;  %s8272_s4 = inlined_call_operand.hbm [shape: bf16[2048,128], index: 4, kind: input, shape index: {}]   ;;  %s8273_s5 = inlined_call_operand.hbm [shape: f32[1,128], index: 5, kind: input, shape index: {}]   ;;  %s8274_s6 = inlined_call_operand.hbm [shape: f32[1,128], index: 6, kind: input, shape index: {}]   ;;  %s8275_s7 = inlined_call_operand.hbm [shape: f32[1,128], index: 7, kind: input, shape index: {}]   ;;  %s8276_s8 = inlined_call_operand.<no memory space> [shape: f32[1,1], index: 8, kind: input, shape index: {}]   ;;  %s8277_s9 = inlined_call_operand.vmem [shape: f32[8,1], index: 9, kind: output, shape index: {}]  }
   0x1   :  { %8279 = sst [smem:[#allocation23_spill]] %s8270_s2  ;;  %v14_v0 = vstv %s8276_s8 }
   0x2   :  { %8280 = sst [smem:[#allocation24_spill]] %s8271_s3  ;;  %15 = vst [vmem:[#allocation3] sm:$0x1] %v14_v0 }
   0x3   :  { %8281 = sst [smem:[#allocation25_spill]] %s8272_s4 }
   0x4   :  { %16 = vsyncpa [#allocation5], 0 }
   0x5   :  { %18 = vsyncpa [#allocation5 + $0x1], 0 }
   0x6   :  { %19 = vsyncpa [#allocation7], 0 }
   0x7   :  { %21 = vsyncpa [#allocation7 + $0x1], 0 }
   0x8   :  { %22 = vsyncpa [#allocation10], 0 }
   0x9   :  { %23 = vsyncpa [#allocation13], 0 }
   0xa   :  { %24 = vsyncpa [#allocation16], 0  ;;  %s7006_s11 = smov 0   ;;  %s7008_s12 = smov 0  }
   0xb   :  { %s7010_s13 = smov 0   ;;  %s7012_s14 = smov 0  }
   0xc LB: > { %s8282_s2 = sld [smem:[#allocation23_spill]]  ;;  %s7030_s17 = sadd.s32 4294967295, %s6941_s14   ;;  %s6941_s14 = sphi %s7012_s14, %s8323_s14   ;;  %s6937_s13 = sphi %s7010_s13, %s8322_s13   ;;  %s6933_s12 = sphi %s7008_s12, %s8321_s12   ;;  %s6929_s11 = sphi %s7006_s11, %s8320_s11  }
   0xd   : > { %p4550_p0 = scmp.ge.s32.totalorder %s6941_s14, 1  ;;  %p51_p1 = scmp.eq.s32.totalorder %s7030_s17, 0 }
   0xe   : > { %p255_p2 = scmp.lt.s32.totalorder %s6941_s14, 3  ;;  %p4551_p3 = scmp.ne.s32.totalorder %s7030_s17, 0 }
   0xf   : > { %s6943_s19 = smov [#allocation8]   ;;  %s8284_s3 = sld [smem:[#allocation24_spill]] }
  0x10   : > { %p7036_p4 = pnand %p4550_p0, %p255_p2  ;;  %s269_s20 = sshll.u32 %s6943_s19, 4  ;;  %s270_s20 = int_to_ptr.vmem [resolvable:$true] %s269_s20 }
  0x11   : > { %s6944_s25 = smov [#allocation9]   ;;  %s305_s29 = sshll.u32 %s8273_s5, 4  ;;  %s306_s29 = int_to_ptr.hbm [resolvable:$true] %s305_s29 }
  0x12   : > { %s267_s16 = sshll.u32 %s8282_s2, 4  ;;  %p6529_p5 = pneg %p7036_p4  ;;  %s268_s16 = int_to_ptr.hbm [resolvable:$true] %s267_s16 }
  0x13   : > { %s281_s26 = sshll.u32 %s6944_s25, 4  ;;  %s8286_s4 = sld [smem:[#allocation25_spill]]  ;;  %s282_s26 = int_to_ptr.vmem [resolvable:$true] %s281_s26 }
  0x14   : > { %p7047_p6 = pnand %p6529_p5, %p51_p1  ;;  %s6945_s15 = smov [#allocation12]  }
  0x15   : > { %s279_s23 = sshll.u32 %s8284_s3, 4  ;;  %s307_s19 = sshll.u32 %s6945_s15, 4  ;;  %s280_s23 = int_to_ptr.hbm [resolvable:$true] %s279_s23  ;;  %s308_s19 = int_to_ptr.vmem [resolvable:$true] %s307_s19 }
  0x16   : > { %6532 = dma.hbm_to_vmem [thread:$0]  (!%p7047_p6), %s268_s16, 256, %s270_s20, [#allocation7]  }
  0x17   : > { %6535 = dma.hbm_to_vmem [thread:$0]  (!%p7047_p6), %s280_s23, 256, %s282_s26, [#allocation10]  }
  0x18   : > { %6541 = dma.hbm_to_vmem [thread:$0]  (!%p7047_p6), %s306_s29, 16, %s308_s19, [#allocation13]  }
  0x19   : > { %s290_s8 = sshll.u32 %s8286_s4, 4  ;;  %s6946_s21 = smov [#allocation11]   ;;  %s291_s8 = int_to_ptr.hbm [resolvable:$true] %s290_s8 }
  0x1a   : > { %s292_s22 = sshll.u32 %s6946_s21, 4  ;;  %s8278_s25 = smov 64   ;;  %s293_s22 = int_to_ptr.vmem [resolvable:$true] %s292_s22 }
  0x1b   : > { %s6948_s16 = smov 4   ;;  %s317_s26 = sshll.u32 %s8274_s6, 4  ;;  %s318_s26 = int_to_ptr.hbm [resolvable:$true] %s317_s26 }
  0x1c   : > { %6538 = dma.hbm_to_vmem [thread:$0]  (!%p7047_p6), %s291_s8, 16384, %s293_s22, [#allocation10], %s8278_s25, %s8278_s25, %s6948_s16  }
  0x1d   : > { %s6949_s27 = smov [#allocation14]   ;;  %s329_s10 = sshll.u32 %s8275_s7, 4  ;;  %s330_s10 = int_to_ptr.hbm [resolvable:$true] %s329_s10 }
  0x1e   : > { %s319_s28 = sshll.u32 %s6949_s27, 4  ;;  %s6950_s8 = smov [#allocation15]   ;;  %s320_s28 = int_to_ptr.vmem [resolvable:$true] %s319_s28 }
  0x1f   : > { %6544 = dma.hbm_to_vmem [thread:$0]  (!%p7047_p6), %s318_s26, 16, %s320_s28, [#allocation13]  }
  0x20   : > { %s331_s15 = sshll.u32 %s6950_s8, 4  ;;  %s7078_s19 = sadd.s32 1, %s6941_s14   ;;  %s332_s15 = int_to_ptr.vmem [resolvable:$true] %s331_s15 }
  0x21   : > { %6547 = dma.hbm_to_vmem [thread:$0]  (!%p7047_p6), %s330_s10, 16, %s332_s15, [#allocation16]  }
  0x22   : > { %s37_s21 = sadd.s32 1, %s6937_s13  ;;  %s34_s22 = ssub.s32 %s6941_s14, %s7078_s19 }
  0x23   : > { %p44_p7 = scmp.ne.s32.totalorder %s6937_s13, %s6933_s12  ;;  %p35_p8 = scmp.eq.s32.totalorder %s34_s22, 0 }
  0x24   : > { %p45_p9 = scmp.eq.s32.totalorder %s6941_s14, 0  ;;  %p50_p10 = scmp.ne.s32.totalorder %s6933_s12, %s6929_s11 }
  0x25   : > { %p6561_p11 = scmp.lt.s32.totalorder %s6941_s14, 2  ;;  %s7099_s24 = sand.u32 1, %s6937_s13  }
  0x26   : > { %s7090_s16 = scalar_select %p35_p8, %s6937_s13, %s37_s21  }
  0x27   : > { %p46_p12 = por %p45_p9, %p44_p7  ;;  %p7094_p13 = por %p51_p1, %p50_p10 }
  0x28   : > { %s6114_s23 = sshll.u32 %s6941_s14, 3  ;;  %s4558_s26 = sshll.u32 %s7099_s24, 3 }
  0x29   : > { %s354_s11 = scalar_lea.hbm %s8268_s0, %s6114_s23  ;;  %s349_s30 = scalar_lea.vmem [#allocation4], %s4558_s26 }
  0x2a   : > { %s356_s29 = sshll.u32 %s354_s11, 4  ;;  %s358_s10 = sshll.u32 %s349_s30, 4  ;;  %s357_s29 = int_to_ptr.hbm [resolvable:$true] %s356_s29  ;;  %s359_s10 = int_to_ptr.vmem [resolvable:$true] %s358_s10 }
  0x2b   : > { %p7108_p0 = pnand %p6561_p11, %p46_p12  ;;  %s4561_s15 = sshll.u32 %s7099_s24, 11 }
  0x2c   : > { %s365_s21 = sand.u32 1, %s6941_s14   ;;  %s369_s22 = scalar_lea.vmem [#allocation6], %s4561_s15 }
  0x2d   : > { %s378_s25 = sshll.u32 %s369_s22, 4  ;;  %s346_s2 = scalar_lea.sflag [#allocation5], %s7099_s24  ;;  %s379_s25 = int_to_ptr.vmem [resolvable:$true] %s378_s25 }
  0x2e   : > { %s6827_s3 = sshra.s32 %s357_s29, 4  ;;  %p6831_p5 = pneg %p7108_p0  ;;  %s6828_s3 = int_to_ptr.hbm [resolvable:$true] %s6827_s3 }
  0x2f   : > { %s6829_s23 = scalar_lea.hbm %s6828_s3, 8  ;;  %s6834_s28 = scalar_lea.hbm %s8268_s0, 16 }
  0x30   : > { %p6830_p2 = scmp.ne.s32.totalorder %s6828_s3, %s6829_s23  ;;  %p6835_p8 = scmp.lt.s32.totalorder %s6828_s3, %s8268_s0 }
  0x31   : > { %p6836_p9 = scmp.lt.s32.totalorder %s6834_s28, %s6829_s23 }
  0x32   : > { %p6832_p6 = pnand %p6831_p5, %p6830_p2 }
  0x33   : > { %p6837_p10 = por %p6836_p9, %p6835_p8 }
  0x34   : > { %p6833_p7 = pneg %p6832_p6 }
  0x36   : > { %p6838_p11 = pnand %p6837_p10, %p6833_p7 }
  0x38   : > { %6841 = shalt.err (!%p6838_p11)
}
  0x39   : > { %6551 = dma.hbm_to_vmem [thread:$0]  (!%p7108_p0), %s357_s29, 128, %s359_s10, %s346_s2  }
  0x3a   : > { %s6116_s24 = sshll.u32 %s6941_s14, 11  ;;  %s366_s4 = scalar_lea.sflag [#allocation7], %s365_s21 }
  0x3b   : > { %s375_s26 = scalar_lea.hbm %s8269_s1, %s6116_s24  ;;  %s6864_s2 = scalar_lea.hbm %s8269_s1, 4096 }
  0x3c   : > { %s376_s27 = sshll.u32 %s375_s26, 4  ;;  %s377_s27 = int_to_ptr.hbm [resolvable:$true] %s376_s27 }
  0x3d   : > { %s6857_s11 = sshra.s32 %s377_s27, 4  ;;  %s6858_s11 = int_to_ptr.hbm [resolvable:$true] %s6857_s11 }
  0x3e   : > { %s6859_s3 = scalar_lea.hbm %s6858_s11, 2048  ;;  %p6865_p7 = scmp.lt.s32.totalorder %s6858_s11, %s8269_s1 }
  0x3f   : > { %p6860_p12 = scmp.ne.s32.totalorder %s6858_s11, %s6859_s3  ;;  %p6866_p8 = scmp.lt.s32.totalorder %s6864_s2, %s6859_s3 }
  0x41   : > { %p6862_p2 = pnand %p6860_p12, %p6831_p5  ;;  %p6867_p9 = por %p6866_p8, %p6865_p7 }
  0x43   : > { %p6863_p6 = pneg %p6862_p2 }
  0x45   : > { %p6868_p10 = pnand %p6867_p9, %p6863_p6 }
  0x47   : > { %6871 = shalt.err (!%p6868_p10)
}
  0x48   : > { %s6951_s10 = smov 1024   ;;  %s8289_s21 = smov 64  }
  0x49   : > { %6554 = dma.hbm_to_vmem [thread:$0]  (!%p7108_p0), %s377_s27, 32768, %s379_s25, %s366_s4, %s6951_s10, %s6951_s10, %s8289_s21  }
  0x4a   : > { %390 = sbr.rel (%p7036_p4) target bundleno = 1036 (0x40c), region = 56  ;;  %s392_s30 = sand.u32 (!%p7036_p4), 1, %s6933_s12  }
  0x4b   : > { %s4566_s24 = sshll.u32 (!%p7036_p4), %s392_s30, 3  ;;  %s393_s15 = scalar_lea.sflag (!%p7036_p4), [#allocation5], %s392_s30 }
  0x4c   : > { %s7147_s22 = scalar_lea.vmem (!%p7036_p4), [#allocation4], %s4566_s24 }
  0x4f   : > { %6904 = dma.done.wait (%p7094_p13), %s393_s15, 128  }
  0x50   : > { %6906 = vsyncadd (%p7094_p13), %s393_s15, 4294967168  ;;  %s402_s8 = sand.u32 1, %s7030_s17   ;;  %s4567_s26 = sshll.u32 %s392_s30, 11 }
  0x51   : > { %s403_s4 = scalar_lea.sflag [#allocation7], %s402_s8  ;;  %s7154_s25 = scalar_lea.vmem [#allocation6], %s4567_s26 }
  0x52   : > { %6908 = dma.done.wait (%p7094_p13), %s403_s4, 32768  }
  0x53   : > { %6910 = vsyncadd (%p7094_p13), %s403_s4, 4294934528 }
  0x54   : > { %6912 = dma.done.wait (%p51_p1), [#allocation7], 256  }
  0x55   : > { %6914 = vsyncadd (%p51_p1), [#allocation7], 4294967040 }
  0x56   : > { %6916 = dma.done.wait (%p51_p1), [#allocation10], 16640  }
  0x57   : > { %6918 = vsyncadd (%p51_p1), [#allocation10], 4294950656 }
  0x58   : > { %6920 = dma.done.wait (%p51_p1), [#allocation13], 32  }
  0x59   : > { %6922 = vsyncadd (%p51_p1), [#allocation13], 4294967264 }
  0x5a   : > { %6924 = dma.done.wait (%p51_p1), [#allocation16], 16  }
  0x5b   : > { %6926 = vsyncadd (%p51_p1), [#allocation16], 4294967280  ;;  %477 = sbr.rel (%p4551_p3) target bundleno = 113 (0x71), region = 92 }
  0x60   : > { %v6952_v1 = vmov 0.0  }
  0x61   : > { %478 = vst [vmem:[#allocation2 + $0x30] sm:$0xff] %v6952_v1 }
  0x62   : > { %479 = vst [vmem:[#allocation2] sm:$0xff] %v6952_v1 }
  0x63   : > { %480 = vst [vmem:[#allocation2 + $0x58] sm:$0xff] %v6952_v1 }
  0x64   : > { %481 = vst [vmem:[#allocation2 + $0x18] sm:$0xff] %v6952_v1 }
  0x65   : > { %482 = vst [vmem:[#allocation2 + $0x50] sm:$0xff] %v6952_v1 }
  0x66   : > { %483 = vst [vmem:[#allocation2 + $0x68] sm:$0xff] %v6952_v1 }
  0x67   : > { %484 = vst [vmem:[#allocation2 + $0x8] sm:$0xff] %v6952_v1 }
  0x68   : > { %485 = vst [vmem:[#allocation2 + $0x48] sm:$0xff] %v6952_v1 }
  0x69   : > { %486 = vst [vmem:[#allocation2 + $0x40] sm:$0xff] %v6952_v1 }
  0x6a   : > { %487 = vst [vmem:[#allocation2 + $0x20] sm:$0xff] %v6952_v1 }
  0x6b   : > { %488 = vst [vmem:[#allocation2 + $0x10] sm:$0xff] %v6952_v1 }
  0x6c   : > { %489 = vst [vmem:[#allocation2 + $0x38] sm:$0xff] %v6952_v1 }
  0x6d   : > { %490 = vst [vmem:[#allocation2 + $0x60] sm:$0xff] %v6952_v1 }
  0x6e   : > { %491 = vst [vmem:[#allocation2 + $0x70] sm:$0xff] %v6952_v1 }
  0x6f   : > { %492 = vst [vmem:[#allocation2 + $0x78] sm:$0xff] %v6952_v1 }
  0x70   : > { %493 = vst [vmem:[#allocation2 + $0x28] sm:$0xff] %v6952_v1 }
  0x71 PF: > { %v5025_v2 = vld [vmem:[%s7154_s25 + $0x380] sm:$0xf]  ;;  %v6229_v7 = vld [vmem:[%s7154_s25 + $0x384] sm:$0xf]  ;;  %p5599_p1 = scmp.ne.s32.totalorder %s7030_s17, 1 }
  0x72   : > { %v6237_v3 = vld [vmem:[%s7154_s25 + $0x3bc] sm:$0xf0]  ;;  %v5027_v8 = vld [vmem:[%s7154_s25 + $0x3c0] sm:$0xf0] }
  0x73   : > { %v5537_v4 = vld [vmem:[%s7154_s25 + $0x780] sm:$0xf]  ;;  %v5026_v5 = vor.u32 %v6237_v3, %v5025_v2  ;;  %v5030_v10 = vor.u32 %v6229_v7, %v5027_v8  ;;  %v6357_v11 = vld [vmem:[%s7154_s25 + $0x784] sm:$0xf] }
  0x74   : > { %v6365_v6 = vld [vmem:[%s7154_s25 + $0x7bc] sm:$0xf0]  ;;  %v5539_v12 = vld [vmem:[%s7154_s25 + $0x7c0] sm:$0xf0] }
  0x75   : > { %v5538_v9 = vor.u32 %v6365_v6, %v5537_v4  ;;  %v4961_v13 = vld [vmem:[%s7154_s25 + $0x300] sm:$0xf]  ;;  %2054 = vmatpush.bf16.msra.mxu0 %v5026_v5  ;;  %v5542_v14 = vor.u32 %v6357_v11, %v5539_v12  ;;  %2080 = vmatpush.bf16.msra.mxu2 %v5030_v10  ;;  %v6213_v20 = vld [vmem:[%s7154_s25 + $0x304] sm:$0xf] }
  0x76   : > { %v6221_v15 = vld [vmem:[%s7154_s25 + $0x33c] sm:$0xf0]  ;;  %v4963_v21 = vld [vmem:[%s7154_s25 + $0x340] sm:$0xf0] }
  0x77   : > { %v5473_v16 = vld [vmem:[%s7154_s25 + $0x700] sm:$0xf]  ;;  %2067 = vmatpush.bf16.msra.mxu1 %v5538_v9  ;;  %v4962_v18 = vor.u32 %v6221_v15, %v4961_v13  ;;  %v6341_v22 = vld [vmem:[%s7154_s25 + $0x704] sm:$0xf]  ;;  %2093 = vmatpush.bf16.msra.mxu3 %v5542_v14  ;;  %v4966_v23 = vor.u32 %v6213_v20, %v4963_v21 }
  0x78   : > { %v6349_v17 = vld [vmem:[%s7154_s25 + $0x73c] sm:$0xf0]  ;;  %v5475_v24 = vld [vmem:[%s7154_s25 + $0x740] sm:$0xf0] }
  0x79   : > { %v5474_v19 = vor.u32 %v6349_v17, %v5473_v16  ;;  %v4897_v25 = vld [vmem:[%s7154_s25 + $0x280] sm:$0xf]  ;;  %v5478_v27 = vor.u32 %v6341_v22, %v5475_v24  ;;  %v6197_v30 = vld [vmem:[%s7154_s25 + $0x284] sm:$0xf]  ;;  %2055 = vmatpush.bf16.msra.mxu0 %v4962_v18  ;;  %2081 = vmatpush.bf16.msra.mxu2 %v4966_v23 }
  0x7a   : > { %v6205_v26 = vld [vmem:[%s7154_s25 + $0x2bc] sm:$0xf0]  ;;  %v4899_v32 = vld [vmem:[%s7154_s25 + $0x2c0] sm:$0xf0] }
  0x7b   : > { %v5409_v28 = vld [vmem:[%s7154_s25 + $0x680] sm:$0xf]  ;;  %v4898_v31 = vor.u32 %v6205_v26, %v4897_v25  ;;  %v6325_v33 = vld [vmem:[%s7154_s25 + $0x684] sm:$0xf]  ;;  %2068 = vmatpush.bf16.msra.mxu1 %v5474_v19  ;;  %v4902_v36 = vor.u32 %v6197_v30, %v4899_v32  ;;  %2094 = vmatpush.bf16.msra.mxu3 %v5478_v27  ;;  %v5033_v30 = vld [vmem:[%s7154_s25 + $0x388] sm:$0xf] }
  0x7c   : > { %v6333_v29 = vld [vmem:[%s7154_s25 + $0x6bc] sm:$0xf0]  ;;  %v5411_v34 = vld [vmem:[%s7154_s25 + $0x6c0] sm:$0xf0]  ;;  %v5545_v32 = vld [vmem:[%s7154_s25 + $0x788] sm:$0xf] }
  0x7d   : > { %v5410_v35 = vor.u32 %v6333_v29, %v5409_v28  ;;  %v4833_v37 = vld [vmem:[%s7154_s25 + $0x200] sm:$0xf]  ;;  %v5414_v40 = vor.u32 %v6325_v33, %v5411_v34  ;;  %v6181_v42 = vld [vmem:[%s7154_s25 + $0x204] sm:$0xf]  ;;  %2056 = vmatpush.bf16.msra.mxu0 %v4898_v31  ;;  %2082 = vmatpush.bf16.msra.mxu2 %v4902_v36  ;;  %v6238_v31 = vld [vmem:[%s7154_s25 + $0x3c4] sm:$0xf0] }
  0x7e   : > { %v6189_v38 = vld [vmem:[%s7154_s25 + $0x23c] sm:$0xf0]  ;;  %v4835_v43 = vld [vmem:[%s7154_s25 + $0x240] sm:$0xf0]  ;;  %v6366_v34 = vld [vmem:[%s7154_s25 + $0x7c4] sm:$0xf0] }
  0x7f   : > { %v5345_v39 = vld [vmem:[%s7154_s25 + $0x600] sm:$0xf]  ;;  %v6309_v44 = vld [vmem:[%s7154_s25 + $0x604] sm:$0xf]  ;;  %v4834_v46 = vor.u32 %v6189_v38, %v4833_v37  ;;  %2069 = vmatpush.bf16.msra.mxu1 %v5410_v35  ;;  %v4838_v48 = vor.u32 %v6181_v42, %v4835_v43  ;;  %2095 = vmatpush.bf16.msra.mxu3 %v5414_v40  ;;  %v6230_v35 = vld [vmem:[%s7154_s25 + $0x38c] sm:$0xf]  ;;  %v5034_v42 = vor.u32 %v6238_v31, %v5033_v30 }
  0x80   : > { %v6317_v41 = vld [vmem:[%s7154_s25 + $0x63c] sm:$0xf0]  ;;  %v5347_v45 = vld [vmem:[%s7154_s25 + $0x640] sm:$0xf0]  ;;  %v5035_v36 = vld [vmem:[%s7154_s25 + $0x3c8] sm:$0xf0]  ;;  %v5546_v43 = vor.u32 %v6366_v34, %v5545_v32 }
  0x81   : > { %v5346_v47 = vor.u32 %v6317_v41, %v5345_v39  ;;  %v4769_v49 = vld [vmem:[%s7154_s25 + $0x180] sm:$0xf]  ;;  %v5350_v52 = vor.u32 %v6309_v44, %v5347_v45  ;;  %v6165_v54 = vld [vmem:[%s7154_s25 + $0x184] sm:$0xf]  ;;  %2057 = vmatpush.bf16.msra.mxu0 %v4834_v46  ;;  %2083 = vmatpush.bf16.msra.mxu2 %v4838_v48  ;;  %v6358_v39 = vld [vmem:[%s7154_s25 + $0x78c] sm:$0xf]  ;;  %v5038_v44 = vor.u32 %v6230_v35, %v5035_v36 }
  0x82   : > { %v6173_v50 = vld [vmem:[%s7154_s25 + $0x1bc] sm:$0xf0]  ;;  %v4771_v55 = vld [vmem:[%s7154_s25 + $0x1c0] sm:$0xf0]  ;;  %v5547_v40 = vld [vmem:[%s7154_s25 + $0x7c8] sm:$0xf0] }
  0x83   : > { %v5281_v51 = vld [vmem:[%s7154_s25 + $0x580] sm:$0xf]  ;;  %v6293_v56 = vld [vmem:[%s7154_s25 + $0x584] sm:$0xf]  ;;  %v4770_v58 = vor.u32 %v6173_v50, %v4769_v49  ;;  %2070 = vmatpush.bf16.msra.mxu1 %v5346_v47  ;;  %v4774_v60 = vor.u32 %v6165_v54, %v4771_v55  ;;  %2096 = vmatpush.bf16.msra.mxu3 %v5350_v52  ;;  %v4969_v45 = vld [vmem:[%s7154_s25 + $0x308] sm:$0xf]  ;;  %v5550_v48 = vor.u32 %v6358_v39, %v5547_v40 }
  0x84   : > { %v6301_v53 = vld [vmem:[%s7154_s25 + $0x5bc] sm:$0xf0]  ;;  %v5283_v57 = vld [vmem:[%s7154_s25 + $0x5c0] sm:$0xf0]  ;;  %v6222_v46 = vld [vmem:[%s7154_s25 + $0x344] sm:$0xf0] }
  0x85   : > { %v5282_v59 = vor.u32 %v6301_v53, %v5281_v51  ;;  %v4705_v61 = vld [vmem:[%s7154_s25 + $0x100] sm:$0xf]  ;;  %v5286_v0 = vor.u32 %v6293_v56, %v5283_v57  ;;  %v6149_v2 = vld [vmem:[%s7154_s25 + $0x104] sm:$0xf]  ;;  %2058 = vmatpush.bf16.msra.mxu0 %v4770_v58  ;;  %2084 = vmatpush.bf16.msra.mxu2 %v4774_v60  ;;  %v5481_v47 = vld [vmem:[%s7154_s25 + $0x708] sm:$0xf]  ;;  %v4970_v54 = vor.u32 %v6222_v46, %v4969_v45 }
  0x86   : > { %v6157_v62 = vld [vmem:[%s7154_s25 + $0x13c] sm:$0xf0]  ;;  %v4707_v3 = vld [vmem:[%s7154_s25 + $0x140] sm:$0xf0]  ;;  %v6350_v49 = vld [vmem:[%s7154_s25 + $0x744] sm:$0xf0] }
  0x87   : > { %v5217_v63 = vld [vmem:[%s7154_s25 + $0x500] sm:$0xf]  ;;  %v6277_v4 = vld [vmem:[%s7154_s25 + $0x504] sm:$0xf]  ;;  %v4706_v6 = vor.u32 %v6157_v62, %v4705_v61  ;;  %2071 = vmatpush.bf16.msra.mxu1 %v5282_v59  ;;  %v4710_v8 = vor.u32 %v6149_v2, %v4707_v3  ;;  %2097 = vmatpush.bf16.msra.mxu3 %v5286_v0  ;;  %v6214_v50 = vld [vmem:[%s7154_s25 + $0x30c] sm:$0xf]  ;;  %v5482_v55 = vor.u32 %v6350_v49, %v5481_v47 }
  0x88   : > { %v6285_v1 = vld [vmem:[%s7154_s25 + $0x53c] sm:$0xf0]  ;;  %v5219_v5 = vld [vmem:[%s7154_s25 + $0x540] sm:$0xf0]  ;;  %v4971_v51 = vld [vmem:[%s7154_s25 + $0x348] sm:$0xf0] }
  0x89   : > { %v5218_v7 = vor.u32 %v6285_v1, %v5217_v63  ;;  %v4641_v9 = vld [vmem:[%s7154_s25 + $0x80] sm:$0xf]  ;;  %v5222_v12 = vor.u32 %v6277_v4, %v5219_v5  ;;  %v6133_v14 = vld [vmem:[%s7154_s25 + $0x84] sm:$0xf]  ;;  %2059 = vmatpush.bf16.msra.mxu0 %v4706_v6  ;;  %2085 = vmatpush.bf16.msra.mxu2 %v4710_v8  ;;  %v6342_v52 = vld [vmem:[%s7154_s25 + $0x70c] sm:$0xf]  ;;  %v4974_v56 = vor.u32 %v6214_v50, %v4971_v51 }
  0x8a   : > { %v6141_v10 = vld [vmem:[%s7154_s25 + $0xbc] sm:$0xf0]  ;;  %v4643_v15 = vld [vmem:[%s7154_s25 + $0xc0] sm:$0xf0]  ;;  %v5483_v53 = vld [vmem:[%s7154_s25 + $0x748] sm:$0xf0] }
  0x8b   : > { %v5153_v11 = vld [vmem:[%s7154_s25 + $0x480] sm:$0xf]  ;;  %v6261_v16 = vld [vmem:[%s7154_s25 + $0x484] sm:$0xf]  ;;  %v4642_v18 = vor.u32 %v6141_v10, %v4641_v9  ;;  %2072 = vmatpush.bf16.msra.mxu1 %v5218_v7  ;;  %v4646_v22 = vor.u32 %v6133_v14, %v4643_v15  ;;  %2098 = vmatpush.bf16.msra.mxu3 %v5222_v12  ;;  %v4905_v57 = vld [vmem:[%s7154_s25 + $0x288] sm:$0xf]  ;;  %v5486_v60 = vor.u32 %v6342_v52, %v5483_v53 }
  0x8c   : > { %v6269_v13 = vld [vmem:[%s7154_s25 + $0x4bc] sm:$0xf0]  ;;  %v5155_v17 = vld [vmem:[%s7154_s25 + $0x4c0] sm:$0xf0]  ;;  %v6206_v58 = vld [vmem:[%s7154_s25 + $0x2c4] sm:$0xf0] }
  0x8d   : > { %v4577_v19 = vld [vmem:[%s7154_s25] sm:$0xf]  ;;  %v5154_v21 = vor.u32 %v6269_v13, %v5153_v11  ;;  %v6117_v25 = vld [vmem:[%s7154_s25 + $0x4] sm:$0xf]  ;;  %v5158_v26 = vor.u32 %v6261_v16, %v5155_v17  ;;  %2060 = vmatpush.bf16.msra.mxu0 %v4642_v18  ;;  %2086 = vmatpush.bf16.msra.mxu2 %v4646_v22  ;;  %v5417_v59 = vld [vmem:[%s7154_s25 + $0x688] sm:$0xf]  ;;  %v4906_v2 = vor.u32 %v6206_v58, %v4905_v57 }
  0x8e   : > { %v6125_v20 = vld [vmem:[%s7154_s25 + $0x3c] sm:$0xf0]  ;;  %v4579_v27 = vld [vmem:[%s7154_s25 + $0x40] sm:$0xf0]  ;;  %v6334_v61 = vld [vmem:[%s7154_s25 + $0x6c4] sm:$0xf0] }
  0x8f   : > { %v5089_v23 = vld [vmem:[%s7154_s25 + $0x400] sm:$0xf]  ;;  %v6245_v28 = vld [vmem:[%s7154_s25 + $0x404] sm:$0xf]  ;;  %v4578_v33 = vor.u32 %v6125_v20, %v4577_v19  ;;  %2073 = vmatpush.bf16.msra.mxu1 %v5154_v21  ;;  %v4582_v38 = vor.u32 %v6117_v25, %v4579_v27  ;;  %2099 = vmatpush.bf16.msra.mxu3 %v5158_v26  ;;  %v6198_v62 = vld [vmem:[%s7154_s25 + $0x28c] sm:$0xf]  ;;  %v5418_v4 = vor.u32 %v6334_v61, %v5417_v59 }
  0x90   : > { %v6253_v24 = vld [vmem:[%s7154_s25 + $0x43c] sm:$0xf0]  ;;  %v5091_v29 = vld [vmem:[%s7154_s25 + $0x440] sm:$0xf0]  ;;  %v4907_v63 = vld [vmem:[%s7154_s25 + $0x2c8] sm:$0xf0] }
  0x91   : > { %v5090_v37 = vor.u32 %v6253_v24, %v5089_v23  ;;  %v5094_v41 = vor.u32 %v6245_v28, %v5091_v29  ;;  %2061 = vmatpush.bf16.msra.mxu0 %v4578_v33  ;;  %2087 = vmatpush.bf16.msra.mxu2 %v4582_v38  ;;  %v6326_v0 = vld [vmem:[%s7154_s25 + $0x68c] sm:$0xf]  ;;  %v510_v3 = vld [vmem:[%s7147_s22] sm:$0xff]  ;;  %v4910_v5 = vor.u32 %v6198_v62, %v4907_v63  ;;  %v4841_v6 = vld [vmem:[%s7154_s25 + $0x208] sm:$0xf] }
  0x92   : > { %v5419_v1 = vld [vmem:[%s7154_s25 + $0x6c8] sm:$0xf0]  ;;  %v6190_v7 = vld [vmem:[%s7154_s25 + $0x244] sm:$0xf0]  ;;  %v768_v9 = vunpack.c.l.b16 %v510_v3  ;;  %v769_v10 = vunpack.c.h.b16 %v510_v3  ;;  %v5041_v3 = vld [vmem:[%s7154_s25 + $0x390] sm:$0xf] }
  0x93   : > { %2074 = vmatpush.bf16.msra.mxu1 %v5090_v37  ;;  %2100 = vmatpush.bf16.msra.mxu3 %v5094_v41  ;;  %v5353_v8 = vld [vmem:[%s7154_s25 + $0x608] sm:$0xf]  ;;  %v5422_v11 = vor.u32 %v6326_v0, %v5419_v1  ;;  %v6182_v13 = vld [vmem:[%s7154_s25 + $0x20c] sm:$0xf]  ;;  %v4842_v19 = vor.u32 %v6190_v7, %v4841_v6  ;;  %v6367_v7 = vld [vmem:[%s7154_s25 + $0x7cc] sm:$0xf0] }
  0x94   : > { %v6318_v12 = vld [vmem:[%s7154_s25 + $0x644] sm:$0xf0]  ;;  %v4843_v14 = vld [vmem:[%s7154_s25 + $0x248] sm:$0xf0]  ;;  %v7275_v17 = vpack.c.b16 %v768_v9, %v768_v9  ;;  %v7277_v18 = vpack.c.b16 %v769_v10, %v769_v10  ;;  %v5043_v9 = vld [vmem:[%s7154_s25 + $0x3d0] sm:$0xf0] }
  0x95   : > { %2106 = vmatpush.bf16.msrb.mxu0 %v5034_v42  ;;  %2132 = vmatpush.bf16.msrb.mxu2 %v5038_v44  ;;  %v6310_v15 = vld [vmem:[%s7154_s25 + $0x60c] sm:$0xf]  ;;  %v5354_v20 = vor.u32 %v6318_v12, %v5353_v8  ;;  %v4846_v21 = vor.u32 %v6182_v13, %v4843_v14  ;;  %v4777_v22 = vld [vmem:[%s7154_s25 + $0x188] sm:$0xf]  ;;  %v6231_v8 = vld [vmem:[%s7154_s25 + $0x394] sm:$0xf] }
  0x96   : > { %v5355_v16 = vld [vmem:[%s7154_s25 + $0x648] sm:$0xf0]  ;;  %v6174_v23 = vld [vmem:[%s7154_s25 + $0x1c4] sm:$0xf0]  ;;  %2088 = vmatmul.bf16.vlgmr.msra.gmra.mxu2 %v7275_v17  ;;  %2101 = vmatmul.bf16.vlgmr.msra.gmra.mxu3 %v7277_v18  ;;  %v6359_v12 = vld [vmem:[%s7154_s25 + $0x794] sm:$0xf] }
  0x97   : > { %2119 = vmatpush.bf16.msrb.mxu1 %v5546_v43  ;;  %2145 = vmatpush.bf16.msrb.mxu3 %v5550_v48  ;;  %v5289_v24 = vld [vmem:[%s7154_s25 + $0x588] sm:$0xf]  ;;  %v5358_v25 = vor.u32 %v6310_v15, %v5355_v16  ;;  %v6166_v27 = vld [vmem:[%s7154_s25 + $0x18c] sm:$0xf]  ;;  %v4778_v31 = vor.u32 %v6174_v23, %v4777_v22  ;;  %v5555_v13 = vld [vmem:[%s7154_s25 + $0x7d0] sm:$0xf0] }
  0x98   : > { %v6302_v26 = vld [vmem:[%s7154_s25 + $0x5c4] sm:$0xf0]  ;;  %v4779_v28 = vld [vmem:[%s7154_s25 + $0x1c8] sm:$0xf0]  ;;  %2062 = vmatmul.bf16.vlgmr.msra.gmra.mxu0 %v7275_v17  ;;  %2075 = vmatmul.bf16.vlgmr.msra.gmra.mxu1 %v7277_v18  ;;  %v5489_v22 = vld [vmem:[%s7154_s25 + $0x710] sm:$0xf]  ;;  %v5558_v23 = vor.u32 %v6359_v12, %v5555_v13 }
  0x99   : > { %2107 = vmatpush.bf16.msrb.mxu0 %v4970_v54  ;;  %2133 = vmatpush.bf16.msrb.mxu2 %v4974_v56  ;;  %v6294_v29 = vld [vmem:[%s7154_s25 + $0x58c] sm:$0xf]  ;;  %v5290_v32 = vor.u32 %v6302_v26, %v5289_v24  ;;  %v4782_v33 = vor.u32 %v6166_v27, %v4779_v28  ;;  %v4713_v34 = vld [vmem:[%s7154_s25 + $0x108] sm:$0xf]  ;;  %v6351_v24 = vld [vmem:[%s7154_s25 + $0x74c] sm:$0xf0] }
  0x9a   : > { %v5291_v30 = vld [vmem:[%s7154_s25 + $0x5c8] sm:$0xf0]  ;;  %v6158_v35 = vld [vmem:[%s7154_s25 + $0x144] sm:$0xf0]  ;;  %v4979_v26 = vld [vmem:[%s7154_s25 + $0x350] sm:$0xf0] }
  0x9b   : > { %2120 = vmatpush.bf16.msrb.mxu1 %v5482_v55  ;;  %2146 = vmatpush.bf16.msrb.mxu3 %v5486_v60  ;;  %v5225_v36 = vld [vmem:[%s7154_s25 + $0x508] sm:$0xf]  ;;  %v5294_v37 = vor.u32 %v6294_v29, %v5291_v30  ;;  %v6150_v39 = vld [vmem:[%s7154_s25 + $0x10c] sm:$0xf]  ;;  %v4714_v43 = vor.u32 %v6158_v35, %v4713_v34  ;;  %v6343_v27 = vld [vmem:[%s7154_s25 + $0x714] sm:$0xf]  ;;  %v5490_v30 = vor.u32 %v6351_v24, %v5489_v22 }
  0x9c   : > { %v6286_v38 = vld [vmem:[%s7154_s25 + $0x544] sm:$0xf0]  ;;  %v4715_v40 = vld [vmem:[%s7154_s25 + $0x148] sm:$0xf0]  ;;  %v5491_v28 = vld [vmem:[%s7154_s25 + $0x750] sm:$0xf0] }
  0x9d   : > { %2108 = vmatpush.bf16.msrb.mxu0 %v4906_v2  ;;  %2134 = vmatpush.bf16.msrb.mxu2 %v4910_v5  ;;  %v6278_v41 = vld [vmem:[%s7154_s25 + $0x50c] sm:$0xf]  ;;  %v5226_v44 = vor.u32 %v6286_v38, %v5225_v36  ;;  %v4718_v45 = vor.u32 %v6150_v39, %v4715_v40  ;;  %v4649_v46 = vld [vmem:[%s7154_s25 + $0x88] sm:$0xf]  ;;  %v5553_v5 = vld [vmem:[%s7154_s25 + $0x790] sm:$0xf]  ;;  %v5494_v35 = vor.u32 %v6343_v27, %v5491_v28 }
  0x9e   : > { %v5227_v42 = vld [vmem:[%s7154_s25 + $0x548] sm:$0xf0]  ;;  %v6142_v47 = vld [vmem:[%s7154_s25 + $0xc4] sm:$0xf0]  ;;  %v5554_v16 = vor.u32 %v6367_v7, %v5553_v5  ;;  %v5425_v34 = vld [vmem:[%s7154_s25 + $0x690] sm:$0xf] }
  0x9f   : > { %2121 = vmatpush.bf16.msrb.mxu1 %v5418_v4  ;;  %2147 = vmatpush.bf16.msrb.mxu3 %v5422_v11  ;;  %v5161_v48 = vld [vmem:[%s7154_s25 + $0x488] sm:$0xf]  ;;  %v5230_v49 = vor.u32 %v6278_v41, %v5227_v42  ;;  %v6134_v51 = vld [vmem:[%s7154_s25 + $0x8c] sm:$0xf]  ;;  %v4650_v55 = vor.u32 %v6142_v47, %v4649_v46  ;;  %v6239_v4 = vld [vmem:[%s7154_s25 + $0x3cc] sm:$0xf0] }
  0xa0   : > { %v6270_v50 = vld [vmem:[%s7154_s25 + $0x4c4] sm:$0xf0]  ;;  %v4651_v52 = vld [vmem:[%s7154_s25 + $0xc8] sm:$0xf0]  ;;  %v5042_v15 = vor.u32 %v6239_v4, %v5041_v3  ;;  %v6335_v36 = vld [vmem:[%s7154_s25 + $0x6cc] sm:$0xf0] }
  0xa1   : > { %2109 = vmatpush.bf16.msrb.mxu0 %v4842_v19  ;;  %2135 = vmatpush.bf16.msrb.mxu2 %v4846_v21  ;;  %v6262_v53 = vld [vmem:[%s7154_s25 + $0x48c] sm:$0xf]  ;;  %v4585_v56 = vld [vmem:[%s7154_s25 + $0x8] sm:$0xf]  ;;  %v5162_v58 = vor.u32 %v6270_v50, %v5161_v48  ;;  %v4654_v59 = vor.u32 %v6134_v51, %v4651_v52  ;;  %v5046_v19 = vor.u32 %v6231_v8, %v5043_v9  ;;  %v6223_v21 = vld [vmem:[%s7154_s25 + $0x34c] sm:$0xf0] }
  0xa2   : > { %v5163_v54 = vld [vmem:[%s7154_s25 + $0x4c8] sm:$0xf0]  ;;  %v6126_v57 = vld [vmem:[%s7154_s25 + $0x44] sm:$0xf0]  ;;  %v4915_v38 = vld [vmem:[%s7154_s25 + $0x2d0] sm:$0xf0]  ;;  %v5426_v42 = vor.u32 %v6335_v36, %v5425_v34 }
  0xa3   : > { %2122 = vmatpush.bf16.msrb.mxu1 %v5354_v20  ;;  %2148 = vmatpush.bf16.msrb.mxu3 %v5358_v25  ;;  %v5097_v60 = vld [vmem:[%s7154_s25 + $0x408] sm:$0xf]  ;;  %v6118_v62 = vld [vmem:[%s7154_s25 + $0xc] sm:$0xf]  ;;  %v5166_v63 = vor.u32 %v6262_v53, %v5163_v54  ;;  %v4586_v6 = vor.u32 %v6126_v57, %v4585_v56  ;;  %v4977_v20 = vld [vmem:[%s7154_s25 + $0x310] sm:$0xf] }
  0xa4   : > { %v6254_v61 = vld [vmem:[%s7154_s25 + $0x444] sm:$0xf0]  ;;  %v4587_v0 = vld [vmem:[%s7154_s25 + $0x48] sm:$0xf0]  ;;  %v6215_v25 = vld [vmem:[%s7154_s25 + $0x314] sm:$0xf]  ;;  %v4978_v29 = vor.u32 %v6223_v21, %v4977_v20 }
  0xa5   : > { %2110 = vmatpush.bf16.msrb.mxu0 %v4778_v31  ;;  %2136 = vmatpush.bf16.msrb.mxu2 %v4782_v33  ;;  %v6246_v1 = vld [vmem:[%s7154_s25 + $0x40c] sm:$0xf]  ;;  %v5098_v10 = vor.u32 %v6254_v61, %v5097_v60  ;;  %v4590_v11 = vor.u32 %v6118_v62, %v4587_v0  ;;  %v4982_v31 = vor.u32 %v6215_v25, %v4979_v26  ;;  %v6207_v33 = vld [vmem:[%s7154_s25 + $0x2cc] sm:$0xf0]  ;;  %v6327_v39 = vld [vmem:[%s7154_s25 + $0x694] sm:$0xf] }
  0xa6   : > { %v5099_v2 = vld [vmem:[%s7154_s25 + $0x448] sm:$0xf0]  ;;  %v5427_v40 = vld [vmem:[%s7154_s25 + $0x6d0] sm:$0xf0]  ;;  %v5361_v46 = vld [vmem:[%s7154_s25 + $0x610] sm:$0xf] }
  0xa7   : > { %2123 = vmatpush.bf16.msrb.mxu1 %v5290_v32  ;;  %2149 = vmatpush.bf16.msrb.mxu3 %v5294_v37  ;;  %v5102_v14 = vor.u32 %v6246_v1, %v5099_v2  ;;  %v4913_v32 = vld [vmem:[%s7154_s25 + $0x290] sm:$0xf]  ;;  %v6199_v37 = vld [vmem:[%s7154_s25 + $0x294] sm:$0xf]  ;;  %v5430_v47 = vor.u32 %v6327_v39, %v5427_v40  ;;  %v5049_v39 = vld [vmem:[%s7154_s25 + $0x398] sm:$0xf] }
  0xa8   : > { %v4914_v41 = vor.u32 %v6207_v33, %v4913_v32  ;;  %v6319_v48 = vld [vmem:[%s7154_s25 + $0x64c] sm:$0xf0]  ;;  %v4851_v50 = vld [vmem:[%s7154_s25 + $0x250] sm:$0xf0]  ;;  %v6240_v40 = vld [vmem:[%s7154_s25 + $0x3d4] sm:$0xf0] }
  0xa9   : > { %2111 = vmatpush.bf16.msrb.mxu0 %v4714_v43  ;;  %2137 = vmatpush.bf16.msrb.mxu2 %v4718_v45  ;;  %v4918_v43 = vor.u32 %v6199_v37, %v4915_v38  ;;  %v6191_v45 = vld [vmem:[%s7154_s25 + $0x24c] sm:$0xf0]  ;;  %v6311_v51 = vld [vmem:[%s7154_s25 + $0x614] sm:$0xf]  ;;  %v5362_v54 = vor.u32 %v6319_v48, %v5361_v46  ;;  %v6360_v48 = vld [vmem:[%s7154_s25 + $0x79c] sm:$0xf] }
  0xaa   : > { %v5363_v52 = vld [vmem:[%s7154_s25 + $0x650] sm:$0xf0]  ;;  %v4785_v56 = vld [vmem:[%s7154_s25 + $0x190] sm:$0xf] }
  0xab   : > { %2124 = vmatpush.bf16.msrb.mxu1 %v5226_v44  ;;  %2150 = vmatpush.bf16.msrb.mxu3 %v5230_v49  ;;  %v4849_v44 = vld [vmem:[%s7154_s25 + $0x210] sm:$0xf]  ;;  %v6183_v49 = vld [vmem:[%s7154_s25 + $0x214] sm:$0xf] }
  0xac   : > { %v4850_v53 = vor.u32 %v6191_v45, %v4849_v44  ;;  %v6175_v57 = vld [vmem:[%s7154_s25 + $0x1cc] sm:$0xf0]  ;;  %v6167_v61 = vld [vmem:[%s7154_s25 + $0x194] sm:$0xf]  ;;  %v6232_v44 = vld [vmem:[%s7154_s25 + $0x39c] sm:$0xf] }
  0xad   : > { %2112 = vmatpush.bf16.msrb.mxu0 %v4650_v55  ;;  %2138 = vmatpush.bf16.msrb.mxu2 %v4654_v59  ;;  %v4854_v55 = vor.u32 %v6183_v49, %v4851_v50  ;;  %v5366_v59 = vor.u32 %v6311_v51, %v5363_v52  ;;  %v6303_v60 = vld [vmem:[%s7154_s25 + $0x5cc] sm:$0xf0]  ;;  %v4787_v62 = vld [vmem:[%s7154_s25 + $0x1d0] sm:$0xf0]  ;;  %v4786_v1 = vor.u32 %v6175_v57, %v4785_v56  ;;  %v5051_v45 = vld [vmem:[%s7154_s25 + $0x3d8] sm:$0xf0] }
  0xae   : > { %v5299_v0 = vld [vmem:[%s7154_s25 + $0x5d0] sm:$0xf0]  ;;  %v4790_v3 = vor.u32 %v6167_v61, %v4787_v62  ;;  %v4721_v4 = vld [vmem:[%s7154_s25 + $0x110] sm:$0xf]  ;;  %v5563_v49 = vld [vmem:[%s7154_s25 + $0x7d8] sm:$0xf0]  ;;  %v5050_v51 = vor.u32 %v6240_v40, %v5049_v39 }
  0xaf   : > { %2125 = vmatpush.bf16.msrb.mxu1 %v5162_v58  ;;  %2151 = vmatpush.bf16.msrb.mxu3 %v5166_v63  ;;  %v5297_v58 = vld [vmem:[%s7154_s25 + $0x590] sm:$0xf]  ;;  %v6295_v63 = vld [vmem:[%s7154_s25 + $0x594] sm:$0xf]  ;;  %v5497_v56 = vld [vmem:[%s7154_s25 + $0x718] sm:$0xf]  ;;  %v5566_v57 = vor.u32 %v6360_v48, %v5563_v49 }
  0xb0   : > { %v5298_v2 = vor.u32 %v6303_v60, %v5297_v58  ;;  %v6159_v5 = vld [vmem:[%s7154_s25 + $0x14c] sm:$0xf0]  ;;  %v5302_v7 = vor.u32 %v6295_v63, %v5299_v0  ;;  %v6151_v9 = vld [vmem:[%s7154_s25 + $0x114] sm:$0xf]  ;;  %v6352_v58 = vld [vmem:[%s7154_s25 + $0x754] sm:$0xf0] }
  0xb1   : > { %2113 = vmatpush.bf16.msrb.mxu0 %v4586_v6  ;;  %2139 = vmatpush.bf16.msrb.mxu2 %v4590_v11  ;;  %v5233_v6 = vld [vmem:[%s7154_s25 + $0x510] sm:$0xf]  ;;  %v6279_v11 = vld [vmem:[%s7154_s25 + $0x514] sm:$0xf]  ;;  %v4722_v13 = vor.u32 %v6159_v5, %v4721_v4  ;;  %v4987_v60 = vld [vmem:[%s7154_s25 + $0x358] sm:$0xf0]  ;;  %v5498_v0 = vor.u32 %v6352_v58, %v5497_v56 }
  0xb2   : > { %v6287_v8 = vld [vmem:[%s7154_s25 + $0x54c] sm:$0xf0]  ;;  %v5235_v12 = vld [vmem:[%s7154_s25 + $0x550] sm:$0xf0]  ;;  %v6344_v61 = vld [vmem:[%s7154_s25 + $0x71c] sm:$0xf] }
  0xb3   : > { %2126 = vmatpush.bf16.msrb.mxu1 %v5098_v10  ;;  %2152 = vmatpush.bf16.msrb.mxu3 %v5102_v14  ;;  %v4723_v10 = vld [vmem:[%s7154_s25 + $0x150] sm:$0xf0]  ;;  %v5234_v14 = vor.u32 %v6287_v8, %v5233_v6  ;;  %v5169_v20 = vld [vmem:[%s7154_s25 + $0x490] sm:$0xf]  ;;  %v5238_v21 = vor.u32 %v6279_v11, %v5235_v12  ;;  %v5499_v62 = vld [vmem:[%s7154_s25 + $0x758] sm:$0xf0] }
  0xb4   : > { %2140 = vmatmul.bf16.vlgmr.msrb.gmra.mxu2 %v7275_v17  ;;  %2114 = vmatmul.bf16.vlgmr.msrb.gmra.mxu0 %v7275_v17  ;;  %v6271_v22 = vld [vmem:[%s7154_s25 + $0x4cc] sm:$0xf0]  ;;  %v4659_v24 = vld [vmem:[%s7154_s25 + $0xd0] sm:$0xf0]  ;;  %v5433_v4 = vld [vmem:[%s7154_s25 + $0x698] sm:$0xf]  ;;  %v5502_v5 = vor.u32 %v6344_v61, %v5499_v62 }
  0xb5   : > { %2158 = vmatpush.bf16.msra.mxu0 %v5042_v15  ;;  %2184 = vmatpush.bf16.msra.mxu2 %v5046_v19  ;;  %v4726_v15 = vor.u32 %v6151_v9, %v4723_v10  ;;  %v6143_v19 = vld [vmem:[%s7154_s25 + $0xcc] sm:$0xf0]  ;;  %v6263_v25 = vld [vmem:[%s7154_s25 + $0x494] sm:$0xf]  ;;  %v6336_v6 = vld [vmem:[%s7154_s25 + $0x6d4] sm:$0xf0] }
  0xb6   : > { %2153 = vmatmul.bf16.vlgmr.msrb.gmra.mxu3 %v7277_v18  ;;  %2127 = vmatmul.bf16.vlgmr.msrb.gmra.mxu1 %v7277_v18  ;;  %v5171_v26 = vld [vmem:[%s7154_s25 + $0x4d0] sm:$0xf0]  ;;  %v4593_v28 = vld [vmem:[%s7154_s25 + $0x10] sm:$0xf]  ;;  %v4923_v8 = vld [vmem:[%s7154_s25 + $0x2d8] sm:$0xf0]  ;;  %v5434_v12 = vor.u32 %v6336_v6, %v5433_v4 }
  0xb7   : > { %2171 = vmatpush.bf16.msra.mxu1 %v5554_v16  ;;  %2197 = vmatpush.bf16.msra.mxu3 %v5558_v23  ;;  %v4657_v16 = vld [vmem:[%s7154_s25 + $0x90] sm:$0xf]  ;;  %v6135_v23 = vld [vmem:[%s7154_s25 + $0x94] sm:$0xf]  ;;  %v6328_v9 = vld [vmem:[%s7154_s25 + $0x69c] sm:$0xf] }
  0xb8   : > { %v4658_v27 = vor.u32 %v6143_v19, %v4657_v16  ;;  %v5105_v32 = vld [vmem:[%s7154_s25 + $0x410] sm:$0xf]  ;;  %v6119_v34 = vld [vmem:[%s7154_s25 + $0x14] sm:$0xf]  ;;  %v5435_v10 = vld [vmem:[%s7154_s25 + $0x6d8] sm:$0xf0] }
  0xb9   : > { %2159 = vmatpush.bf16.msra.mxu0 %v4978_v29  ;;  %2185 = vmatpush.bf16.msra.mxu2 %v4982_v31  ;;  %v6127_v29 = vld [vmem:[%s7154_s25 + $0x4c] sm:$0xf0]  ;;  %v4662_v31 = vor.u32 %v6135_v23, %v4659_v24  ;;  %v4595_v36 = vld [vmem:[%s7154_s25 + $0x50] sm:$0xf0]  ;;  %v5369_v16 = vld [vmem:[%s7154_s25 + $0x618] sm:$0xf]  ;;  %v5438_v19 = vor.u32 %v6328_v9, %v5435_v10 }
  0xba   : > { %v6255_v33 = vld [vmem:[%s7154_s25 + $0x44c] sm:$0xf0]  ;;  %v6247_v37 = vld [vmem:[%s7154_s25 + $0x414] sm:$0xf]  ;;  %v6312_v23 = vld [vmem:[%s7154_s25 + $0x61c] sm:$0xf] }
  0xbb   : > { %2172 = vmatpush.bf16.msra.mxu1 %v5490_v30  ;;  %2198 = vmatpush.bf16.msra.mxu3 %v5494_v35  ;;  %v5170_v30 = vor.u32 %v6271_v22, %v5169_v20  ;;  %v5174_v35 = vor.u32 %v6263_v25, %v5171_v26  ;;  %v5107_v38 = vld [vmem:[%s7154_s25 + $0x450] sm:$0xf0]  ;;  %v5106_v46 = vor.u32 %v6255_v33, %v5105_v32  ;;  %v6320_v20 = vld [vmem:[%s7154_s25 + $0x654] sm:$0xf0]  ;;  %v4859_v22 = vld [vmem:[%s7154_s25 + $0x258] sm:$0xf0] }
  0xbc   : > { %v5110_v50 = vor.u32 %v6247_v37, %v5107_v38  ;;  %v5371_v24 = vld [vmem:[%s7154_s25 + $0x658] sm:$0xf0]  ;;  %v5370_v26 = vor.u32 %v6320_v20, %v5369_v16  ;;  %v6304_v32 = vld [vmem:[%s7154_s25 + $0x5d4] sm:$0xf0]  ;;  %v5057_v9 = vld [vmem:[%s7154_s25 + $0x3a0] sm:$0xf] }
  0xbd   : > { %2160 = vmatpush.bf16.msra.mxu0 %v4914_v41  ;;  %2186 = vmatpush.bf16.msra.mxu2 %v4918_v43  ;;  %v5561_v41 = vld [vmem:[%s7154_s25 + $0x798] sm:$0xf]  ;;  %v6168_v33 = vld [vmem:[%s7154_s25 + $0x19c] sm:$0xf]  ;;  %v6241_v10 = vld [vmem:[%s7154_s25 + $0x3dc] sm:$0xf0] }
  0xbe   : > { %v6368_v43 = vld [vmem:[%s7154_s25 + $0x7d4] sm:$0xf0]  ;;  %v5243_v48 = vld [vmem:[%s7154_s25 + $0x558] sm:$0xf0]  ;;  %v6361_v20 = vld [vmem:[%s7154_s25 + $0x7a4] sm:$0xf] }
  0xbf   : > { %2173 = vmatpush.bf16.msra.mxu1 %v5426_v42  ;;  %2199 = vmatpush.bf16.msra.mxu3 %v5430_v47  ;;  %v4594_v42 = vor.u32 %v6127_v29, %v4593_v28  ;;  %v4598_v47 = vor.u32 %v6119_v34, %v4595_v36  ;;  %v5562_v52 = vor.u32 %v6368_v43, %v5561_v41  ;;  %v4793_v28 = vld [vmem:[%s7154_s25 + $0x198] sm:$0xf]  ;;  %v4795_v34 = vld [vmem:[%s7154_s25 + $0x1d8] sm:$0xf0] }
  0xc0   : > { %v6176_v29 = vld [vmem:[%s7154_s25 + $0x1d4] sm:$0xf0]  ;;  %v5307_v36 = vld [vmem:[%s7154_s25 + $0x5d8] sm:$0xf0]  ;;  %v4798_v39 = vor.u32 %v6168_v33, %v4795_v34  ;;  %v6345_v33 = vld [vmem:[%s7154_s25 + $0x724] sm:$0xf] }
  0xc1   : > { %2161 = vmatpush.bf16.msra.mxu0 %v4850_v53  ;;  %2187 = vmatpush.bf16.msra.mxu2 %v4854_v55  ;;  %v5054_v53 = vor.u32 %v6232_v44, %v5051_v45  ;;  %v6224_v55 = vld [vmem:[%s7154_s25 + $0x354] sm:$0xf0]  ;;  %v4794_v37 = vor.u32 %v6176_v29, %v4793_v28  ;;  %v6152_v45 = vld [vmem:[%s7154_s25 + $0x11c] sm:$0xf]  ;;  %v5505_v28 = vld [vmem:[%s7154_s25 + $0x720] sm:$0xf] }
  0xc2   : > { %v4729_v40 = vld [vmem:[%s7154_s25 + $0x118] sm:$0xf]  ;;  %v4667_v58 = vld [vmem:[%s7154_s25 + $0xd8] sm:$0xf0]  ;;  %v5507_v34 = vld [vmem:[%s7154_s25 + $0x760] sm:$0xf0] }
  0xc3   : > { %2174 = vmatpush.bf16.msra.mxu1 %v5362_v54  ;;  %2200 = vmatpush.bf16.msra.mxu3 %v5366_v59  ;;  %v4985_v54 = vld [vmem:[%s7154_s25 + $0x318] sm:$0xf]  ;;  %v6216_v59 = vld [vmem:[%s7154_s25 + $0x31c] sm:$0xf] }
  0xc4   : > { %v4986_v63 = vor.u32 %v6224_v55, %v4985_v54  ;;  %v6160_v41 = vld [vmem:[%s7154_s25 + $0x154] sm:$0xf0]  ;;  %v6120_v4 = vld [vmem:[%s7154_s25 + $0x1c] sm:$0xf] }
  0xc5   : > { %2162 = vmatpush.bf16.msra.mxu0 %v4786_v1  ;;  %2188 = vmatpush.bf16.msra.mxu2 %v4790_v3  ;;  %v4990_v1 = vor.u32 %v6216_v59, %v4987_v60  ;;  %v6208_v3 = vld [vmem:[%s7154_s25 + $0x2d4] sm:$0xf0]  ;;  %v4730_v49 = vor.u32 %v6160_v41, %v4729_v40  ;;  %v6264_v59 = vld [vmem:[%s7154_s25 + $0x49c] sm:$0xf]  ;;  %v5441_v40 = vld [vmem:[%s7154_s25 + $0x6a0] sm:$0xf]  ;;  %v5510_v41 = vor.u32 %v6345_v33, %v5507_v34 }
  0xc6   : > { %v6288_v44 = vld [vmem:[%s7154_s25 + $0x554] sm:$0xf0]  ;;  %v5179_v60 = vld [vmem:[%s7154_s25 + $0x4d8] sm:$0xf0]  ;;  %v4609_v34 = vld [vmem:[%s7154_s25 + $0x20] sm:$0xf] }
  0xc7   : > { %2175 = vmatpush.bf16.msra.mxu1 %v5298_v2  ;;  %2201 = vmatpush.bf16.msra.mxu3 %v5302_v7  ;;  %v4921_v2 = vld [vmem:[%s7154_s25 + $0x298] sm:$0xf]  ;;  %v6200_v7 = vld [vmem:[%s7154_s25 + $0x29c] sm:$0xf] }
  0xc8   : > { %v4922_v11 = vor.u32 %v6208_v3, %v4921_v2  ;;  %v5177_v54 = vld [vmem:[%s7154_s25 + $0x498] sm:$0xf]  ;;  %v4603_v6 = vld [vmem:[%s7154_s25 + $0x58] sm:$0xf0] }
  0xc9   : > { %2163 = vmatpush.bf16.msra.mxu0 %v4722_v13  ;;  %2189 = vmatpush.bf16.msra.mxu2 %v4726_v15  ;;  %v4926_v13 = vor.u32 %v6200_v7, %v4923_v8  ;;  %v6192_v15 = vld [vmem:[%s7154_s25 + $0x254] sm:$0xf0]  ;;  %v6248_v7 = vld [vmem:[%s7154_s25 + $0x41c] sm:$0xf] }
  0xca   : > { %v6272_v56 = vld [vmem:[%s7154_s25 + $0x4d4] sm:$0xf0]  ;;  %v5115_v8 = vld [vmem:[%s7154_s25 + $0x458] sm:$0xf0] }
  0xcb   : > { %2176 = vmatpush.bf16.msra.mxu1 %v5234_v14  ;;  %2202 = vmatpush.bf16.msra.mxu3 %v5238_v21  ;;  %v4857_v14 = vld [vmem:[%s7154_s25 + $0x218] sm:$0xf]  ;;  %v6184_v21 = vld [vmem:[%s7154_s25 + $0x21c] sm:$0xf] }
  0xcc   : > { %v4858_v25 = vor.u32 %v6192_v15, %v4857_v14  ;;  %v4601_v62 = vld [vmem:[%s7154_s25 + $0x18] sm:$0xf]  ;;  %v6233_v14 = vld [vmem:[%s7154_s25 + $0x3a4] sm:$0xf] }
  0xcd   : > { %2164 = vmatpush.bf16.msra.mxu0 %v4658_v27  ;;  %2190 = vmatpush.bf16.msra.mxu2 %v4662_v31  ;;  %v4862_v27 = vor.u32 %v6184_v21, %v4859_v22  ;;  %v5374_v31 = vor.u32 %v6312_v23, %v5371_v24  ;;  %v5113_v2 = vld [vmem:[%s7154_s25 + $0x418] sm:$0xf]  ;;  %v5059_v15 = vld [vmem:[%s7154_s25 + $0x3e0] sm:$0xf0]  ;;  %v5118_v22 = vor.u32 %v6248_v7, %v5115_v8 }
  0xce   : > { %v6256_v3 = vld [vmem:[%s7154_s25 + $0x454] sm:$0xf0]  ;;  %v5571_v21 = vld [vmem:[%s7154_s25 + $0x7e0] sm:$0xf0]  ;;  %v5058_v23 = vor.u32 %v6241_v10, %v5057_v9  ;;  %v4737_v10 = vld [vmem:[%s7154_s25 + $0x120] sm:$0xf] }
  0xcf   : > { %2177 = vmatpush.bf16.msra.mxu1 %v5170_v30  ;;  %2203 = vmatpush.bf16.msra.mxu3 %v5174_v35  ;;  %v5305_v30 = vld [vmem:[%s7154_s25 + $0x598] sm:$0xf]  ;;  %v6296_v35 = vld [vmem:[%s7154_s25 + $0x59c] sm:$0xf]  ;;  %v5114_v16 = vor.u32 %v6256_v3, %v5113_v2  ;;  %v5574_v29 = vor.u32 %v6361_v20, %v5571_v21  ;;  %v6305_v2 = vld [vmem:[%s7154_s25 + $0x5dc] sm:$0xf0] }
  0xd0   : > { %v5306_v38 = vor.u32 %v6304_v32, %v5305_v30  ;;  %v5310_v43 = vor.u32 %v6296_v35, %v5307_v36  ;;  %v6353_v30 = vld [vmem:[%s7154_s25 + $0x75c] sm:$0xf0]  ;;  %v4995_v32 = vld [vmem:[%s7154_s25 + $0x360] sm:$0xf0] }
  0xd1   : > { %2165 = vmatpush.bf16.msra.mxu0 %v4594_v42  ;;  %2191 = vmatpush.bf16.msra.mxu2 %v4598_v47  ;;  %v5241_v42 = vld [vmem:[%s7154_s25 + $0x518] sm:$0xf]  ;;  %v6280_v47 = vld [vmem:[%s7154_s25 + $0x51c] sm:$0xf]  ;;  %v5506_v36 = vor.u32 %v6353_v30, %v5505_v28  ;;  %v6169_v3 = vld [vmem:[%s7154_s25 + $0x1a4] sm:$0xf] }
  0xd2   : > { %v5246_v55 = vor.u32 %v6280_v47, %v5243_v48  ;;  %v5251_v20 = vld [vmem:[%s7154_s25 + $0x560] sm:$0xf0]  ;;  %v6273_v28 = vld [vmem:[%s7154_s25 + $0x4dc] sm:$0xf0] }
  0xd3   : > { %2178 = vmatpush.bf16.msra.mxu1 %v5106_v46  ;;  %2204 = vmatpush.bf16.msra.mxu3 %v5110_v50  ;;  %v4731_v46 = vld [vmem:[%s7154_s25 + $0x158] sm:$0xf0]  ;;  %v5242_v50 = vor.u32 %v6288_v44, %v5241_v42  ;;  %v6337_v42 = vld [vmem:[%s7154_s25 + $0x6dc] sm:$0xf0]  ;;  %v4931_v44 = vld [vmem:[%s7154_s25 + $0x2e0] sm:$0xf0] }
  0xd4   : > { %2192 = vmatmul.bf16.vlgmr.msra.gmra.mxu2 %v7275_v17  ;;  %2166 = vmatmul.bf16.vlgmr.msra.gmra.mxu0 %v7275_v17  ;;  %v5442_v48 = vor.u32 %v6337_v42, %v5441_v40  ;;  %v4675_v30 = vld [vmem:[%s7154_s25 + $0xe0] sm:$0xf0] }
  0xd5   : > { %2210 = vmatpush.bf16.msrb.mxu0 %v5050_v51  ;;  %2236 = vmatpush.bf16.msrb.mxu2 %v5054_v53  ;;  %v4734_v51 = vor.u32 %v6152_v45, %v4731_v46  ;;  %v6144_v53 = vld [vmem:[%s7154_s25 + $0xd4] sm:$0xf0]  ;;  %v6329_v45 = vld [vmem:[%s7154_s25 + $0x6a4] sm:$0xf] }
  0xd6   : > { %2205 = vmatmul.bf16.vlgmr.msra.gmra.mxu3 %v7277_v18  ;;  %2179 = vmatmul.bf16.vlgmr.msra.gmra.mxu1 %v7277_v18  ;;  %v5443_v46 = vld [vmem:[%s7154_s25 + $0x6e0] sm:$0xf0] }
  0xd7   : > { %2223 = vmatpush.bf16.msrb.mxu1 %v5562_v52  ;;  %2249 = vmatpush.bf16.msrb.mxu3 %v5566_v57  ;;  %v4665_v52 = vld [vmem:[%s7154_s25 + $0x98] sm:$0xf]  ;;  %v6136_v57 = vld [vmem:[%s7154_s25 + $0x9c] sm:$0xf]  ;;  %v6121_v40 = vld [vmem:[%s7154_s25 + $0x24] sm:$0xf] }
  0xd8   : > { %v4666_v61 = vor.u32 %v6144_v53, %v4665_v52  ;;  %v5377_v52 = vld [vmem:[%s7154_s25 + $0x620] sm:$0xf]  ;;  %v5446_v53 = vor.u32 %v6329_v45, %v5443_v46  ;;  %v4611_v42 = vld [vmem:[%s7154_s25 + $0x60] sm:$0xf0]  ;;  %v5065_v45 = vld [vmem:[%s7154_s25 + $0x3a8] sm:$0xf] }
  0xd9   : > { %2211 = vmatpush.bf16.msrb.mxu0 %v4986_v63  ;;  %2237 = vmatpush.bf16.msrb.mxu2 %v4990_v1  ;;  %v6128_v63 = vld [vmem:[%s7154_s25 + $0x54] sm:$0xf0]  ;;  %v4670_v1 = vor.u32 %v6136_v57, %v4667_v58  ;;  %v6313_v57 = vld [vmem:[%s7154_s25 + $0x624] sm:$0xf]  ;;  %v6242_v46 = vld [vmem:[%s7154_s25 + $0x3e4] sm:$0xf0] }
  0xda   : > { %v5379_v58 = vld [vmem:[%s7154_s25 + $0x660] sm:$0xf0] }
  0xdb   : > { %2224 = vmatpush.bf16.msrb.mxu1 %v5498_v0  ;;  %2250 = vmatpush.bf16.msrb.mxu3 %v5502_v5  ;;  %v5178_v0 = vor.u32 %v6272_v56, %v5177_v54  ;;  %v5182_v5 = vor.u32 %v6264_v59, %v5179_v60  ;;  %v6321_v54 = vld [vmem:[%s7154_s25 + $0x65c] sm:$0xf0]  ;;  %v4867_v56 = vld [vmem:[%s7154_s25 + $0x260] sm:$0xf0] }
  0xdc   : > { %v5378_v60 = vor.u32 %v6321_v54, %v5377_v52  ;;  %v6362_v54 = vld [vmem:[%s7154_s25 + $0x7ac] sm:$0xf] }
  0xdd   : > { %2212 = vmatpush.bf16.msrb.mxu0 %v4922_v11  ;;  %2238 = vmatpush.bf16.msrb.mxu2 %v4926_v13  ;;  %v5569_v11 = vld [vmem:[%s7154_s25 + $0x7a0] sm:$0xf] }
  0xde   : > { %v6369_v13 = vld [vmem:[%s7154_s25 + $0x7dc] sm:$0xf0] }
  0xdf   : > { %2225 = vmatpush.bf16.msrb.mxu1 %v5434_v12  ;;  %2251 = vmatpush.bf16.msrb.mxu3 %v5438_v19  ;;  %v4602_v12 = vor.u32 %v6128_v63, %v4601_v62  ;;  %v4606_v19 = vor.u32 %v6120_v4, %v4603_v6  ;;  %v5570_v24 = vor.u32 %v6369_v13, %v5569_v11  ;;  %v4801_v62 = vld [vmem:[%s7154_s25 + $0x1a0] sm:$0xf]  ;;  %v4803_v4 = vld [vmem:[%s7154_s25 + $0x1e0] sm:$0xf0] }
  0xe0   : > { %v6177_v63 = vld [vmem:[%s7154_s25 + $0x1dc] sm:$0xf0]  ;;  %v5315_v6 = vld [vmem:[%s7154_s25 + $0x5e0] sm:$0xf0]  ;;  %v4806_v9 = vor.u32 %v6169_v3, %v4803_v4  ;;  %v6346_v3 = vld [vmem:[%s7154_s25 + $0x72c] sm:$0xf] }
  0xe1   : > { %2213 = vmatpush.bf16.msrb.mxu0 %v4858_v25  ;;  %2239 = vmatpush.bf16.msrb.mxu2 %v4862_v27  ;;  %v5062_v25 = vor.u32 %v6233_v14, %v5059_v15  ;;  %v6225_v27 = vld [vmem:[%s7154_s25 + $0x35c] sm:$0xf0]  ;;  %v4802_v7 = vor.u32 %v6177_v63, %v4801_v62  ;;  %v6153_v15 = vld [vmem:[%s7154_s25 + $0x124] sm:$0xf]  ;;  %v5513_v62 = vld [vmem:[%s7154_s25 + $0x728] sm:$0xf] }
  0xe2   : > { %v6161_v11 = vld [vmem:[%s7154_s25 + $0x15c] sm:$0xf0]  ;;  %v5515_v4 = vld [vmem:[%s7154_s25 + $0x768] sm:$0xf0] }
  0xe3   : > { %2226 = vmatpush.bf16.msrb.mxu1 %v5370_v26  ;;  %2252 = vmatpush.bf16.msrb.mxu3 %v5374_v31  ;;  %v4993_v26 = vld [vmem:[%s7154_s25 + $0x320] sm:$0xf]  ;;  %v6217_v31 = vld [vmem:[%s7154_s25 + $0x324] sm:$0xf]  ;;  %v4738_v21 = vor.u32 %v6161_v11, %v4737_v10  ;;  %v5449_v10 = vld [vmem:[%s7154_s25 + $0x6a8] sm:$0xf]  ;;  %v5518_v11 = vor.u32 %v6346_v3, %v5515_v4 }
  0xe4   : > { %v4994_v35 = vor.u32 %v6225_v27, %v4993_v26  ;;  %v6289_v14 = vld [vmem:[%s7154_s25 + $0x55c] sm:$0xf0]  ;;  %v4683_v3 = vld [vmem:[%s7154_s25 + $0xe8] sm:$0xf0] }
  0xe5   : > { %2214 = vmatpush.bf16.msrb.mxu0 %v4794_v37  ;;  %2240 = vmatpush.bf16.msrb.mxu2 %v4798_v39  ;;  %v4998_v37 = vor.u32 %v6217_v31, %v4995_v32  ;;  %v6209_v39 = vld [vmem:[%s7154_s25 + $0x2dc] sm:$0xf0]  ;;  %v6265_v31 = vld [vmem:[%s7154_s25 + $0x4a4] sm:$0xf] }
  0xe6   : > { %v5185_v26 = vld [vmem:[%s7154_s25 + $0x4a0] sm:$0xf]  ;;  %v5187_v32 = vld [vmem:[%s7154_s25 + $0x4e0] sm:$0xf0] }
  0xe7   : > { %2227 = vmatpush.bf16.msrb.mxu1 %v5306_v38  ;;  %2253 = vmatpush.bf16.msrb.mxu3 %v5310_v43  ;;  %v4929_v38 = vld [vmem:[%s7154_s25 + $0x2a0] sm:$0xf]  ;;  %v6201_v43 = vld [vmem:[%s7154_s25 + $0x2a4] sm:$0xf] }
  0xe8   : > { %v4930_v47 = vor.u32 %v6209_v39, %v4929_v38  ;;  %v5121_v38 = vld [vmem:[%s7154_s25 + $0x420] sm:$0xf] }
  0xe9   : > { %2215 = vmatpush.bf16.msrb.mxu0 %v4730_v49  ;;  %2241 = vmatpush.bf16.msrb.mxu2 %v4734_v51  ;;  %v4934_v49 = vor.u32 %v6201_v43, %v4931_v44  ;;  %v6193_v51 = vld [vmem:[%s7154_s25 + $0x25c] sm:$0xf0]  ;;  %v6249_v43 = vld [vmem:[%s7154_s25 + $0x424] sm:$0xf] }
  0xea   : > { %v6257_v39 = vld [vmem:[%s7154_s25 + $0x45c] sm:$0xf0]  ;;  %v5123_v44 = vld [vmem:[%s7154_s25 + $0x460] sm:$0xf0] }
  0xeb   : > { %2228 = vmatpush.bf16.msrb.mxu1 %v5242_v50  ;;  %2254 = vmatpush.bf16.msrb.mxu3 %v5246_v55  ;;  %v4865_v50 = vld [vmem:[%s7154_s25 + $0x220] sm:$0xf]  ;;  %v6185_v55 = vld [vmem:[%s7154_s25 + $0x224] sm:$0xf]  ;;  %v5122_v52 = vor.u32 %v6257_v39, %v5121_v38  ;;  %v6306_v38 = vld [vmem:[%s7154_s25 + $0x5e4] sm:$0xf0] }
  0xec   : > { %v4866_v59 = vor.u32 %v6193_v51, %v4865_v50  ;;  %v6234_v50 = vld [vmem:[%s7154_s25 + $0x3ac] sm:$0xf] }
  0xed   : > { %2216 = vmatpush.bf16.msrb.mxu0 %v4666_v61  ;;  %2242 = vmatpush.bf16.msrb.mxu2 %v4670_v1  ;;  %v4870_v61 = vor.u32 %v6185_v55, %v4867_v56  ;;  %v5382_v1 = vor.u32 %v6313_v57, %v5379_v58  ;;  %v5067_v51 = vld [vmem:[%s7154_s25 + $0x3e8] sm:$0xf0]  ;;  %v5126_v56 = vor.u32 %v6249_v43, %v5123_v44 }
  0xee   : > { %v5579_v55 = vld [vmem:[%s7154_s25 + $0x7e8] sm:$0xf0]  ;;  %v5066_v57 = vor.u32 %v6242_v46, %v5065_v45  ;;  %v4745_v46 = vld [vmem:[%s7154_s25 + $0x128] sm:$0xf] }
  0xef   : > { %2229 = vmatpush.bf16.msrb.mxu1 %v5178_v0  ;;  %2255 = vmatpush.bf16.msrb.mxu3 %v5182_v5  ;;  %v5313_v0 = vld [vmem:[%s7154_s25 + $0x5a0] sm:$0xf]  ;;  %v6297_v5 = vld [vmem:[%s7154_s25 + $0x5a4] sm:$0xf]  ;;  %v5582_v63 = vor.u32 %v6362_v54, %v5579_v55  ;;  %v6170_v39 = vld [vmem:[%s7154_s25 + $0x1ac] sm:$0xf] }
  0xf0   : > { %v5314_v8 = vor.u32 %v6305_v2, %v5313_v0  ;;  %v5318_v13 = vor.u32 %v6297_v5, %v5315_v6  ;;  %v6354_v0 = vld [vmem:[%s7154_s25 + $0x764] sm:$0xf0]  ;;  %v5003_v2 = vld [vmem:[%s7154_s25 + $0x368] sm:$0xf0] }
  0xf1   : > { %2217 = vmatpush.bf16.msrb.mxu0 %v4602_v12  ;;  %2243 = vmatpush.bf16.msrb.mxu2 %v4606_v19  ;;  %v5249_v12 = vld [vmem:[%s7154_s25 + $0x520] sm:$0xf]  ;;  %v6281_v19 = vld [vmem:[%s7154_s25 + $0x524] sm:$0xf]  ;;  %v5514_v6 = vor.u32 %v6354_v0, %v5513_v62  ;;  %v5259_v54 = vld [vmem:[%s7154_s25 + $0x568] sm:$0xf0] }
  0xf2   : > { %v5254_v27 = vor.u32 %v6281_v19, %v5251_v20  ;;  %v494_v62 = vld [vmem:[#allocation2 + $0x30] sm:$0xff] }
  0xf3   : > { %2230 = vmatpush.bf16.msrb.mxu1 %v5114_v16  ;;  %2256 = vmatpush.bf16.msrb.mxu3 %v5118_v22  ;;  %v4739_v16 = vld [vmem:[%s7154_s25 + $0x160] sm:$0xf0]  ;;  %v5250_v22 = vor.u32 %v6289_v14, %v5249_v12  ;;  %v6338_v12 = vld [vmem:[%s7154_s25 + $0x6e4] sm:$0xf0]  ;;  %v4939_v14 = vld [vmem:[%s7154_s25 + $0x2e8] sm:$0xf0] }
  0xf4   : > { %2244 = vmatmul.bf16.vlgmr.msrb.gmra.mxu2 %v7275_v17  ;;  %2218 = vmatmul.bf16.vlgmr.msrb.gmra.mxu0 %v7275_v17  ;;  %v5450_v20 = vor.u32 %v6338_v12, %v5449_v10  ;;  %v5129_v10 = vld [vmem:[%s7154_s25 + $0x428] sm:$0xf] }
  0xf5   : > { %2262 = vmatpush.bf16.msra.mxu0 %v5058_v23  ;;  %2288 = vmatpush.bf16.msra.mxu2 %v5062_v25  ;;  %v4742_v23 = vor.u32 %v6153_v15, %v4739_v16  ;;  %v6145_v25 = vld [vmem:[%s7154_s25 + $0xdc] sm:$0xf0]  ;;  %v6330_v15 = vld [vmem:[%s7154_s25 + $0x6ac] sm:$0xf] }
  0xf6   : > { %2257 = vmatmul.bf16.vlgmr.msrb.gmra.mxu3 %v7277_v18  ;;  %2231 = vmatmul.bf16.vlgmr.msrb.gmra.mxu1 %v7277_v18  ;;  %v5451_v16 = vld [vmem:[%s7154_s25 + $0x6e8] sm:$0xf0] }
  0xf7   : > { %2275 = vmatpush.bf16.msra.mxu1 %v5570_v24  ;;  %2301 = vmatpush.bf16.msra.mxu3 %v5574_v29  ;;  %v4673_v24 = vld [vmem:[%s7154_s25 + $0xa0] sm:$0xf]  ;;  %v6137_v29 = vld [vmem:[%s7154_s25 + $0xa4] sm:$0xf] }
  0xf8   : > { %v4674_v33 = vor.u32 %v6145_v25, %v4673_v24  ;;  %v5385_v24 = vld [vmem:[%s7154_s25 + $0x628] sm:$0xf]  ;;  %v5454_v25 = vor.u32 %v6330_v15, %v5451_v16  ;;  %v6122_v15 = vld [vmem:[%s7154_s25 + $0x2c] sm:$0xf] }
  0xf9   : > { %2263 = vmatpush.bf16.msra.mxu0 %v4994_v35  ;;  %2289 = vmatpush.bf16.msra.mxu2 %v4998_v37  ;;  %v6129_v35 = vld [vmem:[%s7154_s25 + $0x5c] sm:$0xf0]  ;;  %v4678_v37 = vor.u32 %v6137_v29, %v4675_v30  ;;  %v6314_v29 = vld [vmem:[%s7154_s25 + $0x62c] sm:$0xf] }
  0xfa   : > { %v5387_v30 = vld [vmem:[%s7154_s25 + $0x668] sm:$0xf0] }
  0xfb   : > { %2276 = vmatpush.bf16.msra.mxu1 %v5506_v36  ;;  %2302 = vmatpush.bf16.msra.mxu3 %v5510_v41  ;;  %v5186_v36 = vor.u32 %v6273_v28, %v5185_v26  ;;  %v5190_v41 = vor.u32 %v6265_v31, %v5187_v32  ;;  %v6322_v26 = vld [vmem:[%s7154_s25 + $0x664] sm:$0xf0]  ;;  %v4875_v28 = vld [vmem:[%s7154_s25 + $0x268] sm:$0xf0] }
  0xfc   : > { %v5386_v32 = vor.u32 %v6322_v26, %v5385_v24  ;;  %v4619_v16 = vld [vmem:[%s7154_s25 + $0x68] sm:$0xf0]  ;;  %v6243_v26 = vld [vmem:[%s7154_s25 + $0x3ec] sm:$0xf0] }
  0xfd   : > { %2264 = vmatpush.bf16.msra.mxu0 %v4930_v47  ;;  %2290 = vmatpush.bf16.msra.mxu2 %v4934_v49  ;;  %v5577_v47 = vld [vmem:[%s7154_s25 + $0x7a8] sm:$0xf] }
  0xfe   : > { %v6370_v49 = vld [vmem:[%s7154_s25 + $0x7e4] sm:$0xf0] }
  0xff   : > { %2277 = vmatpush.bf16.msra.mxu1 %v5442_v48  ;;  %2303 = vmatpush.bf16.msra.mxu3 %v5446_v53  ;;  %v4610_v48 = vor.u32 %v6129_v35, %v4609_v34  ;;  %v4614_v53 = vor.u32 %v6121_v40, %v4611_v42  ;;  %v5578_v58 = vor.u32 %v6370_v49, %v5577_v47  ;;  %v4809_v34 = vld [vmem:[%s7154_s25 + $0x1a8] sm:$0xf]  ;;  %v4811_v40 = vld [vmem:[%s7154_s25 + $0x1e8] sm:$0xf0] }
 0x100   : > { %v6178_v35 = vld [vmem:[%s7154_s25 + $0x1e4] sm:$0xf0]  ;;  %v5323_v42 = vld [vmem:[%s7154_s25 + $0x5e8] sm:$0xf0]  ;;  %v4814_v45 = vor.u32 %v6170_v39, %v4811_v40 }
 0x101   : > { %2265 = vmatpush.bf16.msra.mxu0 %v4866_v59  ;;  %2291 = vmatpush.bf16.msra.mxu2 %v4870_v61  ;;  %v5070_v59 = vor.u32 %v6234_v50, %v5067_v51  ;;  %v6226_v61 = vld [vmem:[%s7154_s25 + $0x364] sm:$0xf0]  ;;  %v4810_v43 = vor.u32 %v6178_v35, %v4809_v34  ;;  %v6154_v51 = vld [vmem:[%s7154_s25 + $0x12c] sm:$0xf]  ;;  %v4622_v35 = vor.u32 %v6122_v15, %v4619_v16  ;;  %v4817_v16 = vld [vmem:[%s7154_s25 + $0x1b0] sm:$0xf] }
 0x102   : > { %v6162_v47 = vld [vmem:[%s7154_s25 + $0x164] sm:$0xf0] }
 0x103   : > { %2278 = vmatpush.bf16.msra.mxu1 %v5378_v60  ;;  %2304 = vmatpush.bf16.msra.mxu3 %v5382_v1  ;;  %v5001_v60 = vld [vmem:[%s7154_s25 + $0x328] sm:$0xf]  ;;  %v6218_v1 = vld [vmem:[%s7154_s25 + $0x32c] sm:$0xf]  ;;  %v4746_v55 = vor.u32 %v6162_v47, %v4745_v46  ;;  %v5521_v46 = vld [vmem:[%s7154_s25 + $0x730] sm:$0xf] }
 0x104   : > { %v5002_v5 = vor.u32 %v6226_v61, %v5001_v60  ;;  %v6290_v50 = vld [vmem:[%s7154_s25 + $0x564] sm:$0xf0] }
 0x105   : > { %2266 = vmatpush.bf16.msra.mxu0 %v4802_v7  ;;  %2292 = vmatpush.bf16.msra.mxu2 %v4806_v9  ;;  %v5006_v7 = vor.u32 %v6218_v1, %v5003_v2  ;;  %v6210_v9 = vld [vmem:[%s7154_s25 + $0x2e4] sm:$0xf0]  ;;  %v6138_v2 = vld [vmem:[%s7154_s25 + $0xac] sm:$0xf] }
 0x106   : > { %v6146_v60 = vld [vmem:[%s7154_s25 + $0xe4] sm:$0xf0] }
 0x107   : > { %2279 = vmatpush.bf16.msra.mxu1 %v5314_v8  ;;  %2305 = vmatpush.bf16.msra.mxu3 %v5318_v13  ;;  %v4937_v8 = vld [vmem:[%s7154_s25 + $0x2a8] sm:$0xf]  ;;  %v6202_v13 = vld [vmem:[%s7154_s25 + $0x2ac] sm:$0xf] }
 0x108   : > { %v4938_v19 = vor.u32 %v6210_v9, %v4937_v8  ;;  %v5193_v61 = vld [vmem:[%s7154_s25 + $0x4a8] sm:$0xf] }
 0x109   : > { %2267 = vmatpush.bf16.msra.mxu0 %v4738_v21  ;;  %2293 = vmatpush.bf16.msra.mxu2 %v4742_v23  ;;  %v4942_v21 = vor.u32 %v6202_v13, %v4939_v14  ;;  %v6194_v23 = vld [vmem:[%s7154_s25 + $0x264] sm:$0xf0]  ;;  %v4686_v13 = vor.u32 %v6138_v2, %v4683_v3  ;;  %v5459_v2 = vld [vmem:[%s7154_s25 + $0x6f0] sm:$0xf0] }
 0x10a   : > { %v6274_v1 = vld [vmem:[%s7154_s25 + $0x4e4] sm:$0xf0] }
 0x10b   : > { %2280 = vmatpush.bf16.msra.mxu1 %v5250_v22  ;;  %2306 = vmatpush.bf16.msra.mxu3 %v5254_v27  ;;  %v4873_v22 = vld [vmem:[%s7154_s25 + $0x228] sm:$0xf]  ;;  %v6186_v27 = vld [vmem:[%s7154_s25 + $0x22c] sm:$0xf]  ;;  %v5194_v12 = vor.u32 %v6274_v1, %v5193_v61  ;;  %v6331_v1 = vld [vmem:[%s7154_s25 + $0x6b4] sm:$0xf] }
 0x10c   : > { %v4874_v31 = vor.u32 %v6194_v23, %v4873_v22  ;;  %v4617_v8 = vld [vmem:[%s7154_s25 + $0x28] sm:$0xf]  ;;  %v5131_v22 = vld [vmem:[%s7154_s25 + $0x468] sm:$0xf0] }
 0x10d   : > { %2268 = vmatpush.bf16.msra.mxu0 %v4674_v33  ;;  %2294 = vmatpush.bf16.msra.mxu2 %v4678_v37  ;;  %v4878_v33 = vor.u32 %v6186_v27, %v4875_v28  ;;  %v5390_v37 = vor.u32 %v6314_v29, %v5387_v30  ;;  %v6130_v9 = vld [vmem:[%s7154_s25 + $0x64] sm:$0xf0]  ;;  %v495_v23 = vld [vmem:[#allocation2] sm:$0xff] }
 0x10e   : > { %v6258_v14 = vld [vmem:[%s7154_s25 + $0x464] sm:$0xf0]  ;;  %v5585_v27 = vld [vmem:[%s7154_s25 + $0x7b0] sm:$0xf]  ;;  %v4618_v29 = vor.u32 %v6130_v9, %v4617_v8  ;;  %v5462_v9 = vor.u32 %v6331_v1, %v5459_v2 }
 0x10f   : > { %2281 = vmatpush.bf16.msra.mxu1 %v5186_v36  ;;  %2307 = vmatpush.bf16.msra.mxu3 %v5190_v41  ;;  %v5321_v36 = vld [vmem:[%s7154_s25 + $0x5a8] sm:$0xf]  ;;  %v6298_v41 = vld [vmem:[%s7154_s25 + $0x5ac] sm:$0xf]  ;;  %v6371_v30 = vld [vmem:[%s7154_s25 + $0x7ec] sm:$0xf0]  ;;  %v5130_v34 = vor.u32 %v6258_v14, %v5129_v10 }
 0x110   : > { %v5322_v44 = vor.u32 %v6306_v38, %v5321_v36  ;;  %v5326_v49 = vor.u32 %v6298_v41, %v5323_v42  ;;  %v6363_v36 = vld [vmem:[%s7154_s25 + $0x7b4] sm:$0xf]  ;;  %v5009_v42 = vld [vmem:[%s7154_s25 + $0x330] sm:$0xf] }
 0x111   : > { %2269 = vmatpush.bf16.msra.mxu0 %v4610_v48  ;;  %2295 = vmatpush.bf16.msra.mxu2 %v4614_v53  ;;  %v5257_v48 = vld [vmem:[%s7154_s25 + $0x528] sm:$0xf]  ;;  %v6282_v53 = vld [vmem:[%s7154_s25 + $0x52c] sm:$0xf]  ;;  %v5393_v8 = vld [vmem:[%s7154_s25 + $0x630] sm:$0xf] }
 0x112   : > { %v5262_v0 = vor.u32 %v6282_v53, %v5259_v54  ;;  %v6323_v10 = vld [vmem:[%s7154_s25 + $0x66c] sm:$0xf0]  ;;  %v5395_v14 = vld [vmem:[%s7154_s25 + $0x670] sm:$0xf0] }
 0x113   : > { %2282 = vmatpush.bf16.msra.mxu1 %v5122_v52  ;;  %2308 = vmatpush.bf16.msra.mxu3 %v5126_v56  ;;  %v4747_v52 = vld [vmem:[%s7154_s25 + $0x168] sm:$0xf0]  ;;  %v4681_v56 = vld [vmem:[%s7154_s25 + $0xa8] sm:$0xf]  ;;  %v4625_v2 = vld [vmem:[%s7154_s25 + $0x30] sm:$0xf] }
 0x114   : > { %2296 = vmatmul.bf16.vlgmr.msra.gmra.mxu2 %v7275_v17  ;;  %2270 = vmatmul.bf16.vlgmr.msra.gmra.mxu0 %v7275_v17 }
 0x115   : > { %2314 = vmatpush.bf16.msrb.mxu0 %v5066_v57  ;;  %2340 = vmatpush.bf16.msrb.mxu2 %v5070_v59  ;;  %v2063_v57 = vpop.f32.mrf.mxu0  ;;  %v4750_v59 = vor.u32 %v6154_v51, %v4747_v52  ;;  %v6347_v51 = vld [vmem:[%s7154_s25 + $0x734] sm:$0xf] }
 0x116   : > { %2309 = vmatmul.bf16.vlgmr.msra.gmra.mxu3 %v7277_v18  ;;  %2283 = vmatmul.bf16.vlgmr.msra.gmra.mxu1 %v7277_v18  ;;  %v5523_v52 = vld [vmem:[%s7154_s25 + $0x770] sm:$0xf0] }
 0x117   : > { %2327 = vmatpush.bf16.msrb.mxu1 %v5578_v58  ;;  %2353 = vmatpush.bf16.msrb.mxu3 %v5582_v63  ;;  %v5258_v58 = vor.u32 %v6290_v50, %v5257_v48  ;;  %v2076_v63 = vpop.f32.mrf.mxu1  ;;  %v6355_v48 = vld [vmem:[%s7154_s25 + $0x76c] sm:$0xf0]  ;;  %v5011_v50 = vld [vmem:[%s7154_s25 + $0x370] sm:$0xf0]  ;;  %v5526_v61 = vor.u32 %v6347_v51, %v5523_v52 }
 0x118   : > { %v2077_v4 = vadd.f32 %v2076_v63, %v2063_v57  ;;  %v6203_v63 = vld [vmem:[%s7154_s25 + $0x2b4] sm:$0xf] }
 0x119   : > { %2315 = vmatpush.bf16.msrb.mxu0 %v5002_v5  ;;  %2341 = vmatpush.bf16.msrb.mxu2 %v5006_v7  ;;  %v6266_v5 = vld [vmem:[%s7154_s25 + $0x4ac] sm:$0xf]  ;;  %v4682_v7 = vor.u32 %v6146_v60, %v4681_v56  ;;  %v2102_v24 = vpop.f32.mrf.mxu3  ;;  %v5522_v56 = vor.u32 %v6355_v48, %v5521_v46  ;;  %v5457_v60 = vld [vmem:[%s7154_s25 + $0x6b0] sm:$0xf]  ;;  %v5267_v48 = vld [vmem:[%s7154_s25 + $0x570] sm:$0xf0] }
 0x11b   : > { %2328 = vmatpush.bf16.msrb.mxu1 %v5514_v6  ;;  %2354 = vmatpush.bf16.msrb.mxu3 %v5518_v11  ;;  %v5195_v6 = vld [vmem:[%s7154_s25 + $0x4e8] sm:$0xf0]  ;;  %v2470_v11 = vadd.f32 %v2077_v4, %v494_v62  ;;  %v6339_v62 = vld [vmem:[%s7154_s25 + $0x6ec] sm:$0xf0] }
 0x11c   : > { %v5458_v4 = vor.u32 %v6339_v62, %v5457_v60  ;;  %v6275_v60 = vld [vmem:[%s7154_s25 + $0x4ec] sm:$0xf0]  ;;  %v4691_v62 = vld [vmem:[%s7154_s25 + $0xf0] sm:$0xf0] }
 0x11d   : > { %2316 = vmatpush.bf16.msrb.mxu0 %v4938_v19  ;;  %2342 = vmatpush.bf16.msrb.mxu2 %v4942_v21  ;;  %v2089_v19 = vpop.f32.mrf.mxu2  ;;  %v6250_v21 = vld [vmem:[%s7154_s25 + $0x42c] sm:$0xf]  ;;  %2486 = vst [vmem:[#allocation2 + $0x30] sm:$0xff] %v2470_v11  ;;  %v6187_v11 = vld [vmem:[%s7154_s25 + $0x234] sm:$0xf] }
 0x11e   : > { %v2103_v28 = vadd.f32 %v2102_v24, %v2089_v19  ;;  %v5134_v40 = vor.u32 %v6250_v21, %v5131_v22  ;;  %v6179_v22 = vld [vmem:[%s7154_s25 + $0x1ec] sm:$0xf0]  ;;  %v496_v24 = vld [vmem:[#allocation2 + $0x58] sm:$0xff] }
 0x11f   : > { %2329 = vmatpush.bf16.msrb.mxu1 %v5450_v20  ;;  %2355 = vmatpush.bf16.msrb.mxu3 %v5454_v25  ;;  %v5198_v20 = vor.u32 %v6266_v5, %v5195_v6  ;;  %v5073_v25 = vld [vmem:[%s7154_s25 + $0x3b0] sm:$0xf]  ;;  %v2078_v39 = vpop.f32.mrf.mxu1 }
 0x120   : > { %v2471_v38 = vadd.f32 %v2103_v28, %v495_v23  ;;  %v5074_v41 = vor.u32 %v6243_v26, %v5073_v25  ;;  %v4881_v6 = vld [vmem:[%s7154_s25 + $0x230] sm:$0xf]  ;;  %v6171_v28 = vld [vmem:[%s7154_s25 + $0x1b4] sm:$0xf] }
 0x121   : > { %2317 = vmatpush.bf16.msrb.mxu0 %v4874_v31  ;;  %2343 = vmatpush.bf16.msrb.mxu2 %v4878_v33  ;;  %v6235_v31 = vld [vmem:[%s7154_s25 + $0x3b4] sm:$0xf]  ;;  %v2065_v33 = vpop.f32.mrf.mxu0  ;;  %v5329_v23 = vld [vmem:[%s7154_s25 + $0x5b0] sm:$0xf] }
 0x122   : > { %2487 = vst [vmem:[#allocation2] sm:$0xff] %v2471_v38  ;;  %v4818_v33 = vor.u32 %v6179_v22, %v4817_v16  ;;  %v6163_v38 = vld [vmem:[%s7154_s25 + $0x16c] sm:$0xf0]  ;;  %v6244_v16 = vld [vmem:[%s7154_s25 + $0x3f4] sm:$0xf0] }
 0x123   : > { %2330 = vmatpush.bf16.msrb.mxu1 %v5386_v32  ;;  %2356 = vmatpush.bf16.msrb.mxu3 %v5390_v37  ;;  %v5075_v32 = vld [vmem:[%s7154_s25 + $0x3f0] sm:$0xf0]  ;;  %v5265_v39 = vld [vmem:[%s7154_s25 + $0x530] sm:$0xf]  ;;  %v6236_v22 = vld [vmem:[%s7154_s25 + $0x3bc] sm:$0xf] }
 0x124   : > { %v5587_v37 = vld [vmem:[%s7154_s25 + $0x7f0] sm:$0xf0] }
 0x125   : > { %2318 = vmatpush.bf16.msrb.mxu0 %v4810_v43  ;;  %2344 = vmatpush.bf16.msrb.mxu2 %v4814_v45  ;;  %v5586_v43 = vor.u32 %v6371_v30, %v5585_v27  ;;  %v6227_v45 = vld [vmem:[%s7154_s25 + $0x36c] sm:$0xf0]  ;;  %v5590_v47 = vor.u32 %v6363_v36, %v5587_v37  ;;  %v2091_v53 = vpop.f32.mrf.mxu2 }
 0x126   : > { %v5010_v54 = vor.u32 %v6227_v45, %v5009_v42  ;;  %v6307_v27 = vld [vmem:[%s7154_s25 + $0x5ec] sm:$0xf0]  ;;  %v497_v45 = vld [vmem:[#allocation2 + $0x18] sm:$0xff] }
 0x127   : > { %2331 = vmatpush.bf16.msrb.mxu1 %v5322_v44  ;;  %2357 = vmatpush.bf16.msrb.mxu3 %v5326_v49  ;;  %v5078_v44 = vor.u32 %v6235_v31, %v5075_v32  ;;  %v6219_v49 = vld [vmem:[%s7154_s25 + $0x334] sm:$0xf]  ;;  %v5330_v36 = vor.u32 %v6307_v27, %v5329_v23  ;;  %v5083_v23 = vld [vmem:[%s7154_s25 + $0x3f8] sm:$0xf0] }
 0x128   : > { %v5014_v57 = vor.u32 %v6219_v49, %v5011_v50  ;;  %v6299_v31 = vld [vmem:[%s7154_s25 + $0x5b4] sm:$0xf]  ;;  %v5595_v27 = vld [vmem:[%s7154_s25 + $0x7f8] sm:$0xf0] }
 0x129   : > { %2319 = vmatpush.bf16.msrb.mxu0 %v4746_v55  ;;  %2345 = vmatpush.bf16.msrb.mxu2 %v4750_v59  ;;  %v2104_v55 = vpop.f32.mrf.mxu3  ;;  %v6211_v59 = vld [vmem:[%s7154_s25 + $0x2ec] sm:$0xf0]  ;;  %v5331_v32 = vld [vmem:[%s7154_s25 + $0x5f0] sm:$0xf0] }
 0x12a   : > { %v5334_v42 = vor.u32 %v6299_v31, %v5331_v32  ;;  %v6147_v55 = vld [vmem:[%s7154_s25 + $0xec] sm:$0xf0]  ;;  %v5086_v31 = vor.u32 %v6236_v22, %v5083_v23  ;;  %v5017_v32 = vld [vmem:[%s7154_s25 + $0x338] sm:$0xf] }
 0x12b   : > { %2332 = vmatpush.bf16.msrb.mxu1 %v5258_v58  ;;  %2358 = vmatpush.bf16.msrb.mxu3 %v5262_v0  ;;  %v4945_v58 = vld [vmem:[%s7154_s25 + $0x2b0] sm:$0xf]  ;;  %v4947_v0 = vld [vmem:[%s7154_s25 + $0x2f0] sm:$0xf0] }
 0x12c   : > { %v4946_v3 = vor.u32 %v6211_v59, %v4945_v58  ;;  %v4950_v5 = vor.u32 %v6203_v63, %v4947_v0  ;;  %v6267_v63 = vld [vmem:[%s7154_s25 + $0x4b4] sm:$0xf] }
 0x12d   : > { %2320 = vmatpush.bf16.msrb.mxu0 %v4682_v7  ;;  %2346 = vmatpush.bf16.msrb.mxu2 %v4686_v13  ;;  %v6195_v7 = vld [vmem:[%s7154_s25 + $0x26c] sm:$0xf0]  ;;  %v6315_v13 = vld [vmem:[%s7154_s25 + $0x634] sm:$0xf] }
 0x12e   : > { %v4882_v15 = vor.u32 %v6195_v7, %v4881_v6  ;;  %v5398_v26 = vor.u32 %v6315_v13, %v5395_v14  ;;  %v5203_v0 = vld [vmem:[%s7154_s25 + $0x4f0] sm:$0xf0]  ;;  %v5137_v6 = vld [vmem:[%s7154_s25 + $0x430] sm:$0xf] }
 0x12f   : > { %2333 = vmatpush.bf16.msrb.mxu1 %v5194_v12  ;;  %2359 = vmatpush.bf16.msrb.mxu3 %v5198_v20  ;;  %v4883_v12 = vld [vmem:[%s7154_s25 + $0x270] sm:$0xf0]  ;;  %v5394_v20 = vor.u32 %v6323_v10, %v5393_v8  ;;  %v6259_v7 = vld [vmem:[%s7154_s25 + $0x46c] sm:$0xf0]  ;;  %v5206_v10 = vor.u32 %v6267_v63, %v5203_v0  ;;  %v6316_v63 = vld [vmem:[%s7154_s25 + $0x63c] sm:$0xf] }
 0x130   : > { %v4886_v21 = vor.u32 %v6187_v11, %v4883_v12  ;;  %v6123_v8 = vld [vmem:[%s7154_s25 + $0x34] sm:$0xf]  ;;  %v5403_v0 = vld [vmem:[%s7154_s25 + $0x678] sm:$0xf0] }
 0x131   : > { %2321 = vmatpush.bf16.msrb.mxu0 %v4618_v29  ;;  %2347 = vmatpush.bf16.msrb.mxu2 %v4622_v35  ;;  %v2115_v19 = vpop.f32.mrf.mxu0  ;;  %v4819_v29 = vld [vmem:[%s7154_s25 + $0x1f0] sm:$0xf0] }
 0x132   : > { %v4822_v37 = vor.u32 %v6171_v28, %v4819_v29  ;;  %v4627_v11 = vld [vmem:[%s7154_s25 + $0x70] sm:$0xf0] }
 0x133   : > { %2334 = vmatpush.bf16.msrb.mxu1 %v5130_v34  ;;  %2360 = vmatpush.bf16.msrb.mxu3 %v5134_v40  ;;  %v2128_v25 = vpop.f32.mrf.mxu1  ;;  %v4753_v34 = vld [vmem:[%s7154_s25 + $0x130] sm:$0xf]  ;;  %v6251_v12 = vld [vmem:[%s7154_s25 + $0x434] sm:$0xf] }
 0x134   : > { %2348 = vmatmul.bf16.vlgmr.msrb.gmra.mxu2 %v7275_v17  ;;  %2322 = vmatmul.bf16.vlgmr.msrb.gmra.mxu0 %v7275_v17  ;;  %v2129_v30 = vadd.f32 %v2128_v25, %v2115_v19  ;;  %v6291_v40 = vld [vmem:[%s7154_s25 + $0x56c] sm:$0xf0]  ;;  %v4754_v50 = vor.u32 %v6163_v38, %v4753_v34  ;;  %v5139_v13 = vld [vmem:[%s7154_s25 + $0x470] sm:$0xf0]  ;;  %v5593_v19 = vld [vmem:[%s7154_s25 + $0x7b8] sm:$0xf]  ;;  %v4630_v25 = vor.u32 %v6123_v8, %v4627_v11 }
 0x135   : > { %2366 = vmatpush.bf16.msra.mxu0 %v5074_v41  ;;  %2392 = vmatpush.bf16.msra.mxu2 %v5078_v44  ;;  %v4755_v44 = vld [vmem:[%s7154_s25 + $0x170] sm:$0xf0]  ;;  %v5266_v52 = vor.u32 %v6291_v40, %v5265_v39  ;;  %v5142_v28 = vor.u32 %v6251_v12, %v5139_v13  ;;  %v5529_v34 = vld [vmem:[%s7154_s25 + $0x738] sm:$0xf]  ;;  %v5019_v38 = vld [vmem:[%s7154_s25 + $0x378] sm:$0xf0] }
 0x136   : > { %2361 = vmatmul.bf16.vlgmr.msrb.gmra.mxu3 %v7277_v18  ;;  %2335 = vmatmul.bf16.vlgmr.msrb.gmra.mxu1 %v7277_v18  ;;  %v2472_v35 = vadd.f32 %v2129_v30, %v496_v24  ;;  %v5138_v24 = vor.u32 %v6259_v7, %v5137_v6  ;;  %v6348_v39 = vld [vmem:[%s7154_s25 + $0x73c] sm:$0xf]  ;;  %v6180_v6 = vld [vmem:[%s7154_s25 + $0x1f4] sm:$0xf0] }
 0x137   : > { %2379 = vmatpush.bf16.msra.mxu1 %v5586_v43  ;;  %2405 = vmatpush.bf16.msra.mxu3 %v5590_v47  ;;  %v2141_v41 = vpop.f32.mrf.mxu2  ;;  %v6155_v43 = vld [vmem:[%s7154_s25 + $0x134] sm:$0xf]  ;;  %v5531_v40 = vld [vmem:[%s7154_s25 + $0x778] sm:$0xf0]  ;;  %v5337_v7 = vld [vmem:[%s7154_s25 + $0x5b8] sm:$0xf] }
 0x138   : > { %2488 = vst [vmem:[#allocation2 + $0x58] sm:$0xff] %v2472_v35  ;;  %v6283_v47 = vld [vmem:[%s7154_s25 + $0x534] sm:$0xf]  ;;  %v4758_v53 = vor.u32 %v6155_v43, %v4755_v44  ;;  %v4953_v44 = vld [vmem:[%s7154_s25 + $0x2b8] sm:$0xf]  ;;  %v498_v8 = vld [vmem:[#allocation2 + $0x50] sm:$0xff] }
 0x139   : > { %2367 = vmatpush.bf16.msra.mxu0 %v5010_v54  ;;  %2393 = vmatpush.bf16.msra.mxu2 %v5014_v57  ;;  %v2154_v46 = vpop.f32.mrf.mxu3  ;;  %v2117_v51 = vpop.f32.mrf.mxu0  ;;  %v4689_v54 = vld [vmem:[%s7154_s25 + $0xb0] sm:$0xf]  ;;  %v5270_v59 = vor.u32 %v6283_v47, %v5267_v48  ;;  %v5534_v47 = vor.u32 %v6348_v39, %v5531_v40  ;;  %v6340_v48 = vld [vmem:[%s7154_s25 + $0x6f4] sm:$0xf0]  ;;  %v6172_v12 = vld [vmem:[%s7154_s25 + $0x1bc] sm:$0xf] }
 0x13a   : > { %v2155_v49 = vadd.f32 %v2154_v46, %v2141_v41  ;;  %v4690_v1 = vor.u32 %v6147_v55, %v4689_v54  ;;  %v5465_v46 = vld [vmem:[%s7154_s25 + $0x6b8] sm:$0xf]  ;;  %v6332_v51 = vld [vmem:[%s7154_s25 + $0x6bc] sm:$0xf] }
 0x13b   : > { %2380 = vmatpush.bf16.msra.mxu1 %v5522_v56  ;;  %2406 = vmatpush.bf16.msra.mxu3 %v5526_v61  ;;  %v5201_v56 = vld [vmem:[%s7154_s25 + $0x4b0] sm:$0xf]  ;;  %v2130_v58 = vpop.f32.mrf.mxu1  ;;  %v6139_v61 = vld [vmem:[%s7154_s25 + $0xb4] sm:$0xf]  ;;  %v5466_v54 = vor.u32 %v6340_v48, %v5465_v46  ;;  %v6308_v11 = vld [vmem:[%s7154_s25 + $0x5f4] sm:$0xf0] }
 0x13c   : > { %v2473_v57 = vadd.f32 %v2155_v49, %v497_v45  ;;  %v6212_v45 = vld [vmem:[%s7154_s25 + $0x2f4] sm:$0xf0]  ;;  %v6204_v49 = vld [vmem:[%s7154_s25 + $0x2bc] sm:$0xf]  ;;  %v5338_v22 = vor.u32 %v6308_v11, %v5337_v7 }
 0x13d   : > { %2368 = vmatpush.bf16.msra.mxu0 %v4946_v3  ;;  %2394 = vmatpush.bf16.msra.mxu2 %v4950_v5  ;;  %v6131_v3 = vld [vmem:[%s7154_s25 + $0x6c] sm:$0xf0]  ;;  %v4694_v5 = vor.u32 %v6139_v61, %v4691_v62  ;;  %v5401_v58 = vld [vmem:[%s7154_s25 + $0x638] sm:$0xf]  ;;  %v6188_v61 = vld [vmem:[%s7154_s25 + $0x23c] sm:$0xf] }
 0x13e   : > { %2489 = vst [vmem:[#allocation2 + $0x18] sm:$0xff] %v2473_v57  ;;  %v6196_v57 = vld [vmem:[%s7154_s25 + $0x274] sm:$0xf0]  ;;  %v4891_v62 = vld [vmem:[%s7154_s25 + $0x278] sm:$0xf0] }
 0x13f   : > { %2381 = vmatpush.bf16.msra.mxu1 %v5458_v4  ;;  %2407 = vmatpush.bf16.msra.mxu3 %v5462_v9  ;;  %v5202_v4 = vor.u32 %v6275_v60, %v5201_v56  ;;  %v2143_v9 = vpop.f32.mrf.mxu2  ;;  %v4889_v56 = vld [vmem:[%s7154_s25 + $0x238] sm:$0xf]  ;;  %v4827_v13 = vld [vmem:[%s7154_s25 + $0x1f8] sm:$0xf0] }
 0x140   : > { %v6324_v60 = vld [vmem:[%s7154_s25 + $0x674] sm:$0xf0]  ;;  %v4830_v23 = vor.u32 %v6172_v12, %v4827_v13  ;;  %v4699_v48 = vld [vmem:[%s7154_s25 + $0xf8] sm:$0xf0] }
 0x141   : > { %2369 = vmatpush.bf16.msra.mxu0 %v4882_v15  ;;  %2395 = vmatpush.bf16.msra.mxu2 %v4886_v21  ;;  %v2156_v14 = vpop.f32.mrf.mxu3  ;;  %v5081_v15 = vld [vmem:[%s7154_s25 + $0x3b8] sm:$0xf] }
 0x142   : > { %v6372_v21 = vld [vmem:[%s7154_s25 + $0x7f4] sm:$0xf0]  ;;  %v5082_v29 = vor.u32 %v6244_v16, %v5081_v15  ;;  %v6300_v15 = vld [vmem:[%s7154_s25 + $0x5bc] sm:$0xf] }
 0x143   : > { %2382 = vmatpush.bf16.msra.mxu1 %v5394_v20  ;;  %2408 = vmatpush.bf16.msra.mxu3 %v5398_v26  ;;  %v4626_v20 = vor.u32 %v6131_v3, %v4625_v2  ;;  %v6364_v26 = vld [vmem:[%s7154_s25 + $0x7bc] sm:$0xf]  ;;  %v5594_v30 = vor.u32 %v6372_v21, %v5593_v19  ;;  %v4825_v2 = vld [vmem:[%s7154_s25 + $0x1b8] sm:$0xf] }
 0x144   : > { %v5598_v35 = vor.u32 %v6364_v26, %v5595_v27  ;;  %v5339_v16 = vld [vmem:[%s7154_s25 + $0x5f8] sm:$0xf0]  ;;  %v4826_v19 = vor.u32 %v6180_v6, %v4825_v2  ;;  %v6292_v26 = vld [vmem:[%s7154_s25 + $0x574] sm:$0xf0] }
 0x145   : > { %2370 = vmatpush.bf16.msra.mxu0 %v4818_v33  ;;  %2396 = vmatpush.bf16.msra.mxu2 %v4822_v37  ;;  %v6228_v33 = vld [vmem:[%s7154_s25 + $0x374] sm:$0xf0]  ;;  %v6220_v37 = vld [vmem:[%s7154_s25 + $0x33c] sm:$0xf] }
 0x146   : > { %v5018_v41 = vor.u32 %v6228_v33, %v5017_v32  ;;  %v5022_v43 = vor.u32 %v6220_v37, %v5019_v38  ;;  %v6284_v33 = vld [vmem:[%s7154_s25 + $0x53c] sm:$0xf]  ;;  %v4697_v40 = vld [vmem:[%s7154_s25 + $0xb8] sm:$0xf] }
 0x147   : > { %2383 = vmatpush.bf16.msra.mxu1 %v5330_v36  ;;  %2409 = vmatpush.bf16.msra.mxu3 %v5334_v42  ;;  %v6356_v36 = vld [vmem:[%s7154_s25 + $0x774] sm:$0xf0] }
 0x148   : > { %v5530_v42 = vor.u32 %v6356_v36, %v5529_v34  ;;  %v5275_v34 = vld [vmem:[%s7154_s25 + $0x578] sm:$0xf0]  ;;  %v6276_v46 = vld [vmem:[%s7154_s25 + $0x4f4] sm:$0xf0] }
 0x149   : > { %2371 = vmatpush.bf16.msra.mxu0 %v4754_v50  ;;  %2397 = vmatpush.bf16.msra.mxu2 %v4758_v53  ;;  %v4955_v50 = vld [vmem:[%s7154_s25 + $0x2f8] sm:$0xf0]  ;;  %v4954_v53 = vor.u32 %v6212_v45, %v4953_v44  ;;  %v5278_v45 = vor.u32 %v6284_v33, %v5275_v34 }
 0x14a   : > { %v4958_v55 = vor.u32 %v6204_v49, %v4955_v50  ;;  %v6268_v49 = vld [vmem:[%s7154_s25 + $0x4bc] sm:$0xf] }
 0x14b   : > { %2384 = vmatpush.bf16.msra.mxu1 %v5266_v52  ;;  %2410 = vmatpush.bf16.msra.mxu3 %v5270_v59  ;;  %v5467_v52 = vld [vmem:[%s7154_s25 + $0x6f8] sm:$0xf0] }
 0x14c   : > { %v5470_v59 = vor.u32 %v6332_v51, %v5467_v52  ;;  %v5211_v50 = vld [vmem:[%s7154_s25 + $0x4f8] sm:$0xf0] }
 0x14d   : > { %2372 = vmatpush.bf16.msra.mxu0 %v4690_v1  ;;  %2398 = vmatpush.bf16.msra.mxu2 %v4694_v5  ;;  %v4890_v1 = vor.u32 %v6196_v57, %v4889_v56  ;;  %v4894_v5 = vor.u32 %v6188_v61, %v4891_v62  ;;  %v5145_v56 = vld [vmem:[%s7154_s25 + $0x438] sm:$0xf]  ;;  %v4635_v61 = vld [vmem:[%s7154_s25 + $0x78] sm:$0xf0] }
 0x14e   : > { %v500_v6 = vld [vmem:[#allocation2 + $0x8] sm:$0xff]  ;;  %v504_v34 = vld [vmem:[#allocation2 + $0x10] sm:$0xff] }
 0x14f   : > { %2385 = vmatpush.bf16.msra.mxu1 %v5202_v4  ;;  %2411 = vmatpush.bf16.msra.mxu3 %v5206_v10  ;;  %v5402_v4 = vor.u32 %v6324_v60, %v5401_v58  ;;  %v5406_v10 = vor.u32 %v6316_v63, %v5403_v0  ;;  %v5214_v58 = vor.u32 %v6268_v49, %v5211_v50  ;;  %v6124_v60 = vld [vmem:[%s7154_s25 + $0x3c] sm:$0xf] }
 0x150   : > { %v6252_v63 = vld [vmem:[%s7154_s25 + $0x43c] sm:$0xf] }
 0x151   : > { %2373 = vmatpush.bf16.msra.mxu0 %v4626_v20  ;;  %2399 = vmatpush.bf16.msra.mxu2 %v4630_v25  ;;  %v2167_v3 = vpop.f32.mrf.mxu0  ;;  %v4761_v20 = vld [vmem:[%s7154_s25 + $0x138] sm:$0xf]  ;;  %v5147_v0 = vld [vmem:[%s7154_s25 + $0x478] sm:$0xf0] }
 0x152   : > { %v5273_v25 = vld [vmem:[%s7154_s25 + $0x538] sm:$0xf] }
 0x153   : > { %2386 = vmatpush.bf16.msra.mxu1 %v5138_v24  ;;  %2412 = vmatpush.bf16.msra.mxu3 %v5142_v28  ;;  %v2180_v9 = vpop.f32.mrf.mxu1  ;;  %v6164_v24 = vld [vmem:[%s7154_s25 + $0x174] sm:$0xf0]  ;;  %v5342_v28 = vor.u32 %v6300_v15, %v5339_v16  ;;  %v5274_v38 = vor.u32 %v6292_v26, %v5273_v25  ;;  %v503_v25 = vld [vmem:[#allocation2 + $0x20] sm:$0xff] }
 0x154   : > { %2400 = vmatmul.bf16.vlgmr.msra.gmra.mxu2 %v7275_v17  ;;  %2374 = vmatmul.bf16.vlgmr.msra.gmra.mxu0 %v7275_v17  ;;  %v2181_v14 = vadd.f32 %v2180_v9, %v2167_v3  ;;  %v4762_v36 = vor.u32 %v6164_v24, %v4761_v20  ;;  %v4638_v3 = vor.u32 %v6124_v60, %v4635_v61  ;;  %v501_v11 = vld [vmem:[#allocation2 + $0x48] sm:$0xff] }
 0x155   : > { %2418 = vmatpush.bf16.msrb.mxu0 %v5082_v29  ;;  %2444 = vmatpush.bf16.msrb.mxu2 %v5086_v31  ;;  %v6156_v29 = vld [vmem:[%s7154_s25 + $0x13c] sm:$0xf] }
 0x156   : > { %2413 = vmatmul.bf16.vlgmr.msra.gmra.mxu3 %v7277_v18  ;;  %2387 = vmatmul.bf16.vlgmr.msra.gmra.mxu1 %v7277_v18  ;;  %v2474_v21 = vadd.f32 %v2181_v14, %v498_v8  ;;  %v499_v31 = vld [vmem:[#allocation2 + $0x68] sm:$0xff] }
 0x157   : > { %2431 = vmatpush.bf16.msrb.mxu1 %v5594_v30  ;;  %2457 = vmatpush.bf16.msrb.mxu3 %v5598_v35  ;;  %v2193_v27 = vpop.f32.mrf.mxu2  ;;  %v4763_v30 = vld [vmem:[%s7154_s25 + $0x178] sm:$0xf0] }
 0x158   : > { %2490 = vst [vmem:[#allocation2 + $0x50] sm:$0xff] %v2474_v21  ;;  %v4766_v39 = vor.u32 %v6156_v29, %v4763_v30 }
 0x159   : > { %2419 = vmatpush.bf16.msrb.mxu0 %v5018_v41  ;;  %2445 = vmatpush.bf16.msrb.mxu2 %v5022_v43  ;;  %v2206_v32 = vpop.f32.mrf.mxu3  ;;  %v2169_v37 = vpop.f32.mrf.mxu0  ;;  %v6148_v41 = vld [vmem:[%s7154_s25 + $0xf4] sm:$0xf0] }
 0x15a   : > { %v2207_v35 = vadd.f32 %v2206_v32, %v2193_v27  ;;  %v4698_v51 = vor.u32 %v6148_v41, %v4697_v40 }
 0x15b   : > { %2432 = vmatpush.bf16.msrb.mxu1 %v5530_v42  ;;  %2458 = vmatpush.bf16.msrb.mxu3 %v5534_v47  ;;  %v5209_v42 = vld [vmem:[%s7154_s25 + $0x4b8] sm:$0xf]  ;;  %v2182_v44 = vpop.f32.mrf.mxu1  ;;  %v6140_v47 = vld [vmem:[%s7154_s25 + $0xbc] sm:$0xf] }
 0x15c   : > { %v2475_v43 = vadd.f32 %v2207_v35, %v499_v31  ;;  %v5210_v52 = vor.u32 %v6276_v46, %v5209_v42 }
 0x15d   : > { %2420 = vmatpush.bf16.msrb.mxu0 %v4954_v53  ;;  %2446 = vmatpush.bf16.msrb.mxu2 %v4958_v55  ;;  %v4702_v53 = vor.u32 %v6140_v47, %v4699_v48  ;;  %v6132_v55 = vld [vmem:[%s7154_s25 + $0x74] sm:$0xf0]  ;;  %v506_v48 = vld [vmem:[#allocation2 + $0x60] sm:$0xff] }
 0x15e   : > { %2491 = vst [vmem:[#allocation2 + $0x68] sm:$0xff] %v2475_v43 }
 0x15f   : > { %2433 = vmatpush.bf16.msrb.mxu1 %v5466_v54  ;;  %2459 = vmatpush.bf16.msrb.mxu3 %v5470_v59  ;;  %v4633_v54 = vld [vmem:[%s7154_s25 + $0x38] sm:$0xf]  ;;  %v2195_v57 = vpop.f32.mrf.mxu2 }
 0x160   : > { %v6260_v59 = vld [vmem:[%s7154_s25 + $0x474] sm:$0xf0] }
 0x161   : > { %2421 = vmatpush.bf16.msrb.mxu0 %v4890_v1  ;;  %2447 = vmatpush.bf16.msrb.mxu2 %v4894_v5  ;;  %v2208_v62 = vpop.f32.mrf.mxu3  ;;  %v4634_v1 = vor.u32 %v6132_v55, %v4633_v54  ;;  %v5146_v2 = vor.u32 %v6260_v59, %v5145_v56 }
 0x162   : > { %v508_v62 = vld [vmem:[#allocation2 + $0x78] sm:$0xff] }
 0x163   : > { %2434 = vmatpush.bf16.msrb.mxu1 %v5402_v4  ;;  %2460 = vmatpush.bf16.msrb.mxu3 %v5406_v10  ;;  %v5150_v4 = vor.u32 %v6252_v63, %v5147_v0 }
 0x165   : > { %2422 = vmatpush.bf16.msrb.mxu0 %v4826_v19  ;;  %2448 = vmatpush.bf16.msrb.mxu2 %v4830_v23 }
 0x167   : > { %2435 = vmatpush.bf16.msrb.mxu1 %v5338_v22  ;;  %2461 = vmatpush.bf16.msrb.mxu3 %v5342_v28 }
 0x169   : > { %2423 = vmatpush.bf16.msrb.mxu0 %v4762_v36  ;;  %2449 = vmatpush.bf16.msrb.mxu2 %v4766_v39  ;;  %v505_v39 = vld [vmem:[#allocation2 + $0x38] sm:$0xff] }
 0x16b   : > { %2436 = vmatpush.bf16.msrb.mxu1 %v5274_v38  ;;  %2462 = vmatpush.bf16.msrb.mxu3 %v5278_v45 }
 0x16d   : > { %2424 = vmatpush.bf16.msrb.mxu0 %v4698_v51  ;;  %2450 = vmatpush.bf16.msrb.mxu2 %v4702_v53  ;;  %v507_v53 = vld [vmem:[#allocation2 + $0x70] sm:$0xff] }
 0x16f   : > { %2437 = vmatpush.bf16.msrb.mxu1 %v5210_v52  ;;  %2463 = vmatpush.bf16.msrb.mxu3 %v5214_v58 }
 0x171   : > { %2425 = vmatpush.bf16.msrb.mxu0 %v4634_v1  ;;  %2451 = vmatpush.bf16.msrb.mxu2 %v4638_v3  ;;  %v2219_v5 = vpop.f32.mrf.mxu0  ;;  %v509_v3 = vld [vmem:[#allocation2 + $0x28] sm:$0xff] }
 0x173   : > { %2438 = vmatpush.bf16.msrb.mxu1 %v5146_v2  ;;  %2464 = vmatpush.bf16.msrb.mxu3 %v5150_v4  ;;  %v2232_v7 = vpop.f32.mrf.mxu1 }
 0x174   : > { %2426 = vmatmul.bf16.vlgmr.msrb.gmra.mxu0 %v7275_v17  ;;  %2452 = vmatmul.bf16.vlgmr.msrb.gmra.mxu2 %v7275_v17  ;;  %v2233_v8 = vadd.f32 %v2232_v7, %v2219_v5  ;;  %v502_v17 = vld [vmem:[#allocation2 + $0x40] sm:$0xff] }
 0x176   : > { %2439 = vmatmul.bf16.vlgmr.msrb.gmra.mxu1 %v7277_v18  ;;  %2465 = vmatmul.bf16.vlgmr.msrb.gmra.mxu3 %v7277_v18  ;;  %v2476_v9 = vadd.f32 %v2233_v8, %v500_v6 }
 0x177   : > { %v2245_v10 = vpop.f32.mrf.mxu2 }
 0x178   : > { %2492 = vst [vmem:[#allocation2 + $0x8] sm:$0xff] %v2476_v9 }
 0x179   : > { %v2258_v12 = vpop.f32.mrf.mxu3  ;;  %v2221_v14 = vpop.f32.mrf.mxu0 }
 0x17a   : > { %v2259_v13 = vadd.f32 %v2258_v12, %v2245_v10 }
 0x17b   : > { %v2234_v16 = vpop.f32.mrf.mxu1 }
 0x17c   : > { %v2477_v15 = vadd.f32 %v2259_v13, %v501_v11 }
 0x17e   : > { %2493 = vst [vmem:[#allocation2 + $0x48] sm:$0xff] %v2477_v15 }
 0x17f   : > { %v2247_v19 = vpop.f32.mrf.mxu2 }
 0x181   : > { %v2260_v20 = vpop.f32.mrf.mxu3 }
 0x191   : > { %v2271_v21 = vpop.f32.mrf.mxu0 }
 0x193   : > { %v2284_v22 = vpop.f32.mrf.mxu1 }
 0x194   : > { %v2285_v18 = vadd.f32 %v2284_v22, %v2271_v21 }
 0x196   : > { %v2478_v23 = vadd.f32 %v2285_v18, %v502_v17 }
 0x197   : > { %v2297_v24 = vpop.f32.mrf.mxu2 }
 0x198   : > { %2494 = vst [vmem:[#allocation2 + $0x40] sm:$0xff] %v2478_v23 }
 0x199   : > { %v2310_v26 = vpop.f32.mrf.mxu3  ;;  %v2273_v28 = vpop.f32.mrf.mxu0 }
 0x19a   : > { %v2311_v27 = vadd.f32 %v2310_v26, %v2297_v24 }
 0x19b   : > { %v2286_v30 = vpop.f32.mrf.mxu1 }
 0x19c   : > { %v2479_v29 = vadd.f32 %v2311_v27, %v503_v25 }
 0x19e   : > { %2495 = vst [vmem:[#allocation2 + $0x20] sm:$0xff] %v2479_v29 }
 0x19f   : > { %v2299_v31 = vpop.f32.mrf.mxu2 }
 0x1a1   : > { %v2312_v32 = vpop.f32.mrf.mxu3 }
 0x1b1   : > { %v2323_v33 = vpop.f32.mrf.mxu0 }
 0x1b3   : > { %v2336_v35 = vpop.f32.mrf.mxu1 }
 0x1b4   : > { %v2337_v36 = vadd.f32 %v2336_v35, %v2323_v33 }
 0x1b6   : > { %v2480_v37 = vadd.f32 %v2337_v36, %v504_v34 }
 0x1b7   : > { %v2349_v38 = vpop.f32.mrf.mxu2 }
 0x1b8   : > { %2496 = vst [vmem:[#allocation2 + $0x10] sm:$0xff] %v2480_v37 }
 0x1b9   : > { %v2362_v40 = vpop.f32.mrf.mxu3  ;;  %v2325_v42 = vpop.f32.mrf.mxu0 }
 0x1ba   : > { %v2363_v41 = vadd.f32 %v2362_v40, %v2349_v38 }
 0x1bb   : > { %v2338_v44 = vpop.f32.mrf.mxu1 }
 0x1bc   : > { %v2481_v43 = vadd.f32 %v2363_v41, %v505_v39 }
 0x1be   : > { %2497 = vst [vmem:[#allocation2 + $0x38] sm:$0xff] %v2481_v43 }
 0x1bf   : > { %v2351_v45 = vpop.f32.mrf.mxu2 }
 0x1c1   : > { %v2364_v46 = vpop.f32.mrf.mxu3 }
 0x1d1   : > { %v2375_v47 = vpop.f32.mrf.mxu0 }
 0x1d3   : > { %v2388_v49 = vpop.f32.mrf.mxu1 }
 0x1d4   : > { %v2389_v50 = vadd.f32 %v2388_v49, %v2375_v47 }
 0x1d6   : > { %v2482_v51 = vadd.f32 %v2389_v50, %v506_v48 }
 0x1d7   : > { %v2401_v52 = vpop.f32.mrf.mxu2 }
 0x1d8   : > { %2498 = vst [vmem:[#allocation2 + $0x60] sm:$0xff] %v2482_v51 }
 0x1d9   : > { %v2414_v54 = vpop.f32.mrf.mxu3  ;;  %v2377_v56 = vpop.f32.mrf.mxu0 }
 0x1da   : > { %v2415_v55 = vadd.f32 %v2414_v54, %v2401_v52 }
 0x1db   : > { %v2390_v58 = vpop.f32.mrf.mxu1 }
 0x1dc   : > { %v2483_v57 = vadd.f32 %v2415_v55, %v507_v53 }
 0x1de   : > { %2499 = vst [vmem:[#allocation2 + $0x70] sm:$0xff] %v2483_v57 }
 0x1df   : > { %v2403_v59 = vpop.f32.mrf.mxu2 }
 0x1e1   : > { %v2416_v60 = vpop.f32.mrf.mxu3 }
 0x1f1   : > { %v2427_v61 = vpop.f32.mrf.mxu0 }
 0x1f3   : > { %v2440_v63 = vpop.f32.mrf.mxu1 }
 0x1f4   : > { %v2441_v0 = vadd.f32 %v2440_v63, %v2427_v61 }
 0x1f6   : > { %v2484_v1 = vadd.f32 %v2441_v0, %v508_v62 }
 0x1f7   : > { %v2453_v2 = vpop.f32.mrf.mxu2 }
 0x1f8   : > { %2500 = vst [vmem:[#allocation2 + $0x78] sm:$0xff] %v2484_v1 }
 0x1f9   : > { %v2466_v4 = vpop.f32.mrf.mxu3  ;;  %v2429_v5 = vpop.f32.mrf.mxu0 }
 0x1fa   : > { %v2467_v6 = vadd.f32 %v2466_v4, %v2453_v2 }
 0x1fb   : > { %v2442_v7 = vpop.f32.mrf.mxu1 }
 0x1fc   : > { %v2485_v8 = vadd.f32 %v2467_v6, %v509_v3 }
 0x1fd   : > { %2505 = sbr.rel (%p5599_p1) target bundleno = 1036 (0x40c), region = 96 }
 0x1fe   : > { %2501 = vst [vmem:[#allocation2 + $0x28] sm:$0xff] %v2485_v8 }
 0x1ff   : > { %v2455_v9 = vpop.f32.mrf.mxu2 }
 0x201   : > { %v2468_v10 = vpop.f32.mrf.mxu3 }
 0x202   : > { %v6380_v11 = vld [vmem:[#allocation11 + $0x38] sm:$0xff]  ;;  %v6379_v15 = vld [vmem:[#allocation11 + $0x30] sm:$0xff]  ;;  %v6378_v21 = vld [vmem:[#allocation11 + $0x28] sm:$0xff] }
 0x203   : > { %v6388_v12 = vld [vmem:[#allocation11 + $0x78] sm:$0xff]  ;;  %4169 = vmatpush.bf16.msra.mxu0 %v6380_v11  ;;  %v6387_v16 = vld [vmem:[#allocation11 + $0x70] sm:$0xff]  ;;  %v6386_v17 = vld [vmem:[#allocation11 + $0x68] sm:$0xff] }
 0x204   : > { %v6396_v13 = vld [vmem:[#allocation11 + $0xb8] sm:$0xff]  ;;  %4182 = vmatpush.bf16.msra.mxu1 %v6388_v12  ;;  %v6395_v19 = vld [vmem:[#allocation11 + $0xb0] sm:$0xff]  ;;  %v6394_v22 = vld [vmem:[#allocation11 + $0xa8] sm:$0xff] }
 0x205   : > { %v6404_v14 = vld [vmem:[#allocation11 + $0xf8] sm:$0xff]  ;;  %4195 = vmatpush.bf16.msra.mxu2 %v6396_v13  ;;  %v6403_v20 = vld [vmem:[#allocation11 + $0xf0] sm:$0xff]  ;;  %v6402_v18 = vld [vmem:[#allocation11 + $0xe8] sm:$0xff] }
 0x206   : > { %4208 = vmatpush.bf16.msra.mxu3 %v6404_v14  ;;  %v6377_v23 = vld [vmem:[#allocation11 + $0x20] sm:$0xff]  ;;  %v6376_v27 = vld [vmem:[#allocation11 + $0x18] sm:$0xff]  ;;  %v6375_v31 = vld [vmem:[#allocation11 + $0x10] sm:$0xff] }
 0x207   : > { %4170 = vmatpush.bf16.msra.mxu0 %v6379_v15  ;;  %v6385_v24 = vld [vmem:[#allocation11 + $0x60] sm:$0xff]  ;;  %v6384_v28 = vld [vmem:[#allocation11 + $0x58] sm:$0xff]  ;;  %v6383_v32 = vld [vmem:[#allocation11 + $0x50] sm:$0xff] }
 0x208   : > { %4183 = vmatpush.bf16.msra.mxu1 %v6387_v16  ;;  %v6393_v25 = vld [vmem:[#allocation11 + $0xa0] sm:$0xff]  ;;  %v6392_v29 = vld [vmem:[#allocation11 + $0x98] sm:$0xff]  ;;  %v7730_v34 = vld [vmem:[#allocation2] sm:$0xff] }
 0x209   : > { %4196 = vmatpush.bf16.msra.mxu2 %v6395_v19  ;;  %v6401_v26 = vld [vmem:[#allocation11 + $0xe0] sm:$0xff]  ;;  %v6400_v30 = vld [vmem:[#allocation11 + $0xd8] sm:$0xff]  ;;  %v6391_v38 = vld [vmem:[#allocation11 + $0x90] sm:$0xff]  ;;  %v2528_v40 = vrot.slane %v7730_v34, 4 }
 0x20a   : > { %4209 = vmatpush.bf16.msra.mxu3 %v6403_v20  ;;  %v7728_v33 = vld [vmem:[#allocation2 + $0x30] sm:$0xff]  ;;  %v7732_v35 = vld [vmem:[#allocation2 + $0x58] sm:$0xff]  ;;  %v6399_v39 = vld [vmem:[#allocation11 + $0xd0] sm:$0xff] }
 0x20b   : > { %4171 = vmatpush.bf16.msra.mxu0 %v6378_v21  ;;  %v7734_v36 = vld [vmem:[#allocation2 + $0x18] sm:$0xff]  ;;  %v2522_v37 = vrot.slane %v7728_v33, 4  ;;  %v2534_v41 = vrot.slane %v7732_v35, 4  ;;  %v7740_v43 = vld [vmem:[#allocation2 + $0x50] sm:$0xff]  ;;  %v7742_v44 = vld [vmem:[#allocation2 + $0x68] sm:$0xff]  ;;  %v2529_v48 = vadd.f32 %v2528_v40, %v7730_v34 }
 0x20c   : > { %4184 = vmatpush.bf16.msra.mxu1 %v6386_v17  ;;  %v2540_v42 = vrot.slane %v7734_v36, 4  ;;  %v7744_v45 = vld [vmem:[#allocation2 + $0x8] sm:$0xff]  ;;  %v2546_v51 = vrot.slane %v7740_v43, 4  ;;  %v6374_v52 = vld [vmem:[#allocation11 + $0x8] sm:$0xff]  ;;  %v2552_v55 = vrot.slane %v7742_v44, 4  ;;  %v6373_v4 = vld [vmem:[#allocation11] sm:$0xff] }
 0x20d   : > { %4197 = vmatpush.bf16.msra.mxu2 %v6394_v22  ;;  %v2523_v46 = vadd.f32 %v2522_v37, %v7728_v33  ;;  %v7747_v47 = vld [vmem:[#allocation2 + $0x48] sm:$0xff]  ;;  %v2535_v49 = vadd.f32 %v2534_v41, %v7732_v35  ;;  %v6382_v53 = vld [vmem:[#allocation11 + $0x48] sm:$0xff]  ;;  %v2558_v56 = vrot.slane %v7744_v45, 4  ;;  %v2530_v59 = vrot.slane %v2529_v48, 2  ;;  %v6381_v5 = vld [vmem:[#allocation11 + $0x40] sm:$0xff] }
 0x20e   : > { %4210 = vmatpush.bf16.msra.mxu3 %v6402_v18  ;;  %v2541_v50 = vadd.f32 %v2540_v42, %v7734_v36  ;;  %v6390_v57 = vld [vmem:[#allocation11 + $0x88] sm:$0xff]  ;;  %v2547_v62 = vadd.f32 %v2546_v51, %v7740_v43  ;;  %v2553_v0 = vadd.f32 %v2552_v55, %v7742_v44  ;;  %v2564_v2 = vrot.slane %v7747_v47, 4  ;;  %v6389_v6 = vld [vmem:[#allocation11 + $0x80] sm:$0xff]  ;;  %v6412_v11 = vld [vmem:[#allocation11 + $0x138] sm:$0xff] }
 0x20f   : > { %4172 = vmatpush.bf16.msra.mxu0 %v6377_v23  ;;  %v2524_v54 = vrot.slane %v2523_v46, 2  ;;  %v6398_v58 = vld [vmem:[#allocation11 + $0xc8] sm:$0xff]  ;;  %v2536_v60 = vrot.slane %v2535_v49, 2  ;;  %v2559_v1 = vadd.f32 %v2558_v56, %v7744_v45  ;;  %v6397_v10 = vld [vmem:[#allocation11 + $0xc0] sm:$0xff]  ;;  %v6420_v12 = vld [vmem:[#allocation11 + $0x178] sm:$0xff]  ;;  %v2531_v13 = vadd.f32 %v2530_v59, %v2529_v48 }
 0x210   : > { %4185 = vmatpush.bf16.msra.mxu1 %v6385_v24  ;;  %v2542_v61 = vrot.slane %v2541_v50, 2  ;;  %v2548_v3 = vrot.slane %v2547_v62, 2  ;;  %v2554_v7 = vrot.slane %v2553_v0, 2  ;;  %v2565_v9 = vadd.f32 %v2564_v2, %v7747_v47  ;;  %v7760_v15 = vld [vmem:[#allocation2 + $0x10] sm:$0xff]  ;;  %v7762_v16 = vld [vmem:[#allocation2 + $0x60] sm:$0xff] }
 0x211   : > { %4198 = vmatpush.bf16.msra.mxu2 %v6393_v25  ;;  %v2525_v63 = vadd.f32 %v2524_v54, %v2523_v46  ;;  %v2560_v8 = vrot.slane %v2559_v1, 2  ;;  %v2537_v14 = vadd.f32 %v2536_v60, %v2535_v49  ;;  %v7764_v19 = vld [vmem:[#allocation2 + $0x70] sm:$0xff]  ;;  %v7766_v25 = vld [vmem:[#allocation2 + $0x78] sm:$0xff]  ;;  %v6427_v48 = vld [vmem:[#allocation11 + $0x1b0] sm:$0xff] }
 0x212   : > { %4211 = vmatpush.bf16.msra.mxu3 %v6401_v26  ;;  %v2543_v21 = vadd.f32 %v2542_v61, %v2541_v50  ;;  %v2549_v17 = vadd.f32 %v2548_v3, %v2547_v62  ;;  %v2566_v22 = vrot.slane %v2565_v9, 2  ;;  %v6428_v18 = vld [vmem:[#allocation11 + $0x1b8] sm:$0xff]  ;;  %v2555_v24 = vadd.f32 %v2554_v7, %v2553_v0  ;;  %v6435_v49 = vld [vmem:[#allocation11 + $0x1f0] sm:$0xff]  ;;  %v6410_v62 = vld [vmem:[#allocation11 + $0x128] sm:$0xff] }
 0x213   : > { %4173 = vmatpush.bf16.msra.mxu0 %v6376_v27  ;;  %v2526_v20 = vrot.slane %v2525_v63, 1  ;;  %v6436_v23 = vld [vmem:[#allocation11 + $0x1f8] sm:$0xff]  ;;  %v2561_v26 = vadd.f32 %v2560_v8, %v2559_v1  ;;  %v2600_v37 = vrot.slane %v7764_v19, 4  ;;  %v2538_v41 = vrot.slane %v2537_v14, 1  ;;  %v6426_v3 = vld [vmem:[#allocation11 + $0x1a8] sm:$0xff] }
 0x214   : > { %4186 = vmatpush.bf16.msra.mxu1 %v6384_v28  ;;  %v2567_v27 = vadd.f32 %v2566_v22, %v2565_v9  ;;  %v7768_v28 = vld [vmem:[#allocation2 + $0x38] sm:$0xff]  ;;  %v2544_v42 = vrot.slane %v2543_v21, 1  ;;  %v2550_v46 = vrot.slane %v2549_v17, 1  ;;  %v2556_v50 = vrot.slane %v2555_v24, 1 }
 0x215   : > { %4199 = vmatpush.bf16.msra.mxu2 %v6392_v29  ;;  %v7770_v29 = vld [vmem:[#allocation2 + $0x28] sm:$0xff]  ;;  %v2527_v40 = vadd.f32 %v2526_v20, %v2525_v63  ;;  %v2562_v54 = vrot.slane %v2561_v26, 1  ;;  %v2588_v56 = vrot.slane %v7768_v28, 4  ;;  %v6418_v63 = vld [vmem:[#allocation11 + $0x168] sm:$0xff]  ;;  %v2539_v1 = vadd.f32 %v2538_v41, %v2537_v14  ;;  %v6409_v14 = vld [vmem:[#allocation11 + $0x120] sm:$0xff] }
 0x216   : > { %4212 = vmatpush.bf16.msra.mxu3 %v6400_v30  ;;  %v2532_v30 = vrot.slane %v2531_v13, 1  ;;  %v2568_v55 = vrot.slane %v2567_v27, 1  ;;  %v2557_v7 = vadd.f32 %v2556_v50, %v2555_v24  ;;  %v6408_v50 = vld [vmem:[#allocation11 + $0x118] sm:$0xff] }
 0x217   : > { %4174 = vmatpush.bf16.msra.mxu0 %v6375_v31  ;;  %v2582_v31 = vrot.slane %v7760_v15, 4  ;;  %v2563_v9 = vadd.f32 %v2562_v54, %v2561_v26  ;;  %v2620_v24 = vmul.f32 0.125, %v2539_v1  ;;  %v6424_v54 = vld [vmem:[#allocation11 + $0x198] sm:$0xff] }
 0x218   : > { %4187 = vmatpush.bf16.msra.mxu1 %v6383_v32  ;;  %v2594_v32 = vrot.slane %v7762_v16, 4  ;;  %v2533_v0 = vadd.f32 %v2532_v30, %v2531_v13 }
 0x219   : > { %4200 = vmatpush.bf16.msra.mxu2 %v6391_v38  ;;  %v6411_v38 = vld [vmem:[#allocation11 + $0x130] sm:$0xff] }
 0x21a   : > { %4213 = vmatpush.bf16.msra.mxu3 %v6399_v39  ;;  %v6419_v39 = vld [vmem:[#allocation11 + $0x170] sm:$0xff]  ;;  %v2595_v51 = vadd.f32 %v2594_v32, %v7762_v16  ;;  %v2619_v32 = vmul.f32 0.125, %v2533_v0 }
 0x21b   : > { %4175 = vmatpush.bf16.msra.mxu0 %v6374_v52  ;;  %v2601_v52 = vadd.f32 %v2600_v37, %v7764_v19 }
 0x21c   : > { %4188 = vmatpush.bf16.msra.mxu1 %v6382_v53  ;;  %v2606_v53 = vrot.slane %v7766_v25, 4  ;;  %v2596_v59 = vrot.slane %v2595_v51, 2 }
 0x21d   : > { %4201 = vmatpush.bf16.msra.mxu2 %v6390_v57  ;;  %v2612_v57 = vrot.slane %v7770_v29, 4  ;;  %v2602_v60 = vrot.slane %v2601_v52, 2 }
 0x21e   : > { %4214 = vmatpush.bf16.msra.mxu3 %v6398_v58  ;;  %v2583_v58 = vadd.f32 %v2582_v31, %v7760_v15  ;;  %v2607_v61 = vadd.f32 %v2606_v53, %v7766_v25  ;;  %v2597_v22 = vadd.f32 %v2596_v59, %v2595_v51  ;;  %v2618_v31 = vmul.f32 0.125, %v2527_v40  ;;  %v6416_v40 = vld [vmem:[#allocation11 + $0x158] sm:$0xff] }
 0x21f   : > { %4176 = vmatpush.bf16.msra.mxu0 %v6373_v4  ;;  %v2613_v2 = vadd.f32 %v2612_v57, %v7770_v29  ;;  %v6434_v4 = vld [vmem:[#allocation11 + $0x1e8] sm:$0xff]  ;;  %v7788_v53 = vsub.f32 %v7730_v34, %v2619_v32 }
 0x220   : > { %4189 = vmatpush.bf16.msra.mxu1 %v6381_v5  ;;  %v2545_v5 = vadd.f32 %v2544_v42, %v2543_v21  ;;  %v2608_v8 = vrot.slane %v2607_v61, 2  ;;  %v2584_v20 = vrot.slane %v2583_v58, 2  ;;  %v6425_v21 = vld [vmem:[#allocation11 + $0x1a0] sm:$0xff] }
 0x221   : > { %4202 = vmatpush.bf16.msra.mxu2 %v6389_v6  ;;  %v2551_v6 = vadd.f32 %v2550_v46, %v2549_v17  ;;  %v6433_v17 = vld [vmem:[#allocation11 + $0x1e0] sm:$0xff]  ;;  %v2598_v46 = vrot.slane %v2597_v22, 1 }
 0x222   : > { %4215 = vmatpush.bf16.msra.mxu3 %v6397_v10  ;;  %v2569_v10 = vadd.f32 %v2568_v55, %v2567_v27  ;;  %v2609_v13 = vadd.f32 %v2608_v8, %v2607_v61  ;;  %v2621_v26 = vmul.f32 0.125, %v2545_v5  ;;  %v2585_v42 = vadd.f32 %v2584_v20, %v2583_v58  ;;  %v6432_v55 = vld [vmem:[#allocation11 + $0x1d8] sm:$0xff]  ;;  %v6406_v20 = vld [vmem:[#allocation11 + $0x108] sm:$0xff] }
 0x223   : > { %4221 = vmatpush.bf16.msrb.mxu0 %v6412_v11  ;;  %v2589_v11 = vadd.f32 %v2588_v56, %v7768_v28  ;;  %v2622_v27 = vmul.f32 0.125, %v2551_v6  ;;  %v7791_v56 = vsub.f32 %v7732_v35, %v2620_v24  ;;  %v2599_v35 = vadd.f32 %v2598_v46, %v2597_v22  ;;  %v6414_v22 = vld [vmem:[#allocation11 + $0x148] sm:$0xff] }
 0x224   : > { %4234 = vmatpush.bf16.msrb.mxu1 %v6420_v12  ;;  %v2614_v12 = vrot.slane %v2613_v2, 2  ;;  %v2625_v41 = vmul.f32 0.125, %v2569_v10  ;;  %v7794_v57 = vsub.f32 %v7734_v36, %v2621_v26  ;;  %v2586_v61 = vrot.slane %v2585_v42, 1  ;;  %v6407_v36 = vld [vmem:[#allocation11 + $0x110] sm:$0xff] }
 0x225   : > { %4247 = vmatpush.bf16.msrb.mxu2 %v6428_v18  ;;  %v2603_v18 = vadd.f32 %v2602_v60, %v2601_v52  ;;  %v2590_v37 = vrot.slane %v2589_v11, 2  ;;  %v7785_v52 = vsub.f32 %v7728_v33, %v2618_v31  ;;  %v7797_v58 = vsub.f32 %v7740_v43, %v2622_v27  ;;  %v6415_v43 = vld [vmem:[#allocation11 + $0x150] sm:$0xff]  ;;  %v6430_v31 = vld [vmem:[#allocation11 + $0x1c8] sm:$0xff] }
 0x226   : > { %4260 = vmatpush.bf16.msrb.mxu3 %v6436_v23  ;;  %v6417_v23 = vld [vmem:[#allocation11 + $0x160] sm:$0xff]  ;;  %v2615_v30 = vadd.f32 %v2614_v12, %v2613_v2  ;;  %v7808_v60 = vsub.f32 %v7747_v47, %v2625_v41  ;;  %v6431_v47 = vld [vmem:[#allocation11 + $0x1d0] sm:$0xff]  ;;  %v2652_v2 = vmul.f32 %v7791_v56, %v7791_v56  ;;  %v2630_v10 = vmul.f32 0.125, %v2599_v35 }
 0x227   : > { %4222 = vmatpush.bf16.msrb.mxu0 %v6411_v38  ;;  %v2623_v38 = vmul.f32 0.125, %v2557_v7  ;;  %v7799_v59 = vadd.f32 %v2590_v37, %v2589_v11  ;;  %v2650_v1 = vmul.f32 %v7785_v52, %v7785_v52 }
 0x228   : > { %4235 = vmatpush.bf16.msrb.mxu1 %v6419_v39  ;;  %v2624_v39 = vmul.f32 0.125, %v2563_v9  ;;  %v2616_v51 = vrot.slane %v2615_v30, 1  ;;  %v2657_v8 = vmul.f32 %v7808_v60, %v7808_v60  ;;  %v2587_v9 = vadd.f32 %v2586_v61, %v2585_v42  ;;  %v6429_v61 = vld [vmem:[#allocation11 + $0x1c0] sm:$0xff] }
 0x229   : > { %4248 = vmatpush.bf16.msrb.mxu2 %v6427_v48  ;;  %v2604_v48 = vrot.slane %v2603_v18, 1  ;;  %v7802_v33 = vsub.f32 %v7742_v44, %v2623_v38  ;;  %v2651_v44 = vmul.f32 %v7788_v53, %v7788_v53  ;;  %v2592_v5 = vrot.slane %v7799_v59, 1 }
 0x22a   : > { %4261 = vmatpush.bf16.msrb.mxu3 %v6435_v49  ;;  %v2610_v49 = vrot.slane %v2609_v13, 1  ;;  %v7805_v34 = vsub.f32 %v7744_v45, %v2624_v39  ;;  %v2617_v0 = vadd.f32 %v2616_v51, %v2615_v30  ;;  %v6423_v45 = vld [vmem:[#allocation11 + $0x190] sm:$0xff]  ;;  %v6422_v30 = vld [vmem:[#allocation11 + $0x188] sm:$0xff]  ;;  %v2708_v38 = vrot.slane %v2657_v8, 4 }
 0x22b   : > { %4223 = vmatpush.bf16.msrb.mxu0 %v6410_v62  ;;  %v2605_v62 = vadd.f32 %v2604_v48, %v2603_v18  ;;  %v2655_v6 = vmul.f32 %v7802_v33, %v7802_v33  ;;  %v7828_v39 = vsub.f32 %v7762_v16, %v2630_v10  ;;  %v6405_v48 = vld [vmem:[#allocation11 + $0x100] sm:$0xff] }
 0x22c   : > { %4236 = vmatpush.bf16.msrb.mxu1 %v6418_v63  ;;  %v2611_v63 = vadd.f32 %v2610_v49, %v2609_v13  ;;  %v2656_v7 = vmul.f32 %v7805_v34, %v7805_v34  ;;  %v2633_v18 = vmul.f32 0.125, %v2617_v0  ;;  %v2666_v13 = vrot.slane %v2650_v1, 4  ;;  %v6413_v49 = vld [vmem:[#allocation11 + $0x140] sm:$0xff] }
 0x22d   : > { %4249 = vmatpush.bf16.msrb.mxu2 %v6426_v3  ;;  %v2653_v3 = vmul.f32 %v7794_v57, %v7794_v57  ;;  %v2631_v11 = vmul.f32 0.125, %v2605_v62  ;;  %v2628_v0 = vmul.f32 0.125, %v2587_v9 }
 0x22e   : > { %4262 = vmatpush.bf16.msrb.mxu3 %v6434_v4  ;;  %v2654_v4 = vmul.f32 %v7797_v58, %v7797_v58  ;;  %v2632_v12 = vmul.f32 0.125, %v2611_v63  ;;  %v2702_v24 = vrot.slane %v2656_v7, 4  ;;  %v2667_v26 = vadd.f32 %v2666_v13, %v2650_v1 }
 0x22f   : > { %4224 = vmatpush.bf16.msrb.mxu0 %v6409_v14  ;;  %v2672_v14 = vrot.slane %v2651_v44, 4  ;;  %v2684_v32 = vrot.slane %v2653_v3, 4  ;;  %v7831_v41 = vsub.f32 %v7764_v19, %v2631_v11  ;;  %v7837_v19 = vsub.f32 %v7770_v29, %v2633_v18 }
 0x230   : > { %4237 = vmatpush.bf16.msrb.mxu1 %v6417_v23  ;;  %v2678_v23 = vrot.slane %v2652_v2, 4  ;;  %v7834_v16 = vsub.f32 %v7766_v25, %v2632_v12  ;;  %v2662_v1 = vmul.f32 %v7828_v39, %v7828_v39 }
 0x231   : > { %4250 = vmatpush.bf16.msrb.mxu2 %v6425_v21  ;;  %v2690_v21 = vrot.slane %v2654_v4, 4  ;;  %v2673_v27 = vadd.f32 %v2672_v14, %v2651_v44  ;;  %v2685_v42 = vadd.f32 %v2684_v32, %v2653_v3  ;;  %v2663_v25 = vmul.f32 %v7831_v41, %v7831_v41 }
 0x232   : > { %4263 = vmatpush.bf16.msrb.mxu3 %v6433_v17  ;;  %v2696_v17 = vrot.slane %v2655_v6, 4  ;;  %v2679_v37 = vadd.f32 %v2678_v23, %v2652_v2  ;;  %v2664_v2 = vmul.f32 %v7834_v16, %v7834_v16 }
 0x233   : > { %4225 = vmatpush.bf16.msrb.mxu0 %v6408_v50  ;;  %v2691_v46 = vadd.f32 %v2690_v21, %v2654_v4  ;;  %v2668_v50 = vrot.slane %v2667_v26, 2  ;;  %v2686_v63 = vrot.slane %v2685_v42, 2  ;;  %v2744_v18 = vrot.slane %v2663_v25, 4 }
 0x234   : > { %4238 = vmatpush.bf16.msrb.mxu1 %v6416_v40  ;;  %v2674_v40 = vrot.slane %v2673_v27, 2  ;;  %v2697_v51 = vadd.f32 %v2696_v17, %v2655_v6  ;;  %v2680_v35 = vrot.slane %v2679_v37, 2  ;;  %v2750_v13 = vrot.slane %v2664_v2, 4 }
 0x235   : > { %4251 = vmatpush.bf16.msrb.mxu2 %v6424_v54  ;;  %v2703_v54 = vadd.f32 %v2702_v24, %v2656_v7  ;;  %v2669_v62 = vadd.f32 %v2668_v50, %v2667_v26  ;;  %v2692_v44 = vrot.slane %v2691_v46, 2  ;;  %v2745_v17 = vadd.f32 %v2744_v18, %v2663_v25 }
 0x236   : > { %4264 = vmatpush.bf16.msrb.mxu3 %v6432_v55  ;;  %v6421_v55 = vld [vmem:[#allocation11 + $0x180] sm:$0xff]  ;;  %v2681_v3 = vadd.f32 %v2680_v35, %v2679_v37  ;;  %v2751_v24 = vadd.f32 %v2750_v13, %v2664_v2 }
 0x237   : > { %4226 = vmatpush.bf16.msrb.mxu0 %v6407_v36  ;;  %v2709_v36 = vadd.f32 %v2708_v38, %v2657_v8  ;;  %v2704_v29 = vrot.slane %v2703_v54, 2  ;;  %v2670_v4 = vrot.slane %v2669_v62, 1  ;;  %v7849_v8 = vsub.f32 %v7760_v15, %v2628_v0 }
 0x238   : > { %4239 = vmatpush.bf16.msrb.mxu1 %v6415_v43  ;;  %v2593_v43 = vadd.f32 %v2592_v5, %v7799_v59  ;;  %v2665_v59 = vmul.f32 %v7837_v19, %v7837_v19  ;;  %v2687_v5 = vadd.f32 %v2686_v63, %v2685_v42  ;;  %v2693_v9 = vadd.f32 %v2692_v44, %v2691_v46 }
 0x239   : > { %4252 = vmatpush.bf16.msrb.mxu2 %v6423_v45  ;;  %v2675_v45 = vadd.f32 %v2674_v40, %v2673_v27  ;;  %v2710_v6 = vrot.slane %v2709_v36, 2  ;;  %v2705_v12 = vadd.f32 %v2704_v29, %v2703_v54  ;;  %v2671_v23 = vadd.f32 %v2670_v4, %v2669_v62 }
 0x23a   : > { %4265 = vmatpush.bf16.msrb.mxu3 %v6431_v47  ;;  %v2698_v47 = vrot.slane %v2697_v51, 2  ;;  %v2629_v7 = vmul.f32 0.125, %v2593_v43  ;;  %v2756_v14 = vrot.slane %v2665_v59, 4  ;;  %v2694_v21 = vrot.slane %v2693_v9, 1 }
 0x23b   : > { %4227 = vmatpush.bf16.msrb.mxu0 %v6406_v20  ;;  %v2676_v10 = vrot.slane %v2675_v45, 1  ;;  %v2738_v20 = vrot.slane %v2662_v1, 4  ;;  %v2706_v37 = vrot.slane %v2705_v12, 1  ;;  %v2746_v46 = vrot.slane %v2745_v17, 2 }
 0x23c   : > { %4240 = vmatpush.bf16.msrb.mxu1 %v6414_v22  ;;  %v2699_v11 = vadd.f32 %v2698_v47, %v2697_v51  ;;  %v2682_v22 = vrot.slane %v2681_v3, 1  ;;  %v2757_v26 = vadd.f32 %v2756_v14, %v2665_v59  ;;  %v7852_v50 = vsub.f32 %v7768_v28, %v2629_v7 }
 0x23d   : > { %4253 = vmatpush.bf16.msrb.mxu2 %v6422_v30  ;;  %v2688_v30 = vrot.slane %v2687_v5, 1  ;;  %v2739_v32 = vadd.f32 %v2738_v20, %v2662_v1  ;;  %v2677_v27 = vadd.f32 %v2676_v10, %v2675_v45  ;;  %v2762_v54 = vmul.f32 0.125, %v2671_v23 }
 0x23e   : > { %4266 = vmatpush.bf16.msrb.mxu3 %v6430_v31  ;;  %v2711_v31 = vadd.f32 %v2710_v6, %v2709_v36  ;;  %v2700_v15 = vrot.slane %v2699_v11, 1  ;;  %v2683_v42 = vadd.f32 %v2682_v22, %v2681_v3  ;;  %v2747_v35 = vadd.f32 %v2746_v46, %v2745_v17 }
 0x23f   : > { %4228 = vmatpush.bf16.msrb.mxu0 %v6405_v48  ;;  %v2740_v38 = vrot.slane %v2739_v32, 2  ;;  %v2752_v48 = vrot.slane %v2751_v24, 2  ;;  %v2689_v40 = vadd.f32 %v2688_v30, %v2687_v5  ;;  %v2763_v43 = vmul.f32 0.125, %v2677_v27 }
 0x240   : > { %4241 = vmatpush.bf16.msrb.mxu1 %v6413_v49  ;;  %v2758_v49 = vrot.slane %v2757_v26, 2  ;;  %v2701_v63 = vadd.f32 %v2700_v15, %v2699_v11  ;;  %v2660_v0 = vmul.f32 %v7849_v8, %v7849_v8  ;;  %v2707_v1 = vadd.f32 %v2706_v37, %v2705_v12 }
 0x241   : > { %4254 = vmatpush.bf16.msrb.mxu2 %v6421_v55  ;;  %v2741_v51 = vadd.f32 %v2740_v38, %v2739_v32  ;;  %v2695_v55 = vadd.f32 %v2694_v21, %v2693_v9  ;;  %v2753_v62 = vadd.f32 %v2752_v48, %v2751_v24  ;;  %v2764_v44 = vmul.f32 0.125, %v2683_v42 }
 0x242   : > { %4267 = vmatpush.bf16.msrb.mxu3 %v6429_v61  ;;  %v2712_v61 = vrot.slane %v2711_v31, 1  ;;  %v2759_v36 = vadd.f32 %v2758_v49, %v2757_v26  ;;  %v2661_v25 = vmul.f32 %v7852_v50, %v7852_v50  ;;  %v2765_v45 = vmul.f32 0.125, %v2689_v40 }
 0x243   : > { %v2742_v28 = vrot.slane %v2741_v51, 1  ;;  %v7858_v47 = vadd.f32 1e-05, %v2762_v54  ;;  %v2748_v2 = vrot.slane %v2747_v35, 1  ;;  %v2754_v59 = vrot.slane %v2753_v62, 1 }
 0x244   : > { %v2713_v29 = vadd.f32 %v2712_v61, %v2711_v31  ;;  %v2766_v3 = vmul.f32 0.125, %v2695_v55  ;;  %v2760_v4 = vrot.slane %v2759_v36, 1  ;;  %v2767_v5 = vmul.f32 0.125, %v2701_v63 }
 0x245   : > { %v7860_v6 = vadd.f32 1e-05, %v2763_v43  ;;  %v2726_v7 = vrot.slane %v2660_v0, 4  ;;  %v2768_v9 = vmul.f32 0.125, %v2707_v1  ;;  %v7862_v10 = vadd.f32 1e-05, %v2764_v44 }
 0x246   : > { %v2732_v11 = vrot.slane %v2661_v25, 4  ;;  %v2743_v12 = vadd.f32 %v2742_v28, %v2741_v51  ;;  %v7864_v20 = vadd.f32 1e-05, %v2765_v45  ;;  %6613 = vrsqrt.f32 %v7858_v47 }
 0x247   : > { %v2749_v22 = vadd.f32 %v2748_v2, %v2747_v35  ;;  %v2755_v18 = vadd.f32 %v2754_v59, %v2753_v62  ;;  %v2769_v13 = vmul.f32 0.125, %v2713_v29  ;;  %v7867_v14 = vadd.f32 1e-05, %v2766_v3 }
 0x248   : > { %v2761_v23 = vadd.f32 %v2760_v4, %v2759_v36  ;;  %v7869_v30 = vadd.f32 1e-05, %v2767_v5  ;;  %6615 = vrsqrt.f32 %v7860_v6  ;;  %v7872_v31 = vadd.f32 1e-05, %v2768_v9 }
 0x249   : > { %6617 = vrsqrt.f32 %v7862_v10  ;;  %v7875_v32 = vadd.f32 %v2726_v7, %v2660_v0  ;;  %v7877_v21 = vadd.f32 %v2732_v11, %v2661_v25  ;;  %v2774_v17 = vmul.f32 0.125, %v2743_v12 }
 0x24a   : > { %6619 = vrsqrt.f32 %v7864_v20  ;;  %v2775_v24 = vmul.f32 0.125, %v2749_v22  ;;  %v2776_v26 = vmul.f32 0.125, %v2755_v18  ;;  %v7880_v27 = vadd.f32 1e-05, %v2769_v13 }
 0x24b   : > { %6621 = vrsqrt.f32 %v7867_v14  ;;  %v2777_v37 = vmul.f32 0.125, %v2761_v23  ;;  %v2728_v46 = vrot.slane %v7875_v32, 2  ;;  %v2734_v48 = vrot.slane %v7877_v21, 2 }
 0x24c   : > { %v7883_v15 = vpop.eup %6613  ;;  %6623 = vrsqrt.f32 %v7869_v30  ;;  %v7893_v49 = vadd.f32 1e-05, %v2774_v17  ;;  %v7897_v51 = vadd.f32 1e-05, %v2775_v24  ;;  %v7899_v54 = vadd.f32 1e-05, %v2776_v26 }
 0x24d   : > { %v2797_v38 = vmul.f32 %v7883_v15, %v7858_v47  ;;  %6625 = vrsqrt.f32 %v7872_v31  ;;  %v7906_v35 = vadd.f32 1e-05, %v2777_v37  ;;  %vm2812_vm0 = vweird.f32 %v7860_v6 }
 0x24e   : > { %v7889_v42 = vpop.eup %6615  ;;  %6627 = vrsqrt.f32 %v7880_v27  ;;  %vm2822_vm1 = vweird.f32 %v7862_v10  ;;  %vm2832_vm2 = vweird.f32 %v7864_v20  ;;  %vm2842_vm3 = vweird.f32 %v7867_v14 }
 0x24f   : > { %v7895_v40 = vpop.eup %6617  ;;  %v2807_v55 = vmul.f32 %v7889_v42, %v7860_v6  ;;  %v2798_v36 = vmul.f32 %v7883_v15, %v2797_v38  ;;  %vm2852_vm4 = vweird.f32 %v7869_v30  ;;  %vm2802_vm5 = vweird.f32 %v7858_v47 }
 0x250   : > { %v7904_v61 = vpop.eup %6619  ;;  %v2817_v62 = vmul.f32 %v7895_v40, %v7862_v10  ;;  %vm2813_vm6 = vweird.f32 %v7889_v42  ;;  %6629 = vrsqrt.f32 %v7893_v49  ;;  %vm2823_vm7 = vweird.f32 %v7895_v40 }
 0x251   : > { %v7912_v63 = vpop.eup %6621  ;;  %v2808_v43 = vmul.f32 %v7889_v42, %v2807_v55  ;;  %v2827_v0 = vmul.f32 %v7904_v61, %v7864_v20  ;;  %v2799_v7 = vmul.f32 0.5, %v2798_v36  ;;  %vm2833_vm8 = vweird.f32 %v7904_v61  ;;  %vm7948_vm10 = vmor %vm2812_vm0, %vm2813_vm6 }
 0x252   : > { %v7919_v1 = vpop.eup %6623  ;;  %v2818_v44 = vmul.f32 %v7895_v40, %v2817_v62  ;;  %v2837_v25 = vmul.f32 %v7912_v63, %v7867_v14  ;;  %vm2862_vm9 = vweird.f32 %v7872_v31  ;;  %vm2843_vm11 = vweird.f32 %v7912_v63  ;;  %vm7959_vm12 = vmor %vm2822_vm1, %vm2823_vm7 }
 0x253   : > { %v7926_v28 = vpop.eup %6625  ;;  %v2809_v45 = vmul.f32 0.5, %v2808_v43  ;;  %v2828_v29 = vmul.f32 %v7904_v61, %v2827_v0  ;;  %v2847_v2 = vmul.f32 %v7919_v1, %v7869_v30  ;;  %v2800_v55 = vsub.f32 1.5, %v2799_v7  ;;  %vm7973_vm15 = vmor %vm2832_vm2, %vm2833_vm8 }
 0x254   : > { %v2819_v59 = vmul.f32 0.5, %v2818_v44  ;;  %v2838_v3 = vmul.f32 %v7912_v63, %v2837_v25  ;;  %v2857_v4 = vmul.f32 %v7926_v28, %v7872_v31  ;;  %v7937_v5 = vpop.eup %6627  ;;  %vm2853_vm13 = vweird.f32 %v7919_v1  ;;  %vm7985_vm1 = vmor %vm2842_vm3, %vm2843_vm11 }
 0x255   : > { %v2829_v9 = vmul.f32 0.5, %v2828_v29  ;;  %v2848_v11 = vmul.f32 %v7919_v1, %v2847_v2  ;;  %v2810_v12 = vsub.f32 1.5, %v2809_v45  ;;  %v2867_v38 = vmul.f32 %v7937_v5, %v7880_v27  ;;  %vm7993_vm6 = vmor %vm2852_vm4, %vm2853_vm13  ;;  %v2778_v2 = vld [vmem:[#allocation8] sm:$0xff] }
 0x256   : > { %v2820_v22 = vsub.f32 1.5, %v2819_v59  ;;  %v2839_v18 = vmul.f32 0.5, %v2838_v3  ;;  %v2858_v13 = vmul.f32 %v7926_v28, %v2857_v4  ;;  %vm2863_vm14 = vweird.f32 %v7926_v28  ;;  %v7965_v36 = vpop.eup %6629 }
 0x257   : > { %v2830_v23 = vsub.f32 1.5, %v2829_v9  ;;  %v2849_v17 = vmul.f32 0.5, %v2848_v11  ;;  %v2811_v43 = vmul.f32 %v7889_v42, %v2810_v12  ;;  %v2868_v25 = vmul.f32 %v7937_v5, %v2867_v38  ;;  %vm8003_vm3 = vmor %vm2862_vm9, %vm2863_vm14 }
 0x258   : > { %v2840_v26 = vsub.f32 1.5, %v2839_v18  ;;  %v2859_v37 = vmul.f32 0.5, %v2858_v13  ;;  %v2821_v0 = vmul.f32 %v7895_v40, %v2820_v22  ;;  %vm2803_vm0 = vweird.f32 %v7883_v15 }
 0x259   : > { %v2850_v6 = vsub.f32 1.5, %v2849_v17  ;;  %v2831_v45 = vmul.f32 %v7904_v61, %v2830_v23  ;;  %vm2872_vm2 = vweird.f32 %v7880_v27  ;;  %v2869_v4 = vmul.f32 0.5, %v2868_v25  ;;  %vm8015_vm13 = vmor %vm2802_vm5, %vm2803_vm0 }
 0x25a   : > { %v2860_v44 = vsub.f32 1.5, %v2859_v37  ;;  %v2841_v29 = vmul.f32 %v7912_v63, %v2840_v26  ;;  %vm2873_vm7 = vweird.f32 %v7937_v5  ;;  %v2917_v30 = vmul.f32 %v7965_v36, %v7893_v49 }
 0x25b   : > { %v2851_v20 = vmul.f32 %v7919_v1, %v2850_v6  ;;  %vm2922_vm4 = vweird.f32 %v7893_v49  ;;  %vm2986_vm8 = vcmask 1040384   ;;  %vm2988_vm11 = vcmask 1042434   ;;  %vm8033_vm5 = vmor %vm2872_vm2, %vm2873_vm7 }
 0x25c   : > { %v2861_v3 = vmul.f32 %v7926_v28, %v2860_v44  ;;  %v2801_v7 = vmul.f32 %v7883_v15, %v2800_v55  ;;  %v2815_v31 = vsel %vm7948_vm10, %v7889_v42, %v2811_v43  ;;  %v2825_v11 = vsel %vm7959_vm12, %v7895_v40, %v2821_v0 }
 0x25d   : > { %v2870_v12 = vsub.f32 1.5, %v2869_v4  ;;  %v2835_v22 = vsel %vm7973_vm15, %v7904_v61, %v2831_v45  ;;  %v2845_v47 = vsel %vm7985_vm1, %v7912_v63, %v2841_v29  ;;  %v2918_v42 = vmul.f32 %v7965_v36, %v2917_v30  ;;  %v8087_v30 = vld [vmem:[#allocation9] sm:$0xff] }
 0x25e   : > { %6631 = vrsqrt.f32 %v7897_v51  ;;  %v2855_v40 = vsel %vm7993_vm6, %v7919_v1, %v2851_v20  ;;  %v2865_v61 = vsel %vm8003_vm3, %v7926_v28, %v2861_v3  ;;  %v2972_v13 = vrot.slane %v2815_v31, 7 }
 0x25f   : > { %v2871_v63 = vmul.f32 %v7937_v5, %v2870_v12  ;;  %6633 = vrsqrt.f32 %v7899_v54  ;;  %v2919_v27 = vmul.f32 0.5, %v2918_v42  ;;  %v2973_v23 = vrot.slane %v2825_v11, 6 }
 0x260   : > { %6635 = vrsqrt.f32 %v7906_v35  ;;  %v2805_v17 = vsel %vm8015_vm13, %v7883_v15, %v2801_v7  ;;  %vm2923_vm9 = vweird.f32 %v7965_v36  ;;  %v2974_v28 = vrot.slane %v2835_v22, 5  ;;  %v6468_v22 = vld [vmem:[#allocation11 + $0x2f8] sm:$0xff] }
 0x261   : > { %v2875_v1 = vsel %vm8033_vm5, %v7937_v5, %v2871_v63  ;;  %v2920_v24 = vsub.f32 1.5, %v2919_v27  ;;  %v2975_v26 = vrot.slane %v2845_v47, 4  ;;  %v2976_v37 = vrot.slane %v2855_v40, 3  ;;  %vm8063_vm14 = vmor %vm2922_vm4, %vm2923_vm9 }
 0x262   : > { %v8058_v38 = vadd.f32 %v2728_v46, %v7875_v32  ;;  %v2977_v55 = vrot.slane %v2865_v61, 2  ;;  %vm2990_vm10 = vcmask 1041408   ;;  %vm2992_vm12 = vcmask 1044484  }
 0x263   : > { %v2921_v15 = vmul.f32 %v7965_v36, %v2920_v24  ;;  %v2978_v6 = vrot.slane %v2875_v1, 1  ;;  %v2987_v43 = vsel %vm2986_vm8, %v2805_v17, %v2972_v13  ;;  %v2989_v0 = vsel %vm2988_vm11, %v2973_v23, %v2974_v28 }
 0x264   : > { %v6632_v62 = vpop.eup %6631  ;;  %v8072_v32 = vadd.f32 %v2734_v48, %v7877_v21  ;;  %vm2932_vm15 = vweird.f32 %v7897_v51  ;;  %vm2994_vm0 = vcmask 1046534   ;;  %vm2942_vm1 = vweird.f32 %v7899_v54 }
 0x265   : > { %v6634_v10 = vpop.eup %6633  ;;  %v2927_v46 = vmul.f32 %v6632_v62, %v7897_v51  ;;  %vm2952_vm2 = vweird.f32 %v7906_v35  ;;  %v2993_v25 = vsel %vm2992_vm12, %v2975_v26, %v2976_v37  ;;  %v2925_v45 = vsel %vm8063_vm14, %v7965_v36, %v2921_v15 }
 0x266   : > { %v6636_v49 = vpop.eup %6635  ;;  %v2937_v44 = vmul.f32 %v6634_v10, %v7899_v54  ;;  %v2991_v29 = vsel %vm2990_vm10, %v2987_v43, %v2989_v0  ;;  %v2995_v59 = vsel %vm2994_vm0, %v2977_v55, %v2978_v6  ;;  %vm2996_vm6 = vcmask 1045508  }
 0x267   : > { %v2928_v21 = vmul.f32 %v6632_v62, %v2927_v46  ;;  %v2947_v48 = vmul.f32 %v6636_v49, %v7906_v35  ;;  %vm2998_vm7 = vcmask 1043456   ;;  %vm2933_vm3 = vweird.f32 %v6632_v62 }
 0x268   : > { %v2938_v20 = vmul.f32 %v6634_v10, %v2937_v44  ;;  %v2997_v14 = vsel %vm2996_vm6, %v2993_v25, %v2995_v59  ;;  %vm2943_vm4 = vweird.f32 %v6634_v10  ;;  %vm2953_vm13 = vweird.f32 %v6636_v49  ;;  %vm8094_vm5 = vmor %vm2932_vm15, %vm2933_vm3 }
 0x269   : > { %v2929_v3 = vmul.f32 0.5, %v2928_v21  ;;  %v2948_v4 = vmul.f32 %v6636_v49, %v2947_v48  ;;  %v2999_v36 = vsel %vm2998_vm7, %v2991_v29, %v2997_v14  ;;  %v2982_v11 = vrot.slane %v2925_v45, 4  ;;  %vm8103_vm9 = vmor %vm2942_vm1, %vm2943_vm4  ;;  %v6444_v14 = vld [vmem:[#allocation11 + $0x238] sm:$0xff] }
 0x26a   : > { %v2939_v7 = vmul.f32 0.5, %v2938_v20  ;;  %v8090_v12 = vmul.f32 %v2999_v36, %v2778_v2  ;;  %v3065_v18 = vperm.slane %v8087_v30, 0  ;;  %v3066_v42 = vperm.slane %v8087_v30, 1  ;;  %vm8112_vm14 = vmor %vm2952_vm2, %vm2953_vm13  ;;  %v8134_v2 = vld [vmem:[#allocation2 + $0x20] sm:$0xff] }
 0x26b   : > { %v2930_v9 = vsub.f32 1.5, %v2929_v3  ;;  %v2949_v31 = vmul.f32 0.5, %v2948_v4  ;;  %v3067_v40 = vperm.slane %v8087_v30, 2  ;;  %v3068_v28 = vperm.slane %v8087_v30, 3  ;;  %v8140_v36 = vld [vmem:[#allocation2 + $0x40] sm:$0xff] }
 0x26c   : > { %v2940_v47 = vsub.f32 1.5, %v2939_v7  ;;  %v3013_v51 = vperm.slane %v8090_v12, 0  ;;  %v3014_v13 = vperm.slane %v8090_v12, 1  ;;  %v3015_v1 = vperm.slane %v8090_v12, 2  ;;  %v6452_v7 = vld [vmem:[#allocation11 + $0x278] sm:$0xff] }
 0x26d   : > { %v2931_v61 = vmul.f32 %v6632_v62, %v2930_v9  ;;  %v2950_v27 = vsub.f32 1.5, %v2949_v31  ;;  %v3016_v54 = vperm.slane %v8090_v12, 3  ;;  %v3019_v48 = vperm.slane %v8090_v12, 6 }
 0x26e   : > { %v2941_v23 = vmul.f32 %v6634_v10, %v2940_v47  ;;  %v3045_v37 = vmul.f32 %v3013_v51, %v7785_v52  ;;  %v3046_v55 = vmul.f32 %v3014_v13, %v7788_v53  ;;  %v3047_v5 = vmul.f32 %v3015_v1, %v7791_v56 }
 0x26f   : > { %v2935_v24 = vsel %vm8094_vm5, %v6632_v62, %v2931_v61  ;;  %v2951_v26 = vmul.f32 %v6636_v49, %v2950_v27  ;;  %v3048_v6 = vmul.f32 %v3016_v54, %v7794_v57  ;;  %v2730_v20 = vrot.slane %v8058_v38, 1  ;;  %v6467_v54 = vld [vmem:[#allocation11 + $0x2f0] sm:$0xff] }
 0x270   : > { %v2945_v35 = vsel %vm8103_vm9, %v6634_v10, %v2941_v23  ;;  %v2983_v15 = vrot.slane %v2935_v24, 3  ;;  %v3097_v46 = vadd.f32 %v3065_v18, %v3045_v37  ;;  %v3098_v44 = vadd.f32 %v3066_v42, %v3046_v55 }
 0x271   : > { %v2955_v43 = vsel %vm8112_vm14, %v6636_v49, %v2951_v26  ;;  %v2984_v0 = vrot.slane %v2945_v35, 2  ;;  %v3099_v52 = vadd.f32 %v3067_v40, %v3047_v5  ;;  %v3100_v45 = vadd.f32 %v3068_v28, %v3048_v6  ;;  %v6450_v6 = vld [vmem:[#allocation11 + $0x268] sm:$0xff] }
 0x272   : > { %v2985_v62 = vrot.slane %v2955_v43, 1  ;;  %v3003_v25 = vsel %vm2992_vm12, %v2982_v11, %v2983_v15  ;;  %v3113_v53 = vmax.f32 %v3097_v46, 0.0  ;;  %v3114_v21 = vmax.f32 %v3098_v44, 0.0  ;;  %v6460_v11 = vld [vmem:[#allocation11 + $0x2b8] sm:$0xff]  ;;  %v6458_v43 = vld [vmem:[#allocation11 + $0x2a8] sm:$0xff] }
 0x273   : > { %v3017_v10 = vperm.slane %v8090_v12, 4  ;;  %v3115_v57 = vmax.f32 %v3099_v52, 0.0  ;;  %v3116_v29 = vmax.f32 %v3100_v45, 0.0  ;;  %v3018_v49 = vperm.slane %v8090_v12, 5 }
 0x274   : > { %v3004_v56 = vsel %vm2994_vm0, %v2984_v0, %v2985_v62  ;;  %v3129_v3 = vpack.c.bf16 %v3113_v53, %v3113_v53  ;;  %v3130_v4 = vpack.c.bf16 %v3114_v21, %v3114_v21  ;;  %v3069_v47 = vperm.slane %v8087_v30, 4  ;;  %v6466_v0 = vld [vmem:[#allocation11 + $0x2e8] sm:$0xff] }
 0x275   : > { %v8138_v59 = vsel %vm2996_vm6, %v3003_v25, %v3004_v56  ;;  %v3131_v9 = vpack.c.bf16 %v3115_v57, %v3115_v57  ;;  %v3132_v31 = vpack.c.bf16 %v3116_v29, %v3116_v29  ;;  %v3071_v18 = vperm.slane %v8087_v30, 6  ;;  %v6457_v56 = vld [vmem:[#allocation11 + $0x2a0] sm:$0xff] }
 0x276   : > { %4177 = vmatmul.bf16.vlgmr.msra.gmra.mxu0 %v3129_v3  ;;  %4190 = vmatmul.bf16.vlgmr.msra.gmra.mxu1 %v3130_v4  ;;  %v3049_v42 = vmul.f32 %v3017_v10, %v7797_v58  ;;  %v3050_v40 = vmul.f32 %v3018_v49, %v7802_v33  ;;  %v3070_v61 = vperm.slane %v8087_v30, 5  ;;  %v3020_v63 = vperm.slane %v8090_v12, 7  ;;  %v6443_v58 = vld [vmem:[#allocation11 + $0x230] sm:$0xff]  ;;  %v6465_v57 = vld [vmem:[#allocation11 + $0x2e0] sm:$0xff] }
 0x277   : > { %4203 = vmatmul.bf16.vlgmr.msra.gmra.mxu2 %v3131_v9  ;;  %4216 = vmatmul.bf16.vlgmr.msra.gmra.mxu3 %v3132_v31  ;;  %v3051_v27 = vmul.f32 %v3019_v48, %v7805_v34  ;;  %v3072_v51 = vperm.slane %v8087_v30, 7  ;;  %v2570_v13 = vrot.slane %v8140_v36, 4  ;;  %v2576_v23 = vrot.slane %v8134_v2, 4  ;;  %v6451_v33 = vld [vmem:[#allocation11 + $0x270] sm:$0xff]  ;;  %v6449_v48 = vld [vmem:[#allocation11 + $0x260] sm:$0xff] }
 0x278   : > { %v2736_v17 = vrot.slane %v8072_v32, 1  ;;  %4273 = vmatpush.bf16.msra.mxu0 %v6444_v14  ;;  %4286 = vmatpush.bf16.msra.mxu1 %v6452_v7  ;;  %v3052_v1 = vmul.f32 %v3020_v63, %v7808_v60  ;;  %v6459_v12 = vld [vmem:[#allocation11 + $0x2b0] sm:$0xff]  ;;  %v2731_v28 = vadd.f32 %v2730_v20, %v8058_v38  ;;  %v3101_v24 = vadd.f32 %v3069_v47, %v3049_v42  ;;  %v6442_v60 = vld [vmem:[#allocation11 + $0x228] sm:$0xff]  ;;  %v6448_v47 = vld [vmem:[#allocation11 + $0x258] sm:$0xff] }
 0x279   : > { %4299 = vmatpush.bf16.msra.mxu2 %v6460_v11  ;;  %4312 = vmatpush.bf16.msra.mxu3 %v6468_v22  ;;  %v2571_v34 = vadd.f32 %v2570_v13, %v8140_v36  ;;  %v2577_v30 = vadd.f32 %v2576_v23, %v8134_v2  ;;  %v3102_v26 = vadd.f32 %v3070_v61, %v3050_v40  ;;  %v6440_v22 = vld [vmem:[#allocation11 + $0x218] sm:$0xff]  ;;  %v6463_v13 = vld [vmem:[#allocation11 + $0x2d0] sm:$0xff] }
 0x27a   : > { %v3103_v37 = vadd.f32 %v3071_v18, %v3051_v27  ;;  %v3104_v55 = vadd.f32 %v3072_v51, %v3052_v1  ;;  %v2737_v5 = vadd.f32 %v2736_v17, %v8072_v32  ;;  %v2772_v62 = vmul.f32 0.125, %v2731_v28  ;;  %v6441_v32 = vld [vmem:[#allocation11 + $0x220] sm:$0xff]  ;;  %v6456_v18 = vld [vmem:[#allocation11 + $0x298] sm:$0xff]  ;;  %v6447_v51 = vld [vmem:[#allocation11 + $0x250] sm:$0xff] }
 0x27b   : > { %v2572_v35 = vrot.slane %v2571_v34, 2  ;;  %v2578_v15 = vrot.slane %v2577_v30, 2  ;;  %v3117_v38 = vmax.f32 %v3101_v24, 0.0  ;;  %v3118_v25 = vmax.f32 %v3102_v26, 0.0  ;;  %v6464_v42 = vld [vmem:[#allocation11 + $0x2d8] sm:$0xff]  ;;  %v6438_v1 = vld [vmem:[#allocation11 + $0x208] sm:$0xff] }
 0x27c   : > { %4274 = vmatpush.bf16.msra.mxu0 %v6443_v58  ;;  %4287 = vmatpush.bf16.msra.mxu1 %v6451_v33  ;;  %v3119_v52 = vmax.f32 %v3103_v37, 0.0  ;;  %v3120_v45 = vmax.f32 %v3104_v55, 0.0  ;;  %v2773_v10 = vmul.f32 0.125, %v2737_v5  ;;  %v8158_v20 = vadd.f32 1e-05, %v2772_v62  ;;  %v6445_v5 = vld [vmem:[#allocation11 + $0x240] sm:$0xff] }
 0x27d   : > { %4300 = vmatpush.bf16.msra.mxu2 %v6459_v12  ;;  %4313 = vmatpush.bf16.msra.mxu3 %v6467_v54  ;;  %v2573_v46 = vadd.f32 %v2572_v35, %v2571_v34  ;;  %v2579_v44 = vadd.f32 %v2578_v15, %v2577_v30  ;;  %v3133_v3 = vpack.c.bf16 %v3117_v38, %v3117_v38  ;;  %v6446_v12 = vld [vmem:[#allocation11 + $0x248] sm:$0xff]  ;;  %v6437_v15 = vld [vmem:[#allocation11 + $0x200] sm:$0xff]  ;;  %v6484_v62 = vld [vmem:[#allocation11 + $0x378] sm:$0xff] }
 0x27e   : > { %v3134_v4 = vpack.c.bf16 %v3118_v25, %v3118_v25  ;;  %v3135_v14 = vpack.c.bf16 %v3119_v52, %v3119_v52  ;;  %v3136_v7 = vpack.c.bf16 %v3120_v45, %v3120_v45  ;;  %v8160_v11 = vadd.f32 1e-05, %v2773_v10  ;;  %v6454_v34 = vld [vmem:[#allocation11 + $0x288] sm:$0xff]  ;;  %v6492_v38 = vld [vmem:[#allocation11 + $0x3b8] sm:$0xff] }
 0x27f   : > { %v2574_v53 = vrot.slane %v2573_v46, 1  ;;  %v2580_v21 = vrot.slane %v2579_v44, 1  ;;  %6637 = vrsqrt.f32 %v8158_v20  ;;  %v6462_v30 = vld [vmem:[#allocation11 + $0x2c8] sm:$0xff]  ;;  %v6500_v25 = vld [vmem:[#allocation11 + $0x3f8] sm:$0xff]  ;;  %vm2902_vm12 = vweird.f32 %v8158_v20 }
 0x280   : > { %4275 = vmatpush.bf16.msra.mxu0 %v6442_v60  ;;  %4288 = vmatpush.bf16.msra.mxu1 %v6450_v6  ;;  %6639 = vrsqrt.f32 %v8160_v11  ;;  %v6453_v6 = vld [vmem:[#allocation11 + $0x280] sm:$0xff]  ;;  %vm2912_vm0 = vweird.f32 %v8160_v11 }
 0x281   : > { %4301 = vmatpush.bf16.msra.mxu2 %v6458_v43  ;;  %4314 = vmatpush.bf16.msra.mxu3 %v6466_v0  ;;  %v2575_v29 = vadd.f32 %v2574_v53, %v2573_v46  ;;  %v2581_v49 = vadd.f32 %v2580_v21, %v2579_v44  ;;  %v6461_v43 = vld [vmem:[#allocation11 + $0x2c0] sm:$0xff]  ;;  %v6476_v44 = vld [vmem:[#allocation11 + $0x338] sm:$0xff] }
 0x283   : > { %v2626_v9 = vmul.f32 0.125, %v2575_v29  ;;  %v2627_v31 = vmul.f32 0.125, %v2581_v49 }
 0x284   : > { %4276 = vmatpush.bf16.msra.mxu0 %v6441_v32  ;;  %4289 = vmatpush.bf16.msra.mxu1 %v6449_v48 }
 0x285   : > { %4302 = vmatpush.bf16.msra.mxu2 %v6457_v56  ;;  %4315 = vmatpush.bf16.msra.mxu3 %v6465_v57  ;;  %v8163_v40 = vsub.f32 %v8140_v36, %v2626_v9  ;;  %v8166_v61 = vsub.f32 %v8134_v2, %v2627_v31  ;;  %v6439_v36 = vld [vmem:[#allocation11 + $0x210] sm:$0xff]  ;;  %v8174_v54 = vpop.eup %6637  ;;  %v6474_v31 = vld [vmem:[#allocation11 + $0x328] sm:$0xff] }
 0x286   : > { %4229 = vmatmul.bf16.vlgmr.msrb.gmra.mxu0 %v3133_v3  ;;  %4242 = vmatmul.bf16.vlgmr.msrb.gmra.mxu1 %v3134_v4  ;;  %v6455_v2 = vld [vmem:[#allocation11 + $0x290] sm:$0xff]  ;;  %v8176_v26 = vpop.eup %6639  ;;  %v2897_v35 = vmul.f32 %v8174_v54, %v8158_v20  ;;  %vm2903_vm15 = vweird.f32 %v8174_v54  ;;  %v6489_v20 = vld [vmem:[#allocation11 + $0x3a0] sm:$0xff] }
 0x287   : > { %4255 = vmatmul.bf16.vlgmr.msrb.gmra.mxu2 %v3135_v14  ;;  %4268 = vmatmul.bf16.vlgmr.msrb.gmra.mxu3 %v3136_v7  ;;  %v2658_v63 = vmul.f32 %v8163_v40, %v8163_v40  ;;  %v2659_v27 = vmul.f32 %v8166_v61, %v8166_v61  ;;  %v2907_v60 = vmul.f32 %v8176_v26, %v8160_v11  ;;  %v6475_v3 = vld [vmem:[#allocation11 + $0x330] sm:$0xff]  ;;  %vm2913_vm1 = vweird.f32 %v8176_v26  ;;  %vm8199_vm2 = vmor %vm2902_vm12, %vm2903_vm15 }
 0x288   : > { %4277 = vmatpush.bf16.msra.mxu0 %v6440_v22  ;;  %4290 = vmatpush.bf16.msra.mxu1 %v6448_v47  ;;  %v2898_v53 = vmul.f32 %v8174_v54, %v2897_v35  ;;  %v6483_v4 = vld [vmem:[#allocation11 + $0x370] sm:$0xff]  ;;  %v6482_v22 = vld [vmem:[#allocation11 + $0x368] sm:$0xff]  ;;  %vm8205_vm6 = vmor %vm2912_vm0, %vm2913_vm1 }
 0x289   : > { %4303 = vmatpush.bf16.msra.mxu2 %v6456_v18  ;;  %4316 = vmatpush.bf16.msra.mxu3 %v6464_v42  ;;  %v2714_v23 = vrot.slane %v2658_v63, 4  ;;  %v2720_v17 = vrot.slane %v2659_v27, 4  ;;  %v2908_v21 = vmul.f32 %v8176_v26, %v2907_v60  ;;  %v6491_v14 = vld [vmem:[#allocation11 + $0x3b0] sm:$0xff]  ;;  %v6490_v18 = vld [vmem:[#allocation11 + $0x3a8] sm:$0xff] }
 0x28a   : > { %v2899_v57 = vmul.f32 0.5, %v2898_v53  ;;  %v6499_v9 = vld [vmem:[#allocation11 + $0x3f0] sm:$0xff]  ;;  %v6498_v42 = vld [vmem:[#allocation11 + $0x3e8] sm:$0xff] }
 0x28b   : > { %v2715_v58 = vadd.f32 %v2714_v23, %v2658_v63  ;;  %v2721_v33 = vadd.f32 %v2720_v17, %v2659_v27  ;;  %v2909_v29 = vmul.f32 0.5, %v2908_v21  ;;  %v6473_v17 = vld [vmem:[#allocation11 + $0x320] sm:$0xff]  ;;  %v2779_v53 = vld [vmem:[#allocation8 + $0x8] sm:$0xff] }
 0x28c   : > { %4278 = vmatpush.bf16.msra.mxu0 %v6439_v36  ;;  %4291 = vmatpush.bf16.msra.mxu1 %v6447_v51  ;;  %v2900_v49 = vsub.f32 1.5, %v2899_v57  ;;  %v6486_v57 = vld [vmem:[#allocation11 + $0x388] sm:$0xff] }
 0x28d   : > { %4304 = vmatpush.bf16.msra.mxu2 %v6455_v2  ;;  %4317 = vmatpush.bf16.msra.mxu3 %v6463_v13  ;;  %v2716_v28 = vrot.slane %v2715_v58, 2  ;;  %v2722_v24 = vrot.slane %v2721_v33, 2  ;;  %v2910_v7 = vsub.f32 1.5, %v2909_v29  ;;  %v6494_v29 = vld [vmem:[#allocation11 + $0x3c8] sm:$0xff] }
 0x28e   : > { %v2901_v27 = vmul.f32 %v8174_v54, %v2900_v49 }
 0x28f   : > { %v2717_v37 = vadd.f32 %v2716_v28, %v2715_v58  ;;  %v2723_v55 = vadd.f32 %v2722_v24, %v2721_v33  ;;  %v2911_v11 = vmul.f32 %v8176_v26, %v2910_v7  ;;  %v6481_v58 = vld [vmem:[#allocation11 + $0x360] sm:$0xff] }
 0x290   : > { %4279 = vmatpush.bf16.msra.mxu0 %v6438_v1  ;;  %4292 = vmatpush.bf16.msra.mxu1 %v6446_v12  ;;  %v6497_v1 = vld [vmem:[#allocation11 + $0x3e0] sm:$0xff]  ;;  %v2905_v12 = vsel %vm8199_vm2, %v8174_v54, %v2901_v27 }
 0x291   : > { %4305 = vmatpush.bf16.msra.mxu2 %v6454_v34  ;;  %4318 = vmatpush.bf16.msra.mxu3 %v6462_v30  ;;  %v2718_v0 = vrot.slane %v2717_v37, 1  ;;  %v2724_v46 = vrot.slane %v2723_v55, 1  ;;  %v2915_v30 = vsel %vm8205_vm6, %v8176_v26, %v2911_v11  ;;  %v2980_v60 = vrot.slane %v2905_v12, 6  ;;  %v6493_v27 = vld [vmem:[#allocation11 + $0x3c0] sm:$0xff] }
 0x292   : > { %v2981_v26 = vrot.slane %v2915_v30, 5 }
 0x293   : > { %v2719_v52 = vadd.f32 %v2718_v0, %v2717_v37  ;;  %v2725_v45 = vadd.f32 %v2724_v46, %v2723_v55  ;;  %v6472_v37 = vld [vmem:[#allocation11 + $0x318] sm:$0xff]  ;;  %v6471_v0 = vld [vmem:[#allocation11 + $0x310] sm:$0xff] }
 0x294   : > { %4280 = vmatpush.bf16.msra.mxu0 %v6437_v15  ;;  %4293 = vmatpush.bf16.msra.mxu1 %v6445_v5  ;;  %v6480_v55 = vld [vmem:[#allocation11 + $0x358] sm:$0xff]  ;;  %v6479_v46 = vld [vmem:[#allocation11 + $0x350] sm:$0xff] }
 0x295   : > { %4306 = vmatpush.bf16.msra.mxu2 %v6453_v6  ;;  %4319 = vmatpush.bf16.msra.mxu3 %v6461_v43  ;;  %v2770_v10 = vmul.f32 0.125, %v2719_v52  ;;  %v2771_v32 = vmul.f32 0.125, %v2725_v45  ;;  %v6488_v15 = vld [vmem:[#allocation11 + $0x398] sm:$0xff]  ;;  %v3001_v52 = vsel %vm2988_vm11, %v2980_v60, %v2981_v26 }
 0x296   : > { %v6496_v5 = vld [vmem:[#allocation11 + $0x3d8] sm:$0xff] }
 0x297   : > { %v2788_v48 = vadd.f32 1e-05, %v2770_v10  ;;  %v8184_v56 = vadd.f32 1e-05, %v2771_v32  ;;  %v6470_v10 = vld [vmem:[#allocation11 + $0x308] sm:$0xff] }
 0x298   : > { %4325 = vmatpush.bf16.msrb.mxu0 %v6476_v44  ;;  %4338 = vmatpush.bf16.msrb.mxu1 %v6484_v62  ;;  %v6478_v32 = vld [vmem:[#allocation11 + $0x348] sm:$0xff] }
 0x299   : > { %4351 = vmatpush.bf16.msrb.mxu2 %v6492_v38  ;;  %4364 = vmatpush.bf16.msrb.mxu3 %v6500_v25  ;;  %6641 = vrsqrt.f32 %v2788_v48  ;;  %vm2882_vm3 = vweird.f32 %v2788_v48  ;;  %vm2892_vm13 = vweird.f32 %v8184_v56  ;;  %v6487_v38 = vld [vmem:[#allocation11 + $0x390] sm:$0xff] }
 0x29a   : > { %6643 = vrsqrt.f32 %v8184_v56  ;;  %v6495_v25 = vld [vmem:[#allocation11 + $0x3d0] sm:$0xff] }
 0x29c   : > { %4326 = vmatpush.bf16.msrb.mxu0 %v6475_v3  ;;  %4339 = vmatpush.bf16.msrb.mxu1 %v6483_v4 }
 0x29d   : > { %4352 = vmatpush.bf16.msrb.mxu2 %v6491_v14  ;;  %4365 = vmatpush.bf16.msrb.mxu3 %v6499_v9 }
 0x29f   : > { %v8189_v47 = vpop.eup %6641 }
 0x2a0   : > { %v6644_v63 = vpop.eup %6643  ;;  %v2877_v36 = vmul.f32 %v8189_v47, %v2788_v48  ;;  %4327 = vmatpush.bf16.msrb.mxu0 %v6474_v31  ;;  %4340 = vmatpush.bf16.msrb.mxu1 %v6482_v22  ;;  %vm2883_vm4 = vweird.f32 %v8189_v47  ;;  %v6469_v31 = vld [vmem:[#allocation11 + $0x300] sm:$0xff] }
 0x2a1   : > { %v2887_v2 = vmul.f32 %v6644_v63, %v8184_v56  ;;  %4353 = vmatpush.bf16.msrb.mxu2 %v6490_v18  ;;  %4366 = vmatpush.bf16.msrb.mxu3 %v6498_v42  ;;  %vm2893_vm5 = vweird.f32 %v6644_v63  ;;  %vm8218_vm9 = vmor %vm2882_vm3, %vm2883_vm4  ;;  %v8232_v56 = vld [vmem:[#allocation9 + $0x8] sm:$0xff]  ;;  %v6477_v22 = vld [vmem:[#allocation11 + $0x340] sm:$0xff] }
 0x2a2   : > { %v2878_v23 = vmul.f32 %v8189_v47, %v2877_v36  ;;  %vm2894_vm14 = vmor %vm2892_vm13, %vm2893_vm5  ;;  %v3073_v4 = vperm.slane %v8232_v56, 0  ;;  %v3075_v14 = vperm.slane %v8232_v56, 2  ;;  %v3074_v7 = vperm.slane %v8232_v56, 1 }
 0x2a3   : > { %v2888_v33 = vmul.f32 %v6644_v63, %v2887_v2  ;;  %v3076_v9 = vperm.slane %v8232_v56, 3  ;;  %v3080_v26 = vperm.slane %v8232_v56, 7 }
 0x2a4   : > { %v2879_v34 = vmul.f32 0.5, %v2878_v23  ;;  %4328 = vmatpush.bf16.msrb.mxu0 %v6473_v17  ;;  %4341 = vmatpush.bf16.msrb.mxu1 %v6481_v58 }
 0x2a5   : > { %v2889_v28 = vmul.f32 0.5, %v2888_v33  ;;  %4354 = vmatpush.bf16.msrb.mxu2 %v6489_v20  ;;  %4367 = vmatpush.bf16.msrb.mxu3 %v6497_v1 }
 0x2a6   : > { %v2880_v24 = vsub.f32 1.5, %v2879_v34 }
 0x2a7   : > { %v2890_v54 = vsub.f32 1.5, %v2889_v28 }
 0x2a8   : > { %v2881_v6 = vmul.f32 %v8189_v47, %v2880_v24  ;;  %4329 = vmatpush.bf16.msrb.mxu0 %v6472_v37  ;;  %4342 = vmatpush.bf16.msrb.mxu1 %v6480_v55  ;;  %v3077_v55 = vperm.slane %v8232_v56, 4 }
 0x2a9   : > { %v2891_v43 = vmul.f32 %v6644_v63, %v2890_v54  ;;  %4355 = vmatpush.bf16.msrb.mxu2 %v6488_v15  ;;  %4368 = vmatpush.bf16.msrb.mxu3 %v6496_v5  ;;  %v3079_v54 = vperm.slane %v8232_v56, 6  ;;  %v3078_v5 = vperm.slane %v8232_v56, 5 }
 0x2aa   : > { %v2885_v44 = vsel %vm8218_vm9, %v8189_v47, %v2881_v6 }
 0x2ab   : > { %v2895_v62 = vsel %vm2894_vm14, %v6644_v63, %v2891_v43 }
 0x2ac   : > { %v2979_v45 = vrot.slane %v2895_v62, 7  ;;  %4330 = vmatpush.bf16.msrb.mxu0 %v6471_v0  ;;  %4343 = vmatpush.bf16.msrb.mxu1 %v6479_v46 }
 0x2ad   : > { %4356 = vmatpush.bf16.msrb.mxu2 %v6487_v38  ;;  %4369 = vmatpush.bf16.msrb.mxu3 %v6495_v25 }
 0x2ae   : > { %v3000_v21 = vsel %vm2986_vm8, %v2885_v44, %v2979_v45 }
 0x2af   : > { %v3002_v48 = vsel %vm2990_vm10, %v3000_v21, %v3001_v52 }
 0x2b0   : > { %v3006_v49 = vsel %vm2998_vm7, %v3002_v48, %v8138_v59  ;;  %4331 = vmatpush.bf16.msrb.mxu0 %v6470_v10  ;;  %4344 = vmatpush.bf16.msrb.mxu1 %v6478_v32  ;;  %v6485_v59 = vld [vmem:[#allocation11 + $0x380] sm:$0xff]  ;;  %vm4428_vm7 = vcmask 7168  }
 0x2b1   : > { %v3010_v3 = vmul.f32 %v3006_v49, %v2779_v53  ;;  %4357 = vmatpush.bf16.msrb.mxu2 %v6486_v57  ;;  %4370 = vmatpush.bf16.msrb.mxu3 %v6494_v29 }
 0x2b3   : > { %v3021_v47 = vperm.slane %v3010_v3, 0  ;;  %v3023_v18 = vperm.slane %v3010_v3, 2  ;;  %v3022_v42 = vperm.slane %v3010_v3, 1  ;;  %v3024_v63 = vperm.slane %v3010_v3, 3 }
 0x2b4   : > { %4332 = vmatpush.bf16.msrb.mxu0 %v6469_v31  ;;  %4345 = vmatpush.bf16.msrb.mxu1 %v6477_v22  ;;  %v3025_v33 = vperm.slane %v3010_v3, 4  ;;  %v3027_v20 = vperm.slane %v3010_v3, 6  ;;  %v3026_v30 = vperm.slane %v3010_v3, 5 }
 0x2b5   : > { %v3053_v36 = vmul.f32 %v3021_v47, %v8163_v40  ;;  %v3055_v51 = vmul.f32 %v3023_v18, %v7849_v8  ;;  %v3054_v11 = vmul.f32 %v3022_v42, %v8166_v61  ;;  %v3056_v2 = vmul.f32 %v3024_v63, %v7852_v50  ;;  %4358 = vmatpush.bf16.msrb.mxu2 %v6485_v59 }
 0x2b6   : > { %4371 = vmatpush.bf16.msrb.mxu3 %v6493_v27  ;;  %v3028_v8 = vperm.slane %v3010_v3, 7  ;;  %v3057_v37 = vmul.f32 %v3025_v33, %v7828_v39  ;;  %v3059_v35 = vmul.f32 %v3027_v20, %v7834_v16  ;;  %v3058_v15 = vmul.f32 %v3026_v30, %v7831_v41 }
 0x2b7   : > { %v3105_v13 = vadd.f32 %v3073_v4, %v3053_v36  ;;  %v3107_v23 = vadd.f32 %v3075_v14, %v3055_v51  ;;  %v3106_v17 = vadd.f32 %v3074_v7, %v3054_v11  ;;  %v3108_v58 = vadd.f32 %v3076_v9, %v3056_v2 }
 0x2b8   : > { %v3060_v60 = vmul.f32 %v3028_v8, %v7837_v19  ;;  %v3109_v6 = vadd.f32 %v3077_v55, %v3057_v37  ;;  %v3111_v43 = vadd.f32 %v3079_v54, %v3059_v35  ;;  %v3110_v0 = vadd.f32 %v3078_v5, %v3058_v15 }
 0x2b9   : > { %v3121_v1 = vmax.f32 %v3105_v13, 0.0  ;;  %v3123_v12 = vmax.f32 %v3107_v23, 0.0  ;;  %v3122_v34 = vmax.f32 %v3106_v17, 0.0  ;;  %v3124_v40 = vmax.f32 %v3108_v58, 0.0 }
 0x2ba   : > { %v3112_v39 = vadd.f32 %v3080_v26, %v3060_v60  ;;  %v3125_v46 = vmax.f32 %v3109_v6, 0.0  ;;  %v3127_v44 = vmax.f32 %v3111_v43, 0.0  ;;  %v3126_v62 = vmax.f32 %v3110_v0, 0.0 }
 0x2bb   : > { %v3137_v28 = vpack.c.bf16 %v3121_v1, %v3121_v1  ;;  %v3139_v61 = vpack.c.bf16 %v3123_v12, %v3123_v12  ;;  %v3138_v24 = vpack.c.bf16 %v3122_v34, %v3122_v34  ;;  %v3140_v50 = vpack.c.bf16 %v3124_v40, %v3124_v40 }
 0x2bc   : > { %v3128_v16 = vmax.f32 %v3112_v39, 0.0  ;;  %v3141_v38 = vpack.c.bf16 %v3125_v46, %v3125_v46  ;;  %v3143_v25 = vpack.c.bf16 %v3127_v44, %v3127_v44  ;;  %v3142_v52 = vpack.c.bf16 %v3126_v62, %v3126_v62 }
 0x2bd   : > { %4281 = vmatmul.bf16.vlgmr.msra.gmra.mxu0 %v3137_v28  ;;  %4307 = vmatmul.bf16.vlgmr.msra.gmra.mxu2 %v3139_v61 }
 0x2be   : > { %4294 = vmatmul.bf16.vlgmr.msra.gmra.mxu1 %v3138_v24  ;;  %4320 = vmatmul.bf16.vlgmr.msra.gmra.mxu3 %v3140_v50  ;;  %v3144_v45 = vpack.c.bf16 %v3128_v16, %v3128_v16 }
 0x2cd   : > { %4333 = vmatmul.bf16.vlgmr.msrb.gmra.mxu0 %v3141_v38  ;;  %4359 = vmatmul.bf16.vlgmr.msrb.gmra.mxu2 %v3143_v25 }
 0x2ce   : > { %4346 = vmatmul.bf16.vlgmr.msrb.gmra.mxu1 %v3142_v52  ;;  %4372 = vmatmul.bf16.vlgmr.msrb.gmra.mxu3 %v3144_v45 }
 0x2f3   : > { %v4178_v41 = vpop.f32.mrf.mxu0  ;;  %v4191_v19 = vpop.f32.mrf.mxu1 }
 0x2f4   : > { %v4192_v53 = vadd.f32 %v4191_v19, %v4178_v41 }
 0x2fa   : > { %v4204_v21 = vpop.f32.mrf.mxu2  ;;  %v4217_v10 = vpop.f32.mrf.mxu3 }
 0x2fb   : > { %v4205_v32 = vadd.f32 %v4204_v21, %v4192_v53  ;;  %v4180_v48 = vpop.f32.mrf.mxu0  ;;  %v4193_v56 = vpop.f32.mrf.mxu1 }
 0x2fd   : > { %v4218_v57 = vadd.f32 %v4217_v10, %v4205_v32  ;;  %v4393_v32 = vld [vmem:[#allocation12] sm:$0x1] }
 0x302   : > { %v4206_v29 = vpop.f32.mrf.mxu2  ;;  %v4219_v49 = vpop.f32.mrf.mxu3 }
 0x303   : > { %v4230_v3 = vpop.f32.mrf.mxu0  ;;  %v4243_v4 = vpop.f32.mrf.mxu1  ;;  %v6610_v49 = vld [vmem:[#allocation14] ss:$0 sm:$0xff] }
 0x304   : > { %v4231_v18 = vadd.f32 %v4230_v3, %v4218_v57 }
 0x306   : > { %v4244_v42 = vadd.f32 %v4243_v4, %v4231_v18 }
 0x30a   : > { %v4256_v14 = vpop.f32.mrf.mxu2  ;;  %v4269_v7 = vpop.f32.mrf.mxu3 }
 0x30b   : > { %v4232_v9 = vpop.f32.mrf.mxu0  ;;  %v4245_v31 = vpop.f32.mrf.mxu1  ;;  %v4257_v63 = vadd.f32 %v4256_v14, %v4244_v42  ;;  %v6611_v14 = vld [vmem:[#allocation15] ss:$0 sm:$0xff] }
 0x30c   : > { %v6612_v31 = vld [vmem:[#allocation3] ss:$0 sm:$0xff] }
 0x30d   : > { %v4270_v36 = vadd.f32 %v4269_v7, %v4257_v63 }
 0x312   : > { %v4258_v22 = vpop.f32.mrf.mxu2  ;;  %v4271_v47 = vpop.f32.mrf.mxu3 }
 0x33a   : > { %v4282_v59 = vpop.f32.mrf.mxu0 }
 0x33b   : > { %v4295_v27 = vpop.f32.mrf.mxu1  ;;  %v4283_v51 = vadd.f32 %v4282_v59, %v4270_v36 }
 0x33d   : > { %v4296_v23 = vadd.f32 %v4295_v27, %v4283_v51 }
 0x340   : > { %v4308_v11 = vpop.f32.mrf.mxu2 }
 0x341   : > { %v4321_v2 = vpop.f32.mrf.mxu3  ;;  %v4309_v58 = vadd.f32 %v4308_v11, %v4296_v23 }
 0x342   : > { %v4284_v13 = vpop.f32.mrf.mxu0 }
 0x343   : > { %v4297_v17 = vpop.f32.mrf.mxu1  ;;  %v4322_v20 = vadd.f32 %v4321_v2, %v4309_v58 }
 0x348   : > { %v4310_v33 = vpop.f32.mrf.mxu2 }
 0x349   : > { %v4323_v1 = vpop.f32.mrf.mxu3 }
 0x34a   : > { %v4334_v12 = vpop.f32.mrf.mxu0 }
 0x34b   : > { %v4335_v34 = vadd.f32 %v4334_v12, %v4322_v20  ;;  %v4347_v40 = vpop.f32.mrf.mxu1 }
 0x34d   : > { %v4348_v30 = vadd.f32 %v4347_v40, %v4335_v34 }
 0x350   : > { %v4360_v8 = vpop.f32.mrf.mxu2 }
 0x351   : > { %v4361_v28 = vadd.f32 %v4360_v8, %v4348_v30  ;;  %v4373_v61 = vpop.f32.mrf.mxu3 }
 0x352   : > { %v4336_v24 = vpop.f32.mrf.mxu0 }
 0x353   : > { %v4374_v50 = vadd.f32 %v4373_v61, %v4361_v28  ;;  %v4349_v37 = vpop.f32.mrf.mxu1 }
 0x355   : > { %v4377_v55 = vrot.slane %v4374_v50, 4 }
 0x357   : > { %v4378_v35 = vadd.f32 %v4377_v55, %v4374_v50 }
 0x358   : > { %v4362_v54 = vpop.f32.mrf.mxu2 }
 0x359   : > { %v4379_v15 = vrot.slane %v4378_v35, 2  ;;  %v4375_v5 = vpop.f32.mrf.mxu3 }
 0x35b   : > { %v4380_v60 = vadd.f32 %v4379_v15, %v4378_v35 }
 0x35d   : > { %v4381_v26 = vrot.slane %v4380_v60, 1 }
 0x35f   : > { %v4382_v6 = vadd.f32 %v4381_v26, %v4380_v60 }
 0x361   : > { %v4383_v43 = vmul.f32 0.125, %v4382_v6 }
 0x363   : > { %v4384_v0 = vsub.f32 %v4374_v50, %v4383_v43 }
 0x365   : > { %v4385_v39 = vmul.f32 %v4384_v0, %v4384_v0 }
 0x367   : > { %v4386_v46 = vrot.slane %v4385_v39, 4 }
 0x369   : > { %v4387_v44 = vadd.f32 %v4386_v46, %v4385_v39 }
 0x36b   : > { %v4388_v62 = vrot.slane %v4387_v44, 2 }
 0x36d   : > { %v4389_v16 = vadd.f32 %v4388_v62, %v4387_v44 }
 0x36f   : > { %v4390_v38 = vrot.slane %v4389_v16, 1 }
 0x371   : > { %v4391_v25 = vadd.f32 %v4390_v38, %v4389_v16 }
 0x373   : > { %v4392_v52 = vmul.f32 0.125, %v4391_v25 }
 0x375   : > { %v4394_v45 = vadd.f32 1e-05, %v4392_v52 }
 0x377   : > { %6645 = vrsqrt.f32 %v4394_v45  ;;  %vm4401_vm11 = vweird.f32 %v4394_v45 }
 0x37d   : > { %v6646_v41 = vpop.eup %6645 }
 0x37e   : > { %v4396_v19 = vmul.f32 %v6646_v41, %v4394_v45  ;;  %vm4402_vm8 = vweird.f32 %v6646_v41 }
 0x37f   : > { %vm4403_vm10 = vmor %vm4401_vm11, %vm4402_vm8 }
 0x380   : > { %v4397_v53 = vmul.f32 %v6646_v41, %v4396_v19 }
 0x382   : > { %v4398_v21 = vmul.f32 0.5, %v4397_v53 }
 0x384   : > { %v4399_v10 = vsub.f32 1.5, %v4398_v21 }
 0x386   : > { %v4400_v48 = vmul.f32 %v6646_v41, %v4399_v10 }
 0x388   : > { %v4404_v56 = vsel %vm4403_vm10, %v6646_v41, %v4400_v48 }
 0x389   : > { %v4405_v57 = vmul.f32 %v4404_v56, %v4393_v32 }
 0x38b   : > { %v4407_v29 = vperm.slane %v4405_v57, 0 }
 0x38d   : > { %v4409_v3 = vmul.f32 %v4407_v29, %v4384_v0 }
 0x38f   : > { %v4414_v4 = vadd.f32 %v6610_v49, %v4409_v3 }
 0x391   : > { %v4415_v7 = vmax.f32 %v4414_v4, 0.0 }
 0x393   : > { %v4420_v9 = vmul.f32 %v6611_v14, %v4415_v7 }
 0x395   : > { %4421 = vadd.xlane.f32.xlu0 %v4420_v9 }
 0x408   : > { %v4422_v22 = vpop.xlane.xlu0 %4421 }
 0x409   : > { %v4427_v47 = vadd.f32 %v6612_v31, %v4422_v22 }
 0x40b   : > { %4429 = vst.msk [vmem:[%s8277_s9] sm:$0xff] %vm4428_vm7, %v4427_v47 }
 0x40c PF: > { %p27_p3 = scmp.ge.s32.totalorder %s7078_s19, 4   ;;  %s8320_s11 = smov %s6933_s12 }
 0x40d   : > { %s8321_s12 = smov %s6937_s13  ;;  %s8322_s13 = smov %s7090_s16 }
 0x40e   : > { %s8323_s14 = smov %s7078_s19  ;;  %29 = sbr.rel (!%p27_p3) target bundleno = 12 (0xc), region = 137 }
 0x413   :  { %4441 = vsyncpa [#allocation5], 1 }
 0x414   :  { %4443 = vsyncpa [#allocation5 + $0x1], 1 }
 0x415   :  { %4444 = vsyncpa [#allocation7], 1 }
 0x416   :  { %4446 = vsyncpa [#allocation7 + $0x1], 1 }
 0x417   :  { %4447 = vsyncpa [#allocation10], 1 }
 0x418   :  { %4448 = vsyncpa [#allocation13], 1 }
 0x419   :  { %4449 = vsyncpa [#allocation16], 1 }

</bundles_post_ra>
